<compile_context>
chip_gen: v7x
topology: tpu7x:2x2x1
jax: 0.10.0
libtpu: 0.0.40
codegen_flags: <defaults>
</compile_context>

<pallas_src>
import math
import functools

import jax
import jax.numpy as jnp
from jax.experimental import pallas as pl
from jax.experimental.pallas import tpu as pltpu


# ----------------------------------------------------------------------------
# Fused (dropout) -> matmul -> bias -> (relu) kernel
# ----------------------------------------------------------------------------
def _fused_linear_kernel(*refs, apply_relu, nk, has_mask):
    """One (j, k) grid step of y = [relu](dropout(x) @ w + b)."""
    if has_mask:
        x_ref, m_ref, w_ref, b_ref, o_ref, acc_ref = refs
    else:
        x_ref, w_ref, b_ref, o_ref, acc_ref = refs

    k = pl.program_id(1)  # reduction axis (last grid axis)

    @pl.when(k == 0)
    def _():
        acc_ref[...] = jnp.zeros_like(acc_ref)

    x = x_ref[...]
    if has_mask:
        # Dropout: mask holds 0 or 1/(1-p); scaling by a power of two is exact.
        x = x * m_ref[...]
    x = x.astype(jnp.bfloat16)

    # bf16 x bf16 on the MXU, f32 accumulator kept resident in VMEM scratch.
    acc_ref[...] += jnp.dot(x, w_ref[...], preferred_element_type=jnp.float32)

    @pl.when(k == nk - 1)
    def _():
        y = acc_ref[...] + b_ref[...].astype(jnp.float32)
        if apply_relu:
            y = jnp.maximum(y, 0.0)
        o_ref[...] = y.astype(o_ref.dtype)


def fused_linear(x, w, b, *, mask=None, apply_relu=False,
                 out_dtype=jnp.bfloat16, tk=1024, n_splits=2):
    """y = [relu](dropout(x) @ w + b).

    x    : (M, K)        activations (f32 or bf16)
    w    : (K, Npad)     bf16 weights, Npad a multiple of n_splits*128
    b    : (1, Npad)     f32 bias
    mask : optional (M, K) dropout scale factors (0 or 1/(1-p))
    """
    M, K = x.shape
    Kw, Npad = w.shape
    assert K == Kw and K % tk == 0, (K, tk)
    assert Npad % (n_splits * 128) == 0, Npad
    tn = Npad // n_splits
    nk = K // tk
    has_mask = mask is not None

    kernel = functools.partial(_fused_linear_kernel,
                               apply_relu=bool(apply_relu),
                               nk=nk, has_mask=has_mask)

    in_specs = [pl.BlockSpec((M, tk), lambda j, k: (0, k))]
    args = [x]
    if has_mask:
        in_specs.append(pl.BlockSpec((M, tk), lambda j, k: (0, k)))
        args.append(mask.astype(x.dtype))
    in_specs += [pl.BlockSpec((tk, tn), lambda j, k: (k, j)),
                 pl.BlockSpec((1, tn), lambda j, k: (0, j))]
    args += [w, b]

    return pl.pallas_call(
        kernel,
        out_shape=jax.ShapeDtypeStruct((M, Npad), out_dtype),
        grid_spec=pltpu.PrefetchScalarGridSpec(
            num_scalar_prefetch=0,
            grid=(n_splits, nk),              # j parallel, k = reduction (last)
            in_specs=in_specs,
            out_specs=pl.BlockSpec((M, tn), lambda j, k: (0, j)),
            scratch_shapes=[pltpu.VMEM((M, tn), jnp.float32)],
        ),
        compiler_params=pltpu.CompilerParams(
            dimension_semantics=("parallel", "arbitrary"),
            # bf16 weight block (1024 x 2048) double-buffered ~ 8 MiB; give
            # headroom while staying well inside every generation's VMEM.
            vmem_limit_bytes=32 * 1024 * 1024),
    )(*args)


# ----------------------------------------------------------------------------
# Parameters
# ----------------------------------------------------------------------------
def init_params(key):
    """PyTorch-style uniform(-1/sqrt(fan_in), +1/sqrt(fan_in)) Linear params."""
    def init_linear(k, fan_in, fan_out):
        k1, k2 = jax.random.split(k)
        bound = 1.0 / math.sqrt(fan_in)
        w = jax.random.uniform(k1, (fan_in, fan_out), jnp.float32, -bound, bound)
        b = jax.random.uniform(k2, (1, fan_out), jnp.float32, -bound, bound)
        return w, b

    k1, k2, k3 = jax.random.split(key, 3)
    return (init_linear(k1, 9216, 4096),
            init_linear(k2, 4096, 4096),
            init_linear(k3, 4096, 1000))


def prepare_params(params, *, n_splits=2):
    """One-time device prep: cast weights to bf16 and pad out_features so each
    layer splits into `n_splits` lane-aligned output tiles (1000 -> 1024)."""
    align = 128 * n_splits
    prepped = []
    for (w, b) in params:
        _, n = w.shape
        n_pad = pl.cdiv(n, align) * align
        if n_pad != n:
            w = jnp.pad(w, ((0, 0), (0, n_pad - n)))
            b = jnp.pad(b, ((0, 0), (0, n_pad - n)))
        prepped.append((w.astype(jnp.bfloat16), b.astype(jnp.float32), n))
    return tuple(prepped)


# ----------------------------------------------------------------------------
# Stage2 forward
# ----------------------------------------------------------------------------
def _dropout_mask(key, shape, p, dtype):
    keep = jax.random.bernoulli(key, 1.0 - p, shape)
    return keep.astype(dtype) * jnp.asarray(1.0 / (1.0 - p), dtype=dtype)


def stage2_forward(x_nchw, params, *, training, rng_key=None, return_masks=False):
    """Pallas forward of Stage2. x_nchw: (N, C, H, W) with C*H*W == 9216."""
    (w1, b1, _), (w2, b2, _), (w3, b3, n3) = params
    M = x_nchw.shape[0]
    p = 0.5

    # layer1: Flatten (plain-JAX glue)
    x = x_nchw.reshape(M, -1)

    if training:
        assert rng_key is not None, "training mode needs an rng_key"
        # Distinct fold_in per layer -> no cross-layer mask correlation.
        # TODO(synk): dropout RNG is JAX threefry (deterministic per key), not
        # bit-identical to torch.nn.Dropout's RNG stream.
        m1 = _dropout_mask(jax.random.fold_in(rng_key, 1), (M, x.shape[1]), p, x.dtype)
        m2 = _dropout_mask(jax.random.fold_in(rng_key, 2), (M, w2.shape[0]), p, jnp.bfloat16)
    else:
        m1 = m2 = None

    # layer2 (dropout) + layer3 (linear) + layer4 (relu), fused
    h1 = fused_linear(x, w1, b1, mask=m1, apply_relu=True, out_dtype=jnp.bfloat16)
    # layer5 (dropout) + layer6 (linear) + layer7 (relu), fused
    h2 = fused_linear(h1, w2, b2, mask=m2, apply_relu=True, out_dtype=jnp.bfloat16)
    # layer8 (linear)
    out = fused_linear(h2, w3, b3, mask=None, apply_relu=False, out_dtype=jnp.float32)
    out = out[:, :n3]

    if return_masks:
        return out, (m1, m2)
    return out


def reference_forward(x_nchw, params, m1, m2):
    """Plain-JAX reference with the same bf16 weight/activation rounding."""
    (w1, b1, _), (w2, b2, _), (w3, b3, n3) = params
    f32 = jnp.float32
    w1f, w2f, w3f = (w.astype(f32) for w in (w1, w2, w3))

    a = x_nchw.reshape(x_nchw.shape[0], -1)
    if m1 is not None:
        a = a * m1
    a = a.astype(jnp.bfloat16).astype(f32)
    h1 = jnp.maximum(a @ w1f + b1, 0.0).astype(jnp.bfloat16)

    a2 = h1 if m2 is None else h1 * m2
    a2 = a2.astype(jnp.bfloat16).astype(f32)
    h2 = jnp.maximum(a2 @ w2f + b2, 0.0).astype(jnp.bfloat16)

    out = h2.astype(f32) @ w3f + b3
    return out[:, :n3]


if __name__ == "__main__":
    key = jax.random.PRNGKey(0)
    kx, kp, kd = jax.random.split(key, 3)

    # Spatial/channel dims fixed by the module (256*6*6 = 9216), small batch.
    x = jax.random.normal(kx, (2, 256, 6, 6), dtype=jnp.float32)
    params = prepare_params(init_params(kp))

    # ---- eval mode (dropout = identity) ----
    out_eval = jax.block_until_ready(stage2_forward(x, params, training=False))
    ref_eval = reference_forward(x, params, m1=None, m2=None)
    assert out_eval.shape == (2, 1000)
    assert jnp.allclose(out_eval, ref_eval, rtol=1e-2, atol=1e-2), "eval mismatch vs reference"

    # ---- training mode (in-kernel dropout with jax.random masks) ----
    out_train, (m1, m2) = stage2_forward(x, params, training=True, rng_key=kd,
                                         return_masks=True)
    out_train = jax.block_until_ready(out_train)
    ref_train = reference_forward(x, params, m1=m1, m2=m2)
    assert out_train.shape == (2, 1000)
    assert jnp.allclose(out_train, ref_train, rtol=1e-2, atol=1e-2), "train mismatch vs reference"

    print("KERNEL_OK")
</pallas_src>

<mosaic_0001>
module attributes {stable_mosaic.version = 11 : i64} {
  func.func @_fused_linear_kernel(%arg0: i32, %arg1: i32, %arg2: memref<2x1024xf32, #tpu.memory_space<vmem>>, %arg3: memref<1024x2048xbf16, #tpu.memory_space<vmem>>, %arg4: memref<1x2048xf32, #tpu.memory_space<vmem>>, %arg5: memref<2x2048xbf16, #tpu.memory_space<vmem>>, %arg6: memref<2x2048xf32, #tpu.memory_space<vmem>>) attributes {dimension_semantics = [#tpu.dimension_semantics<parallel>, #tpu.dimension_semantics<arbitrary>], iteration_bounds = array<i64: 2, 9>, scalar_prefetch = 0 : i64, scratch_operands = 1 : i64, tpu.core_type = #tpu.core_type<tc>, window_params = [{transform_indices = @transform_0, window_bounds = array<i64: 2, 1024>}, {transform_indices = @transform_1, window_bounds = array<i64: 1024, 2048>}, {transform_indices = @transform_2, window_bounds = array<i64: 1, 2048>}, {transform_indices = @transform_3, window_bounds = array<i64: 2, 2048>}]} {
    %c0_i32 = arith.constant 0 : i32
    %0 = arith.cmpi eq, %arg1, %c0_i32 : i32
    %1 = arith.extui %0 : i1 to i32
    %c0_i32_0 = arith.constant 0 : i32
    %2 = arith.cmpi ne, %1, %c0_i32_0 : i32
    scf.if %2 {
      %cst_9 = arith.constant 0.000000e+00 : f32
      %13 = vector.broadcast %cst_9 : f32 to vector<2x2048xf32>
      %c0_10 = arith.constant 0 : index
      %c0_11 = arith.constant 0 : index
      %14 = vector.load %arg6[%c0_10, %c0_11] : memref<2x2048xf32, #tpu.memory_space<vmem>>, vector<2x2048xf32>
      tpu.vector_store %arg6[%c0_10, %c0_11], %13 {strides = array<i32>} : memref<2x2048xf32, #tpu.memory_space<vmem>>, vector<2x2048xf32>,
    } else {
    }
    %c0 = arith.constant 0 : index
    %c0_1 = arith.constant 0 : index
    %3 = vector.load %arg2[%c0, %c0_1] : memref<2x1024xf32, #tpu.memory_space<vmem>>, vector<2x1024xf32>
    %4 = arith.truncf %3 : vector<2x1024xf32> to vector<2x1024xbf16>
    %c0_2 = arith.constant 0 : index
    %c0_3 = arith.constant 0 : index
    %5 = vector.load %arg6[%c0_2, %c0_3] : memref<2x2048xf32, #tpu.memory_space<vmem>>, vector<2x2048xf32>
    %c0_4 = arith.constant 0 : index
    %c0_5 = arith.constant 0 : index
    %6 = vector.load %arg3[%c0_4, %c0_5] : memref<1024x2048xbf16, #tpu.memory_space<vmem>>, vector<1024x2048xbf16>
    %cst = arith.constant dense<0.000000e+00> : vector<2x2048xf32>
    %7 = tpu.matmul %4, %6, %cst {dimension_numbers = #tpu.dot_dimension_numbers<[1], [0], [0], [1], [0, 0, 1, 1], [], []>} : vector<2x1024xbf16>, vector<1024x2048xbf16>, vector<2x2048xf32> -> vector<2x2048xf32>
    %8 = arith.addf %5, %7 : vector<2x2048xf32>
    %c0_6 = arith.constant 0 : index
    %c0_7 = arith.constant 0 : index
    %9 = vector.load %arg6[%c0_6, %c0_7] : memref<2x2048xf32, #tpu.memory_space<vmem>>, vector<2x2048xf32>
    tpu.vector_store %arg6[%c0_6, %c0_7], %8 {strides = array<i32>} : memref<2x2048xf32, #tpu.memory_space<vmem>>, vector<2x2048xf32>,
    %c8_i32 = arith.constant 8 : i32
    %10 = arith.cmpi eq, %arg1, %c8_i32 : i32
    %11 = arith.extui %10 : i1 to i32
    %c0_i32_8 = arith.constant 0 : i32
    %12 = arith.cmpi ne, %11, %c0_i32_8 : i32
    scf.if %12 {
      %c0_9 = arith.constant 0 : index
      %c0_10 = arith.constant 0 : index
      %13 = vector.load %arg6[%c0_9, %c0_10] : memref<2x2048xf32, #tpu.memory_space<vmem>>, vector<2x2048xf32>
      %c0_11 = arith.constant 0 : index
      %c0_12 = arith.constant 0 : index
      %14 = vector.load %arg4[%c0_11, %c0_12] : memref<1x2048xf32, #tpu.memory_space<vmem>>, vector<1x2048xf32>
      %15 = vector.broadcast %14 : vector<1x2048xf32> to vector<2x2048xf32>
      %16 = arith.addf %13, %15 : vector<2x2048xf32>
      %cst_13 = arith.constant 0.000000e+00 : f32
      %17 = vector.broadcast %cst_13 : f32 to vector<2x2048xf32>
      %18 = arith.maximumf %16, %17 : vector<2x2048xf32>
      %19 = arith.truncf %18 : vector<2x2048xf32> to vector<2x2048xbf16>
      %c0_14 = arith.constant 0 : index
      %c0_15 = arith.constant 0 : index
      %20 = vector.load %arg5[%c0_14, %c0_15] : memref<2x2048xbf16, #tpu.memory_space<vmem>>, vector<2x2048xbf16>
      tpu.vector_store %arg5[%c0_14, %c0_15], %19 {strides = array<i32>} : memref<2x2048xbf16, #tpu.memory_space<vmem>>, vector<2x2048xbf16>,
    } else {
    }
    return
  }
  func.func @transform_0(%arg0: i32, %arg1: i32) -> (i32, i32) {
    %c0_i32 = arith.constant 0 : i32
    %c0_i32_0 = arith.constant 0 : i32
    return %c0_i32, %arg1 : i32, i32
  }
  func.func @transform_1(%arg0: i32, %arg1: i32) -> (i32, i32) {
    %c0_i32 = arith.constant 0 : i32
    return %arg1, %arg0 : i32, i32
  }
  func.func @transform_2(%arg0: i32, %arg1: i32) -> (i32, i32) {
    %c0_i32 = arith.constant 0 : i32
    %c0_i32_0 = arith.constant 0 : i32
    return %c0_i32, %arg0 : i32, i32
  }
  func.func @transform_3(%arg0: i32, %arg1: i32) -> (i32, i32) {
    %c0_i32 = arith.constant 0 : i32
    %c0_i32_0 = arith.constant 0 : i32
    return %c0_i32, %arg0 : i32, i32
  }
}

</mosaic_0001>

<bundles_post_ra>
// kernel: tpu_custom_call.1
= control target key start
LH: loop header
LB: loop body
LE: loop exit
PB: predicated region body
PF: predicated region fallthrough
CT: control target
= control target key end

     0   :  { %s11598_s0 = inlined_call_operand.hbm [shape: f32[2,9216], index: 0, kind: input, shape index: {}]   ;;  %s11599_s1 = inlined_call_operand.hbm [shape: bf16[9216,4096], index: 1, kind: input, shape index: {}]   ;;  %s11600_s2 = inlined_call_operand.hbm [shape: f32[1,4096], index: 2, kind: input, shape index: {}]   ;;  %s11601_s3 = inlined_call_operand.hbm [shape: bf16[2,4096], index: 3, kind: output, shape index: {}]  }
   0x1   :  { %11614 = sst [smem:[#allocation20_spill]] %s11598_s0 }
   0x2   :  { %11615 = sst [smem:[#allocation21_spill]] %s11599_s1 }
   0x3   :  { %11616 = sst [smem:[#allocation22_spill]] %s11601_s3 }
   0x4   :  { %8 = vsyncpa [#allocation4], 0 }
   0x5   :  { %10 = vsyncpa [#allocation4 + $0x1], 0 }
   0x6   :  { %11 = vsyncpa [#allocation7], 0 }
   0x7   :  { %13 = vsyncpa [#allocation7 + $0x1], 0 }
   0x8   :  { %14 = vsyncpa [#allocation5], 0 }
   0x9   :  { %16 = vsyncpa [#allocation5 + $0x1], 0  ;;  %s10001_s12 = smov 0   ;;  %s10003_s13 = smov 0  }
   0xa   :  { %s10005_s14 = smov 0   ;;  %s10007_s15 = smov 0  }
   0xb   :  { %s10009_s16 = smov 0   ;;  %s10011_s17 = smov 0  }
   0xc   :  { %s10013_s18 = smov 0   ;;  %s10015_s19 = smov 0  }
   0xd   :  { %s10017_s20 = smov 0   ;;  %s10019_s21 = smov 0  }
   0xe   :  { %s10021_s22 = smov 0   ;;  %s10023_s23 = smov 0  }
   0xf   :  { %s10025_s24 = smov 0   ;;  %s10027_s25 = smov 0  }
  0x10 LB: > { %11617 = sst [smem:[#allocation14_spill]] %s9949_s20  ;;  %p11603_p0 = scmp.eq.s32.totalorder %s9969_s25, 0  ;;  %s9969_s25 = sphi %s10027_s25, %s22_s25   ;;  %s9965_s24 = sphi %s10025_s24, %s11657_s24   ;;  %s9961_s23 = sphi %s10023_s23, %s11668_s23   ;;  %s9957_s22 = sphi %s10021_s22, %s11655_s22   ;;  %s9953_s21 = sphi %s10019_s21, %s11667_s21   ;;  %s9949_s20 = sphi %s10017_s20, %s11654_s20   ;;  %s9945_s19 = sphi %s10015_s19, %s11666_s19   ;;  %s9941_s18 = sphi %s10013_s18, %s11665_s18   ;;  %s9937_s17 = sphi %s10011_s17, %s11664_s17   ;;  %s9933_s16 = sphi %s10009_s16, %s11663_s16   ;;  %s9929_s15 = sphi %s10007_s15, %s11662_s15   ;;  %s9925_s14 = sphi %s10005_s14, %s11661_s14   ;;  %s9921_s13 = sphi %s10003_s13, %s11660_s13   ;;  %s9917_s12 = sphi %s10001_s12, %s11659_s12  }
  0x11   : > { %11618 = sst [smem:[#allocation15_spill]] %s9957_s22  ;;  %p76_p1 = scmp.ne.s32.totalorder %s9937_s17, %s9933_s16 }
  0x12   : > { %11619 = sst [smem:[#allocation16_spill]] %s9965_s24  ;;  %p11602_p4 = scmp.lt.s32.totalorder %s9969_s25, 18 }
  0x13   : > { %p78_p3 = por %p76_p1, %p11603_p0  ;;  %s177_s28 = sand.u32 1, %s9969_s25  }
  0x14   : > { %s179_s29 = sand.u32 1, %s9937_s17   ;;  %s8431_s4 = sshll.u32 %s9965_s24, 4 }
  0x15   : > { %s8429_s30 = sshll.u32 %s179_s29, 13  ;;  %s9482_s5 = sshll.u32 %s9961_s23, 12 }
  0x16   : > { %s181_s6 = scalar_lea.vmem [#allocation6], %s8429_s30  ;;  %s188_s8 = sadd.s32 %s9482_s5, %s8431_s4 }
  0x17   : > { %s191_s7 = sshll.u32 %s181_s6, 4  ;;  %s8433_s9 = sshll.u32 %s188_s8, 6  ;;  %s10085_s7 = int_to_ptr.vmem [resolvable:$true] %s191_s7 }
  0x18   : > { %p10089_p5 = pnand %p11602_p4, %p78_p3  ;;  %s11621_s1 = sld [smem:[#allocation21_spill]] }
  0x19   : > { %p8437_p6 = scmp.ge.s32.totalorder %s9969_s25, 1  ;;  %s10099_s29 = scalar_lea.sflag [#allocation7], %s177_s28 }
  0x1a   : > { %p9727_p8 = pneg %p10089_p5 }
  0x1e   : > { %s10096_s26 = scalar_lea.hbm %s11621_s1, %s8433_s9  ;;  %s9730_s5 = scalar_lea.hbm %s11621_s1, 2359296 }
  0x1f   : > { %s9725_s30 = scalar_lea.hbm %s10096_s26, 131072  ;;  %p9731_p11 = scmp.lt.u32.totalorder %s10096_s26, %s11621_s1 }
  0x20   : > { %p9726_p7 = scmp.ne.s32.totalorder %s10096_s26, %s9725_s30  ;;  %p9732_p12 = scmp.lt.u32.totalorder %s9730_s5, %s9725_s30 }
  0x21   : > { %p9734_p1 = scmp.lt.u32.totalorder %s9725_s30, %s10096_s26 }
  0x22   : > { %p9728_p9 = pnand %p9727_p8, %p9726_p7  ;;  %p9733_p13 = por %p9732_p12, %p9731_p11 }
  0x24   : > { %p9729_p10 = pneg %p9728_p9  ;;  %p9735_p3 = por %p9734_p1, %p9733_p13 }
  0x26   : > { %p9736_p4 = pnand %p9735_p3, %p9729_p10 }
  0x28   : > { %9739 = shalt.err (!%p9736_p4)
}
  0x29   : > { %s9740_s28 = scalar_lea.vmem %s10085_s7, 131072  ;;  %s9971_s9 = smov [#allocation6]  }
  0x2a   : > { %p9741_p7 = scmp.ne.s32.totalorder %s10085_s7, %s9740_s28  ;;  %s9745_s11 = sshll.u32 %s9971_s9, 4  ;;  %s9746_s11 = int_to_ptr.vmem [resolvable:$false] %s9745_s11 }
  0x2b   : > { %s9747_s27 = scalar_lea.vmem %s9746_s11, 262144  ;;  %p9748_p0 = scmp.lt.s32.totalorder %s10085_s7, %s9746_s11 }
  0x2c   : > { %p9743_p9 = pnand %p9741_p7, %p9727_p8  ;;  %p9749_p11 = scmp.lt.s32.totalorder %s9747_s27, %s9740_s28 }
  0x2e   : > { %p9744_p2 = pneg %p9743_p9  ;;  %p9750_p12 = por %p9749_p11, %p9748_p0 }
  0x30   : > { %p9751_p13 = pnand %p9750_p12, %p9744_p2 }
  0x32   : > { %9754 = shalt.err (!%p9751_p13)
}
  0x33   : > { %s9972_s30 = smov 2048   ;;  %s9973_s4 = smov 1024  }
  0x34   : > { %s9974_s5 = smov 64   ;;  %p218_p0 = scmp.lt.s32.totalorder %s9969_s25, 19 }
  0x35   : > { %9595 = dma.hbm_to_vmem [thread:$0]  (!%p10089_p5), %s10096_s26, 131072, %s10085_s7, %s10099_s29, %s9972_s30, %s9973_s4, %s9974_s5  }
  0x36   : > { %p10130_p2 = pnand %p8437_p6, %p218_p0  ;;  %s10135_s8 = sadd.s32 4294967295, %s9969_s25  }
  0x37   : > { %s31_s28 = sadd.s32 1, %s9961_s23  ;;  %s41_s9 = sadd.s32 1, %s9949_s20 }
  0x38   : > { %s11622_s6 = scalar_select %p10130_p2, 1, 0 }
  0x39   : > { %p32_p4 = scmp.ge.s32.totalorder %s31_s28, 9  ;;  %p48_p5 = scmp.ne.s32.totalorder %s9949_s20, %s9945_s19 }
  0x3a   : > { %p54_p8 = scmp.ne.s32.totalorder %s9945_s19, %s9941_s18  ;;  %s11624_s26 = sadd.s32 1, %s9965_s24 }
  0x3b   : > { %s11670_s28 = smov (%p32_p4, %s31_s28), 0  ;;  %s11672_s26 = smov (!%p32_p4, %s11624_s26), %s9965_s24 }
  0x3c   : > { %11623 = sst [smem:[#allocation17_spill]] %s11670_s28  ;;  %s38_s7 = ssub.s32 %s9961_s23, %s11670_s28 }
  0x3d   : > { %p11625_p6 = scmp.eq.s32.totalorder %s9969_s25, 0  ;;  %p36_p1 = scmp.ge.s32.totalorder %s11672_s26, 2 }
  0x3e   : > { %p39_p3 = scmp.eq.s32.totalorder %s38_s7, 0  ;;  %p11607_p7 = scmp.eq.s32.totalorder %s10135_s8, 0 }
  0x3f   : > { %p10152_p10 = por %p11625_p6, %p48_p5  ;;  %s158_s18 = sand.u32 1, %s9949_s20  }
  0x40   : > { %s11674_s26 = smov (%p36_p1, %s11672_s26), 0  ;;  %p10165_p9 = por %p11607_p7, %p54_p8 }
  0x41   : > { %11627 = sst [smem:[#allocation18_spill]] %s11674_s26  ;;  %s10171_s30 = ssub.s32 %s9965_s24, %s11674_s26 }
  0x42   : > { %s10161_s11 = scalar_select %p39_p3, %s9949_s20, %s41_s9  }
  0x43   : > { %s11629_s27 = scalar_select %p10165_p9, 1, 0 }
  0x44   : > { %11628 = sst [smem:[#allocation19_spill]] %s10161_s11  ;;  %s66_s4 = sor.u32 %s10171_s30, %s38_s7 }
  0x45   : > { %p11630_p11 = scmp.ne.s32.totalorder %s9933_s16, %s9929_s15  ;;  %p67_p13 = scmp.eq.s32.totalorder %s66_s4, 0 }
  0x46   : > { %s8426_s1 = sshll.u32 %s158_s18, 4  ;;  %s9481_s28 = sshll.u32 %s9961_s23, 8 }
  0x47   : > { %p10179_p12 = por %p11630_p11, %p11607_p7  ;;  %s11632_s9 = sadd.s32 1, %s9937_s17 }
  0x48   : > { %s10187_s11 = scalar_select %p67_p13, %s9937_s17, %s11632_s9  }
  0x49   : > { %s11631_s5 = scalar_select %p10179_p12, 1, 0 }
  0x4a   : > { %s11633_s0 = sld [smem:[#allocation20_spill]]  ;;  %s162_s15 = scalar_lea.vmem [#allocation3], %s8426_s1 }
  0x4b   : > { %s170_s7 = sshll.u32 %s162_s15, 4  ;;  %p11634_p0 = scmp.lt.s32.totalorder %s9969_s25, 18  ;;  %s10202_s7 = int_to_ptr.vmem [resolvable:$true] %s170_s7 }
  0x4c   : > { %s159_s9 = scalar_lea.sflag [#allocation4], %s158_s18 }
  0x4d   : > { %p10198_p4 = pnand %p11634_p0, %p10152_p10 }
  0x4f   : > { %p9757_p8 = pneg %p10198_p4 }
  0x50   : > { %s10192_s22 = scalar_lea.hbm %s11633_s0, %s9481_s28  ;;  %s9760_s28 = scalar_lea.hbm %s11633_s0, 2304 }
  0x51   : > { %s9755_s3 = scalar_lea.hbm %s10192_s22, 256  ;;  %p9761_p10 = scmp.lt.u32.totalorder %s10192_s22, %s11633_s0 }
  0x52   : > { %p9756_p5 = scmp.ne.s32.totalorder %s10192_s22, %s9755_s3  ;;  %p9762_p3 = scmp.lt.u32.totalorder %s9760_s28, %s9755_s3 }
  0x53   : > { %p9764_p13 = scmp.lt.u32.totalorder %s9755_s3, %s10192_s22 }
  0x54   : > { %p9758_p6 = pnand %p9757_p8, %p9756_p5  ;;  %p9763_p11 = por %p9762_p3, %p9761_p10 }
  0x56   : > { %p9759_p1 = pneg %p9758_p6  ;;  %p9765_p0 = por %p9764_p13, %p9763_p11 }
  0x58   : > { %p9766_p7 = pnand %p9765_p0, %p9759_p1 }
  0x5a   : > { %9769 = shalt.err (!%p9766_p7)
}
  0x5b   : > { %s9770_s18 = scalar_lea.vmem %s10202_s7, 256  ;;  %s9975_s1 = smov [#allocation3]  }
  0x5c   : > { %p9771_p5 = scmp.ne.s32.totalorder %s10202_s7, %s9770_s18  ;;  %s9775_s20 = sshll.u32 %s9975_s1, 4  ;;  %s9776_s20 = int_to_ptr.vmem [resolvable:$false] %s9775_s20 }
  0x5d   : > { %s9777_s10 = scalar_lea.vmem %s9776_s20, 512  ;;  %p9778_p9 = scmp.lt.s32.totalorder %s10202_s7, %s9776_s20 }
  0x5e   : > { %p9773_p6 = pnand %p9771_p5, %p9757_p8  ;;  %p9779_p10 = scmp.lt.s32.totalorder %s9777_s10, %s9770_s18 }
  0x60   : > { %p9774_p12 = pneg %p9773_p6  ;;  %p9780_p3 = por %p9779_p10, %p9778_p9 }
  0x62   : > { %p9781_p11 = pnand %p9780_p3, %p9774_p12 }
  0x64   : > { %9784 = shalt.err (!%p9781_p11)
}
  0x65   : > { %9592 = dma.hbm_to_vmem [thread:$0]  (!%p10198_p4), %s10192_s22, 256, %s10202_s7, %s159_s9  }
  0x66   : > { %s8423_s3 = sadd.s32 4294967294, %s9969_s25   ;;  %p93_p7 = scmp.eq.s32.totalorder %s10171_s30, 0 }
  0x67   : > { %s95_s28 = sadd.s32 1, %s9925_s14  ;;  %p102_p9 = scmp.ne.s32.totalorder %s9925_s14, %s9921_s13 }
  0x68   : > { %s10235_s4 = scalar_select %p93_p7, %s9925_s14, %s95_s28  }
  0x69   : > { %p11636_p12 = scmp.eq.s32.totalorder %s9969_s25, 0  ;;  %p108_p1 = scmp.ne.s32.totalorder %s9921_s13, %s9917_s12 }
  0x6a   : > { %p132_p13 = scmp.eq.s32.totalorder %s10135_s8, 17  ;;  %p138_p0 = scmp.eq.s32.totalorder %s8423_s3, 17 }
  0x6b   : > { %p10239_p8 = por %p102_p9, %p11636_p12  ;;  %p11638_p5 = scmp.eq.s32.totalorder %s10135_s8, 0 }
  0x6c   : > { %s203_s22 = sand.u32 1, %s9925_s14   ;;  %p10253_p4 = por %p132_p13, %p102_p9 }
  0x6d   : > { %p10248_p6 = por %p108_p1, %p11638_p5  ;;  %p10257_p10 = por %p138_p0, %p108_p1 }
  0x6e   : > { %s11640_s30 = scalar_select %p10253_p4, 1, 0 }
  0x6f   : > { %s11639_s18 = scalar_select %p10248_p6, 1, 0 }
  0x70   : > { %s11641_s7 = scalar_select %p10257_p10, 1, 0 }
  0x71   : > { %s8434_s9 = sshll.u32 %s203_s22, 4  ;;  %s9483_s1 = sshll.u32 %s9965_s24, 8 }
  0x72   : > { %s10265_s3 = scalar_lea.hbm %s11600_s2, %s9483_s1  ;;  %s205_s28 = scalar_lea.vmem [#allocation8], %s8434_s9 }
  0x73   : > { %s213_s0 = sshll.u32 %s205_s28, 4  ;;  %p11642_p3 = scmp.lt.s32.totalorder %s9969_s25, 18  ;;  %s214_s0 = int_to_ptr.vmem [resolvable:$true] %s213_s0 }
  0x74   : > { %s9785_s22 = scalar_lea.hbm %s10265_s3, 256  ;;  %s9790_s15 = scalar_lea.hbm %s11600_s2, 512 }
  0x75   : > { %p10271_p11 = pnand %p11642_p3, %p10239_p8  ;;  %p9786_p7 = scmp.ne.s32.totalorder %s10265_s3, %s9785_s22 }
  0x76   : > { %p9791_p8 = scmp.lt.u32.totalorder %s10265_s3, %s11600_s2  ;;  %p9792_p13 = scmp.lt.u32.totalorder %s9790_s15, %s9785_s22 }
  0x77   : > { %p9787_p9 = pneg %p10271_p11  ;;  %p9794_p5 = scmp.lt.u32.totalorder %s9785_s22, %s10265_s3 }
  0x78   : > { %p9793_p0 = por %p9792_p13, %p9791_p8 }
  0x79   : > { %p9788_p12 = pnand %p9787_p9, %p9786_p7 }
  0x7a   : > { %p9795_p3 = por %p9794_p5, %p9793_p0 }
  0x7b   : > { %p9789_p1 = pneg %p9788_p12 }
  0x7d   : > { %p9796_p10 = pnand %p9795_p3, %p9789_p1 }
  0x7f   : > { %9799 = shalt.err (!%p9796_p10)
}
  0x80   : > { %s9800_s28 = scalar_lea.vmem %s214_s0, 256  ;;  %s9976_s24 = smov [#allocation8]  }
  0x81   : > { %p9801_p4 = scmp.ne.s32.totalorder %s214_s0, %s9800_s28  ;;  %s9805_s1 = sshll.u32 %s9976_s24, 4  ;;  %s9806_s1 = int_to_ptr.vmem [resolvable:$false] %s9805_s1 }
  0x82   : > { %s9807_s9 = scalar_lea.vmem %s9806_s1, 512  ;;  %p9808_p6 = scmp.lt.s32.totalorder %s214_s0, %s9806_s1 }
  0x83   : > { %p9803_p7 = pnand %p9801_p4, %p9787_p9  ;;  %p9809_p2 = scmp.lt.s32.totalorder %s9807_s9, %s9800_s28 }
  0x85   : > { %p9804_p12 = pneg %p9803_p7  ;;  %p9810_p8 = por %p9809_p2, %p9808_p6 }
  0x87   : > { %p9811_p13 = pnand %p9810_p8, %p9804_p12 }
  0x89   : > { %9814 = shalt.err (!%p9811_p13)
}
  0x8a   : > { %9598 = dma.hbm_to_vmem [thread:$0]  (!%p10271_p11), %s10265_s3, 256, %s214_s0, %s10099_s29  }
  0x8b   : > { %p11644_p10 = scmp.ne.s32.totalorder %s11622_s6, 0 }
  0x8c   : > { %s224_s22 = sand.u32 (!%p11644_p10), 1, %s9945_s19   ;;  %p11645_p4 = scmp.ne.s32.totalorder (!%p11644_p10), %s11629_s27, 0 }
  0x8d   : > { %222 = sbr.rel (%p11644_p10) target bundleno = 1472 (0x5c0), region = 32  ;;  %s10300_s15 = sshll.u32 (!%p11644_p10), %s224_s22, 4 }
  0x8e   : > { %s225_s24 = scalar_lea.sflag (!%p11644_p10), [#allocation4], %s224_s22  ;;  %s228_s20 = scalar_lea.vmem (!%p11644_p10), [#allocation3], %s10300_s15 }
  0x94   : > { %9900 = dma.done.wait (%p11645_p4), %s225_s24, 256  }
  0x95   : > { %9902 = vsyncadd (%p11645_p4), %s225_s24, 4294967040  ;;  %s233_s0 = sand.u32 1, %s10135_s8   ;;  %s235_s29 = sand.u32 1, %s9933_s16  }
  0x96   : > { %s8439_s6 = sshll.u32 %s235_s29, 13  ;;  %s234_s26 = scalar_lea.sflag [#allocation7], %s233_s0 }
  0x97   : > { %s10309_s3 = scalar_lea.vmem [#allocation6], %s8439_s6  ;;  %p11646_p2 = scmp.ne.s32.totalorder %s11631_s5, 0 }
  0x99   : > { %9904 = dma.done.wait (%p11646_p2), %s234_s26, 131072  }
  0x9a   : > { %9906 = vsyncadd (%p11646_p2), %s234_s26, 4294836224  ;;  %s244_s10 = sand.u32 1, %s9921_s13   ;;  %p11647_p6 = scmp.ne.s32.totalorder %s11639_s18, 0 }
  0x9b   : > { %s10318_s27 = sshll.u32 %s244_s10, 4 }
  0x9c   : > { %s246_s28 = scalar_lea.vmem [#allocation8], %s10318_s27 }
  0x9d   : > { %9908 = dma.done.wait (%p11647_p6), %s234_s26, 256  }
  0x9e   : > { %9910 = vsyncadd (%p11647_p6), %s234_s26, 4294967040  ;;  %s10326_s8 = scalar_lea.vmem [#allocation9], %s10318_s27  ;;  %p8442_p11 = scmp.ne.s32.totalorder %s9953_s21, 0 }
  0x9f   : > { %v9977_v0 = vmov (!%p8442_p11), 0.0  }
  0xa0   : > { %287 = sbr.rel (%p8442_p11) target bundleno = 167 (0xa7), region = 48  ;;  %288 = vst [vmem:[#allocation2] sm:$0xff] (!%p8442_p11), %v9977_v0  ;;  %289 = vst [vmem:[#allocation2 + $0x8] sm:$0xff] (!%p8442_p11), %v9977_v0 }
  0xa1   : > { %290 = vst [vmem:[#allocation2 + $0x10] sm:$0xff] (!%p8442_p11), %v9977_v0  ;;  %291 = vst [vmem:[#allocation2 + $0x18] sm:$0xff] (!%p8442_p11), %v9977_v0 }
  0xa7 PF: > { %v350_v1 = vld [vmem:[%s10309_s3] sm:$0xff]  ;;  %v351_v3 = vld [vmem:[%s10309_s3 + $0x8] sm:$0xff]  ;;  %v9978_v33 = vmov 1983009808   ;;  %v300_v35 = vlaneseq  ;;  %p9467_p9 = scmp.ne.s32.totalorder %s9953_s21, 8 }
  0xa8   : > { %v358_v2 = vld [vmem:[%s10309_s3 + $0x40] sm:$0xff]  ;;  %v359_v5 = vld [vmem:[%s10309_s3 + $0x48] sm:$0xff]  ;;  %v298_v34 = vunpack.c.l.s4 %v9978_v33 }
  0xa9   : > { %v8444_v4 = vcombine.high %v350_v1, %v358_v2  ;;  %v8443_v6 = vcombine.low %v350_v1, %v358_v2  ;;  %v366_v7 = vld [vmem:[%s10309_s3 + $0x80] sm:$0xff]  ;;  %v8446_v9 = vcombine.high %v351_v3, %v359_v5  ;;  %v8445_v10 = vcombine.low %v351_v3, %v359_v5  ;;  %v367_v12 = vld [vmem:[%s10309_s3 + $0x88] sm:$0xff] }
  0xaa   : > { %v374_v8 = vld [vmem:[%s10309_s3 + $0xc0] sm:$0xff]  ;;  %v375_v13 = vld [vmem:[%s10309_s3 + $0xc8] sm:$0xff]  ;;  %v299_v44 = vunpack.c.0.s8 %v298_v34  ;;  %v10351_v45 = vshrl.u32 %v300_v35, 7 }
  0xab   : > { %v8460_v11 = vcombine.high %v366_v7, %v374_v8  ;;  %v382_v14 = vld [vmem:[%s10309_s3 + $0x100] sm:$0xff]  ;;  %6494 = vmatprep.subr.bf16.mxu0 %v8444_v4  ;;  %v8462_v15 = vcombine.high %v367_v12, %v375_v13  ;;  %v383_v17 = vld [vmem:[%s10309_s3 + $0x108] sm:$0xff]  ;;  %6658 = vmatprep.subr.bf16.mxu1 %v8446_v9  ;;  %v8459_v19 = vcombine.low %v366_v7, %v374_v8 }
  0xac   : > { %v390_v16 = vld [vmem:[%s10309_s3 + $0x140] sm:$0xff]  ;;  %v391_v18 = vld [vmem:[%s10309_s3 + $0x148] sm:$0xff]  ;;  %6495 = vmatpush1.bf16.msra.mxu0 %v8443_v6  ;;  %6659 = vmatpush1.bf16.msra.mxu1 %v8445_v10  ;;  %v8461_v20 = vcombine.low %v367_v12, %v375_v13  ;;  %v10358_v54 = vsub.s32 %v299_v44, %v10351_v45 }
  0xad   : > { %6496 = vmatprep.subr.bf16.mxu0 %v8460_v11  ;;  %v8476_v21 = vcombine.high %v382_v14, %v390_v16  ;;  %6660 = vmatprep.subr.bf16.mxu1 %v8462_v15  ;;  %v8478_v22 = vcombine.high %v383_v17, %v391_v18  ;;  %v398_v23 = vld [vmem:[%s10309_s3 + $0x180] sm:$0xff]  ;;  %v399_v25 = vld [vmem:[%s10309_s3 + $0x188] sm:$0xff]  ;;  %v8475_v27 = vcombine.low %v382_v14, %v390_v16 }
  0xae   : > { %v406_v24 = vld [vmem:[%s10309_s3 + $0x1c0] sm:$0xff]  ;;  %v407_v26 = vld [vmem:[%s10309_s3 + $0x1c8] sm:$0xff]  ;;  %v8477_v28 = vcombine.low %v383_v17, %v391_v18 }
  0xaf   : > { %v8492_v29 = vcombine.high %v398_v23, %v406_v24  ;;  %v8494_v30 = vcombine.high %v399_v25, %v407_v26  ;;  %v414_v31 = vld [vmem:[%s10309_s3 + $0x200] sm:$0xff]  ;;  %v415_v36 = vld [vmem:[%s10309_s3 + $0x208] sm:$0xff]  ;;  %v8491_v38 = vcombine.low %v398_v23, %v406_v24  ;;  %v8493_v39 = vcombine.low %v399_v25, %v407_v26 }
  0xb0   : > { %6497 = vmatpush1.bf16.msra.mxu0 %v8459_v19  ;;  %6661 = vmatpush1.bf16.msra.mxu1 %v8461_v20  ;;  %v422_v32 = vld [vmem:[%s10309_s3 + $0x240] sm:$0xff]  ;;  %v423_v37 = vld [vmem:[%s10309_s3 + $0x248] sm:$0xff] }
  0xb1   : > { %6498 = vmatprep.subr.bf16.mxu0 %v8476_v21  ;;  %6662 = vmatprep.subr.bf16.mxu1 %v8478_v22  ;;  %v8508_v40 = vcombine.high %v414_v31, %v422_v32  ;;  %v8510_v41 = vcombine.high %v415_v36, %v423_v37  ;;  %v430_v42 = vld [vmem:[%s10309_s3 + $0x280] sm:$0xff]  ;;  %v431_v46 = vld [vmem:[%s10309_s3 + $0x288] sm:$0xff]  ;;  %v8507_v48 = vcombine.low %v414_v31, %v422_v32 }
  0xb2   : > { %v438_v43 = vld [vmem:[%s10309_s3 + $0x2c0] sm:$0xff]  ;;  %v439_v47 = vld [vmem:[%s10309_s3 + $0x2c8] sm:$0xff]  ;;  %v8509_v49 = vcombine.low %v415_v36, %v423_v37 }
  0xb3   : > { %v8524_v50 = vcombine.high %v430_v42, %v438_v43  ;;  %v8526_v51 = vcombine.high %v431_v46, %v439_v47  ;;  %v446_v52 = vld [vmem:[%s10309_s3 + $0x300] sm:$0xff]  ;;  %v447_v55 = vld [vmem:[%s10309_s3 + $0x308] sm:$0xff]  ;;  %v8523_v57 = vcombine.low %v430_v42, %v438_v43  ;;  %v8525_v58 = vcombine.low %v431_v46, %v439_v47 }
  0xb4   : > { %6499 = vmatpush1.bf16.msra.mxu0 %v8475_v27  ;;  %6663 = vmatpush1.bf16.msra.mxu1 %v8477_v28  ;;  %v454_v53 = vld [vmem:[%s10309_s3 + $0x340] sm:$0xff]  ;;  %v455_v56 = vld [vmem:[%s10309_s3 + $0x348] sm:$0xff] }
  0xb5   : > { %6500 = vmatprep.subr.bf16.mxu0 %v8492_v29  ;;  %6664 = vmatprep.subr.bf16.mxu1 %v8494_v30  ;;  %v8540_v59 = vcombine.high %v446_v52, %v454_v53  ;;  %v10364_v60 = vld [vmem:[%s228_s20] sm:$0xff]  ;;  %v8542_v61 = vcombine.high %v447_v55, %v455_v56  ;;  %v463_v1 = vld [vmem:[%s10309_s3 + $0x388] sm:$0xff]  ;;  %v8539_v3 = vcombine.low %v446_v52, %v454_v53 }
  0xb6   : > { %v462_v62 = vld [vmem:[%s10309_s3 + $0x380] sm:$0xff]  ;;  %v10370_v0 = vrot.slane %v10364_v60, %v10358_v54  ;;  %v471_v2 = vld [vmem:[%s10309_s3 + $0x3c8] sm:$0xff]  ;;  %v8541_v5 = vcombine.low %v447_v55, %v455_v56 }
  0xb7   : > { %v470_v63 = vld [vmem:[%s10309_s3 + $0x3c0] sm:$0xff]  ;;  %v8558_v7 = vcombine.high %v463_v1, %v471_v2  ;;  %v479_v11 = vld [vmem:[%s10309_s3 + $0x408] sm:$0xff]  ;;  %v8557_v14 = vcombine.low %v463_v1, %v471_v2 }
  0xb8   : > { %6501 = vmatpush1.bf16.msra.mxu0 %v8491_v38  ;;  %6665 = vmatpush1.bf16.msra.mxu1 %v8493_v39  ;;  %v311_v4 = vcombine.high %v10370_v0, %v10370_v0  ;;  %v8556_v6 = vcombine.high %v462_v62, %v470_v63  ;;  %v478_v8 = vld [vmem:[%s10309_s3 + $0x400] sm:$0xff]  ;;  %v487_v12 = vld [vmem:[%s10309_s3 + $0x448] sm:$0xff]  ;;  %v8555_v13 = vcombine.low %v462_v62, %v470_v63 }
  0xb9   : > { %6502 = vmatprep.subr.bf16.mxu0 %v8508_v40  ;;  %6666 = vmatprep.subr.bf16.mxu1 %v8510_v41  ;;  %v486_v9 = vld [vmem:[%s10309_s3 + $0x440] sm:$0xff]  ;;  %v8574_v16 = vcombine.high %v479_v11, %v487_v12  ;;  %v495_v19 = vld [vmem:[%s10309_s3 + $0x488] sm:$0xff]  ;;  %v8573_v22 = vcombine.low %v479_v11, %v487_v12 }
  0xba   : > { %v10378_v10 = vpack.c.bf16 %v311_v4, %v311_v4  ;;  %v8572_v15 = vcombine.high %v478_v8, %v486_v9  ;;  %v494_v17 = vld [vmem:[%s10309_s3 + $0x480] sm:$0xff]  ;;  %v503_v20 = vld [vmem:[%s10309_s3 + $0x4c8] sm:$0xff]  ;;  %v8571_v21 = vcombine.low %v478_v8, %v486_v9 }
  0xbb   : > { %v502_v18 = vld [vmem:[%s10309_s3 + $0x4c0] sm:$0xff]  ;;  %v8590_v24 = vcombine.high %v495_v19, %v503_v20  ;;  %v511_v27 = vld [vmem:[%s10309_s3 + $0x508] sm:$0xff]  ;;  %v8589_v30 = vcombine.low %v495_v19, %v503_v20 }
  0xbc   : > { %6503 = vmatpush1.bf16.msra.mxu0 %v8507_v48  ;;  %6667 = vmatpush1.bf16.msra.mxu1 %v8509_v49  ;;  %v8588_v23 = vcombine.high %v494_v17, %v502_v18  ;;  %v510_v25 = vld [vmem:[%s10309_s3 + $0x500] sm:$0xff]  ;;  %v519_v28 = vld [vmem:[%s10309_s3 + $0x548] sm:$0xff]  ;;  %v8587_v29 = vcombine.low %v494_v17, %v502_v18 }
  0xbd   : > { %6504 = vmatprep.subr.bf16.mxu0 %v8524_v50  ;;  %6668 = vmatprep.subr.bf16.mxu1 %v8526_v51  ;;  %v518_v26 = vld [vmem:[%s10309_s3 + $0x540] sm:$0xff]  ;;  %v8606_v32 = vcombine.high %v511_v27, %v519_v28  ;;  %v527_v35 = vld [vmem:[%s10309_s3 + $0x588] sm:$0xff]  ;;  %v8605_v38 = vcombine.low %v511_v27, %v519_v28 }
  0xbe   : > { %6526 = vmatprep.mubr.bf16.mxu0 %v10378_v10  ;;  %6690 = vmatprep.mubr.bf16.mxu1 %v10378_v10  ;;  %v8604_v31 = vcombine.high %v510_v25, %v518_v26  ;;  %v526_v33 = vld [vmem:[%s10309_s3 + $0x580] sm:$0xff]  ;;  %v535_v36 = vld [vmem:[%s10309_s3 + $0x5c8] sm:$0xff]  ;;  %v8603_v37 = vcombine.low %v510_v25, %v518_v26  ;;  %v10427_v26 = vpack.c.bf16 %v10370_v0, %v10370_v0 }
  0xbf   : > { %v534_v34 = vld [vmem:[%s10309_s3 + $0x5c0] sm:$0xff]  ;;  %v8622_v40 = vcombine.high %v527_v35, %v535_v36  ;;  %v543_v43 = vld [vmem:[%s10309_s3 + $0x608] sm:$0xff]  ;;  %v8621_v47 = vcombine.low %v527_v35, %v535_v36 }
  0xc0   : > { %6505 = vmatpush1.bf16.msra.mxu0 %v8523_v57  ;;  %6669 = vmatpush1.bf16.msra.mxu1 %v8525_v58  ;;  %v8620_v39 = vcombine.high %v526_v33, %v534_v34  ;;  %v542_v41 = vld [vmem:[%s10309_s3 + $0x600] sm:$0xff]  ;;  %v551_v44 = vld [vmem:[%s10309_s3 + $0x648] sm:$0xff]  ;;  %v8619_v46 = vcombine.low %v526_v33, %v534_v34 }
  0xc1   : > { %6506 = vmatprep.subr.bf16.mxu0 %v8540_v59  ;;  %6670 = vmatprep.subr.bf16.mxu1 %v8542_v61  ;;  %v550_v42 = vld [vmem:[%s10309_s3 + $0x640] sm:$0xff]  ;;  %v8638_v49 = vcombine.high %v543_v43, %v551_v44  ;;  %v559_v52 = vld [vmem:[%s10309_s3 + $0x688] sm:$0xff]  ;;  %v8637_v56 = vcombine.low %v543_v43, %v551_v44 }
  0xc2   : > { %v8636_v48 = vcombine.high %v542_v41, %v550_v42  ;;  %v558_v50 = vld [vmem:[%s10309_s3 + $0x680] sm:$0xff]  ;;  %v567_v53 = vld [vmem:[%s10309_s3 + $0x6c8] sm:$0xff]  ;;  %v8635_v55 = vcombine.low %v542_v41, %v550_v42 }
  0xc3   : > { %v566_v51 = vld [vmem:[%s10309_s3 + $0x6c0] sm:$0xff]  ;;  %v8654_v58 = vcombine.high %v559_v52, %v567_v53  ;;  %v575_v62 = vld [vmem:[%s10309_s3 + $0x708] sm:$0xff]  ;;  %v8653_v2 = vcombine.low %v559_v52, %v567_v53 }
  0xc4   : > { %6507 = vmatpush1.bf16.msra.mxu0 %v8539_v3  ;;  %6671 = vmatpush1.bf16.msra.mxu1 %v8541_v5  ;;  %v8652_v57 = vcombine.high %v558_v50, %v566_v51  ;;  %v574_v59 = vld [vmem:[%s10309_s3 + $0x700] sm:$0xff]  ;;  %v583_v63 = vld [vmem:[%s10309_s3 + $0x748] sm:$0xff]  ;;  %v8651_v1 = vcombine.low %v558_v50, %v566_v51 }
  0xc5   : > { %6508 = vmatprep.subr.bf16.mxu0 %v8556_v6  ;;  %6672 = vmatprep.subr.bf16.mxu1 %v8558_v7  ;;  %v582_v61 = vld [vmem:[%s10309_s3 + $0x740] sm:$0xff]  ;;  %v8670_v4 = vcombine.high %v575_v62, %v583_v63  ;;  %v296_v7 = vcombine.high %v10364_v60, %v10364_v60  ;;  %v591_v8 = vld [vmem:[%s10309_s3 + $0x788] sm:$0xff]  ;;  %v8669_v12 = vcombine.low %v575_v62, %v583_v63 }
  0xc6   : > { %v8668_v3 = vcombine.high %v574_v59, %v582_v61  ;;  %v590_v5 = vld [vmem:[%s10309_s3 + $0x780] sm:$0xff]  ;;  %v599_v9 = vld [vmem:[%s10309_s3 + $0x7c8] sm:$0xff]  ;;  %v8667_v11 = vcombine.low %v574_v59, %v582_v61 }
  0xc7   : > { %v598_v6 = vld [vmem:[%s10309_s3 + $0x7c0] sm:$0xff]  ;;  %v10417_v17 = vrot.slane %v296_v7, %v10358_v54  ;;  %v607_v60 = vld [vmem:[%s10309_s3 + $0x808] sm:$0xff]  ;;  %v8685_v20 = vcombine.low %v591_v8, %v599_v9 }
  0xc8   : > { %6509 = vmatpush1.bf16.msra.mxu0 %v8555_v13  ;;  %6673 = vmatpush1.bf16.msra.mxu1 %v8557_v14  ;;  %v8684_v13 = vcombine.high %v590_v5, %v598_v6  ;;  %v8686_v14 = vcombine.high %v591_v8, %v599_v9  ;;  %v615_v18 = vld [vmem:[%s10309_s3 + $0x848] sm:$0xff]  ;;  %v8683_v19 = vcombine.low %v590_v5, %v598_v6  ;;  %v638_v33 = vld [vmem:[%s10309_s3 + $0x900] sm:$0xff] }
  0xc9   : > { %6510 = vmatprep.subr.bf16.mxu0 %v8572_v15  ;;  %6674 = vmatprep.subr.bf16.mxu1 %v8574_v16  ;;  %v606_v15 = vld [vmem:[%s10309_s3 + $0x800] sm:$0xff]  ;;  %v312_v25 = vcombine.high %v10417_v17, %v10417_v17  ;;  %v623_v27 = vld [vmem:[%s10309_s3 + $0x888] sm:$0xff] }
  0xca   : > { %v614_v16 = vld [vmem:[%s10309_s3 + $0x840] sm:$0xff]  ;;  %v631_v28 = vld [vmem:[%s10309_s3 + $0x8c8] sm:$0xff] }
  0xcb   : > { %v646_v34 = vld [vmem:[%s10309_s3 + $0x940] sm:$0xff]  ;;  %v10433_v35 = vpack.c.bf16 %v312_v25, %v312_v25  ;;  %v639_v0 = vld [vmem:[%s10309_s3 + $0x908] sm:$0xff] }
  0xcc   : > { %6511 = vmatpush1.bf16.msra.mxu0 %v8571_v21  ;;  %6675 = vmatpush1.bf16.msra.mxu1 %v8573_v22  ;;  %v8700_v21 = vcombine.high %v606_v15, %v614_v16  ;;  %v8702_v22 = vcombine.high %v607_v60, %v615_v18  ;;  %v647_v36 = vld [vmem:[%s10309_s3 + $0x948] sm:$0xff]  ;;  %v654_v41 = vld [vmem:[%s10309_s3 + $0x980] sm:$0xff] }
  0xcd   : > { %6512 = vmatprep.subr.bf16.mxu0 %v8588_v23  ;;  %6676 = vmatprep.subr.bf16.mxu1 %v8590_v24  ;;  %v622_v23 = vld [vmem:[%s10309_s3 + $0x880] sm:$0xff]  ;;  %v655_v43 = vld [vmem:[%s10309_s3 + $0x988] sm:$0xff] }
  0xce   : > { %v630_v24 = vld [vmem:[%s10309_s3 + $0x8c0] sm:$0xff]  ;;  %v663_v44 = vld [vmem:[%s10309_s3 + $0x9c8] sm:$0xff] }
  0xcf   : > { %v662_v42 = vld [vmem:[%s10309_s3 + $0x9c0] sm:$0xff]  ;;  %v671_v52 = vld [vmem:[%s10309_s3 + $0xa08] sm:$0xff] }
  0xd0   : > { %6513 = vmatpush1.bf16.msra.mxu0 %v8587_v29  ;;  %6677 = vmatpush1.bf16.msra.mxu1 %v8589_v30  ;;  %v8699_v29 = vcombine.low %v606_v15, %v614_v16  ;;  %v8701_v30 = vcombine.low %v607_v60, %v615_v18  ;;  %v670_v50 = vld [vmem:[%s10309_s3 + $0xa00] sm:$0xff]  ;;  %v679_v53 = vld [vmem:[%s10309_s3 + $0xa48] sm:$0xff] }
  0xd1   : > { %6514 = vmatprep.subr.bf16.mxu0 %v8604_v31  ;;  %6678 = vmatprep.subr.bf16.mxu1 %v8606_v32  ;;  %v8716_v31 = vcombine.high %v622_v23, %v630_v24  ;;  %v8718_v32 = vcombine.high %v623_v27, %v631_v28  ;;  %v678_v51 = vld [vmem:[%s10309_s3 + $0xa40] sm:$0xff]  ;;  %v687_v62 = vld [vmem:[%s10309_s3 + $0xa88] sm:$0xff] }
  0xd2   : > { %v686_v59 = vld [vmem:[%s10309_s3 + $0xa80] sm:$0xff]  ;;  %v695_v63 = vld [vmem:[%s10309_s3 + $0xac8] sm:$0xff] }
  0xd3   : > { %v694_v61 = vld [vmem:[%s10309_s3 + $0xac0] sm:$0xff]  ;;  %v703_v7 = vld [vmem:[%s10309_s3 + $0xb08] sm:$0xff] }
  0xd4   : > { %6515 = vmatpush1.bf16.msra.mxu0 %v8603_v37  ;;  %6679 = vmatpush1.bf16.msra.mxu1 %v8605_v38  ;;  %v8715_v37 = vcombine.low %v622_v23, %v630_v24  ;;  %v8717_v38 = vcombine.low %v623_v27, %v631_v28  ;;  %v702_v5 = vld [vmem:[%s10309_s3 + $0xb00] sm:$0xff]  ;;  %v711_v8 = vld [vmem:[%s10309_s3 + $0xb48] sm:$0xff]  ;;  %v8779_v9 = vcombine.low %v686_v59, %v694_v61 }
  0xd5   : > { %6516 = vmatprep.subr.bf16.mxu0 %v8620_v39  ;;  %6680 = vmatprep.subr.bf16.mxu1 %v8622_v40  ;;  %v8732_v39 = vcombine.high %v638_v33, %v646_v34  ;;  %v8734_v40 = vcombine.high %v639_v0, %v647_v36  ;;  %v710_v6 = vld [vmem:[%s10309_s3 + $0xb40] sm:$0xff]  ;;  %v719_v16 = vld [vmem:[%s10309_s3 + $0xb88] sm:$0xff] }
  0xd6   : > { %v726_v15 = vld [vmem:[%s10309_s3 + $0xbc0] sm:$0xff]  ;;  %v727_v60 = vld [vmem:[%s10309_s3 + $0xbc8] sm:$0xff]  ;;  %v8795_v18 = vcombine.low %v702_v5, %v710_v6 }
  0xd7   : > { %v742_v23 = vld [vmem:[%s10309_s3 + $0xc40] sm:$0xff]  ;;  %v735_v24 = vld [vmem:[%s10309_s3 + $0xc08] sm:$0xff]  ;;  %v8813_v28 = vcombine.low %v719_v16, %v727_v60 }
  0xd8   : > { %6517 = vmatpush1.bf16.msra.mxu0 %v8619_v46  ;;  %6681 = vmatpush1.bf16.msra.mxu1 %v8621_v47  ;;  %v8731_v46 = vcombine.low %v638_v33, %v646_v34  ;;  %v8733_v47 = vcombine.low %v639_v0, %v647_v36  ;;  %v743_v25 = vld [vmem:[%s10309_s3 + $0xc48] sm:$0xff] }
  0xd9   : > { %6518 = vmatprep.subr.bf16.mxu0 %v8636_v48  ;;  %6682 = vmatprep.subr.bf16.mxu1 %v8638_v49  ;;  %v8748_v48 = vcombine.high %v654_v41, %v662_v42  ;;  %v8750_v49 = vcombine.high %v655_v43, %v663_v44  ;;  %v751_v33 = vld [vmem:[%s10309_s3 + $0xc88] sm:$0xff]  ;;  %v8829_v36 = vcombine.low %v735_v24, %v743_v25 }
  0xda   : > { %v759_v34 = vld [vmem:[%s10309_s3 + $0xcc8] sm:$0xff] }
  0xdc   : > { %6519 = vmatpush1.bf16.msra.mxu0 %v8635_v55  ;;  %6683 = vmatpush1.bf16.msra.mxu1 %v8637_v56  ;;  %v8747_v55 = vcombine.low %v654_v41, %v662_v42  ;;  %v8749_v56 = vcombine.low %v655_v43, %v663_v44  ;;  %v767_v41 = vld [vmem:[%s10309_s3 + $0xd08] sm:$0xff]  ;;  %v8845_v44 = vcombine.low %v751_v33, %v759_v34 }
  0xdd   : > { %6520 = vmatprep.subr.bf16.mxu0 %v8652_v57  ;;  %6684 = vmatprep.subr.bf16.mxu1 %v8654_v58  ;;  %v8764_v57 = vcombine.high %v670_v50, %v678_v51  ;;  %v8766_v58 = vcombine.high %v671_v52, %v679_v53  ;;  %v775_v42 = vld [vmem:[%s10309_s3 + $0xd48] sm:$0xff] }
  0xe0   : > { %6521 = vmatpush1.bf16.msra.mxu0 %v8651_v1  ;;  %6685 = vmatpush1.bf16.msra.mxu1 %v8653_v2  ;;  %v8763_v1 = vcombine.low %v670_v50, %v678_v51  ;;  %v8765_v2 = vcombine.low %v671_v52, %v679_v53  ;;  %v783_v50 = vld [vmem:[%s10309_s3 + $0xd88] sm:$0xff]  ;;  %v8861_v53 = vcombine.low %v767_v41, %v775_v42 }
  0xe1   : > { %6522 = vmatprep.subr.bf16.mxu0 %v8668_v3  ;;  %6686 = vmatprep.subr.bf16.mxu1 %v8670_v4  ;;  %v8780_v3 = vcombine.high %v686_v59, %v694_v61  ;;  %v8782_v4 = vcombine.high %v687_v62, %v695_v63  ;;  %v791_v51 = vld [vmem:[%s10309_s3 + $0xdc8] sm:$0xff] }
  0xe2   : > { %v799_v59 = vld [vmem:[%s10309_s3 + $0xe08] sm:$0xff] }
  0xe3   : > { %v807_v61 = vld [vmem:[%s10309_s3 + $0xe48] sm:$0xff] }
  0xe4   : > { %6523 = vmatpush1.bf16.msra.mxu0 %v8667_v11  ;;  %6687 = vmatpush1.bf16.msra.mxu1 %v8669_v12  ;;  %v8781_v11 = vcombine.low %v687_v62, %v695_v63  ;;  %v8796_v12 = vcombine.high %v702_v5, %v710_v6  ;;  %v8877_v63 = vcombine.low %v783_v50, %v791_v51  ;;  %v815_v5 = vld [vmem:[%s10309_s3 + $0xe88] sm:$0xff] }
  0xe5   : > { %6524 = vmatprep.subr.bf16.mxu0 %v8684_v13  ;;  %6688 = vmatprep.subr.bf16.mxu1 %v8686_v14  ;;  %v8798_v13 = vcombine.high %v703_v7, %v711_v8  ;;  %v718_v14 = vld [vmem:[%s10309_s3 + $0xb80] sm:$0xff]  ;;  %v823_v6 = vld [vmem:[%s10309_s3 + $0xec8] sm:$0xff] }
  0xe6   : > { %v8811_v27 = vcombine.low %v718_v14, %v726_v15 }
  0xe8   : > { %6525 = vmatpush1.bf16.msra.mxu0 %v8683_v19  ;;  %6689 = vmatpush1.bf16.msra.mxu1 %v8685_v20  ;;  %v8797_v19 = vcombine.low %v703_v7, %v711_v8  ;;  %v8812_v20 = vcombine.high %v718_v14, %v726_v15  ;;  %v8893_v8 = vcombine.low %v799_v59, %v807_v61  ;;  %v831_v14 = vld [vmem:[%s10309_s3 + $0xf08] sm:$0xff] }
  0xe9   : > { %6535 = vmatprep.subr.bf16.mxu0 %v8700_v21  ;;  %6699 = vmatprep.subr.bf16.mxu1 %v8702_v22  ;;  %v8814_v21 = vcombine.high %v719_v16, %v727_v60  ;;  %v734_v22 = vld [vmem:[%s10309_s3 + $0xc00] sm:$0xff]  ;;  %v839_v15 = vld [vmem:[%s10309_s3 + $0xf48] sm:$0xff]  ;;  %v8909_v60 = vcombine.low %v815_v5, %v823_v6 }
  0xea   : > { %v8827_v0 = vcombine.low %v734_v22, %v742_v23 }
  0xeb   : > { %6527 = vmatmul.mubr.bf16.vlgmr.msra.gmra.mrb[0].mxu0 %v10427_v26  ;;  %6691 = vmatmul.mubr.bf16.vlgmr.msra.gmra.mrb[0].mxu1 %v10427_v26 }
  0xec   : > { %6536 = vmatpush1.bf16.msra.mxu0 %v8699_v29  ;;  %6700 = vmatpush1.bf16.msra.mxu1 %v8701_v30  ;;  %v8828_v29 = vcombine.high %v734_v22, %v742_v23  ;;  %v8830_v30 = vcombine.high %v735_v24, %v743_v25  ;;  %v847_v22 = vld [vmem:[%s10309_s3 + $0xf88] sm:$0xff] }
  0xed   : > { %6537 = vmatprep.subr.bf16.mxu0 %v8716_v31  ;;  %6701 = vmatprep.subr.bf16.mxu1 %v8718_v32  ;;  %v750_v31 = vld [vmem:[%s10309_s3 + $0xc80] sm:$0xff]  ;;  %v855_v23 = vld [vmem:[%s10309_s3 + $0xfc8] sm:$0xff] }
  0xee   : > { %6567 = vmatprep.mubr.bf16.mxu0 %v10433_v35  ;;  %6731 = vmatprep.mubr.bf16.mxu1 %v10433_v35  ;;  %v758_v32 = vld [vmem:[%s10309_s3 + $0xcc0] sm:$0xff]  ;;  %v10495_v24 = vld [vmem:[%s228_s20 + $0x8] sm:$0xff] }
  0xef   : > { %v8843_v43 = vcombine.low %v750_v31, %v758_v32 }
  0xf0   : > { %6538 = vmatpush1.bf16.msra.mxu0 %v8715_v37  ;;  %6702 = vmatpush1.bf16.msra.mxu1 %v8717_v38  ;;  %v8844_v37 = vcombine.high %v750_v31, %v758_v32  ;;  %v8846_v38 = vcombine.high %v751_v33, %v759_v34  ;;  %v870_v31 = vld [vmem:[%s10309_s3 + $0x1040] sm:$0xff]  ;;  %v10501_v32 = vrot.slane %v10495_v24, %v10358_v54  ;;  %v863_v33 = vld [vmem:[%s10309_s3 + $0x1008] sm:$0xff] }
  0xf1   : > { %6539 = vmatprep.subr.bf16.mxu0 %v8732_v39  ;;  %6703 = vmatprep.subr.bf16.mxu1 %v8734_v40  ;;  %v766_v39 = vld [vmem:[%s10309_s3 + $0xd00] sm:$0xff]  ;;  %v871_v34 = vld [vmem:[%s10309_s3 + $0x1048] sm:$0xff] }
  0xf2   : > { %v774_v40 = vld [vmem:[%s10309_s3 + $0xd40] sm:$0xff] }
  0xf3   : > { %v8859_v52 = vcombine.low %v766_v39, %v774_v40 }
  0xf4   : > { %6540 = vmatpush1.bf16.msra.mxu0 %v8731_v46  ;;  %6704 = vmatpush1.bf16.msra.mxu1 %v8733_v47  ;;  %v8860_v46 = vcombine.high %v766_v39, %v774_v40  ;;  %v8862_v47 = vcombine.high %v767_v41, %v775_v42  ;;  %v878_v39 = vld [vmem:[%s10309_s3 + $0x1080] sm:$0xff]  ;;  %v328_v41 = vcombine.high %v10501_v32, %v10501_v32 }
  0xf5   : > { %6541 = vmatprep.subr.bf16.mxu0 %v8748_v48  ;;  %6705 = vmatprep.subr.bf16.mxu1 %v8750_v49  ;;  %v782_v48 = vld [vmem:[%s10309_s3 + $0xd80] sm:$0xff]  ;;  %v10511_v42 = vpack.c.bf16 %v10417_v17, %v10417_v17  ;;  %v895_v17 = vld [vmem:[%s10309_s3 + $0x1108] sm:$0xff] }
  0xf6   : > { %v790_v49 = vld [vmem:[%s10309_s3 + $0xdc0] sm:$0xff] }
  0xf7   : > { %v8875_v62 = vcombine.low %v782_v48, %v790_v49  ;;  %v886_v40 = vld [vmem:[%s10309_s3 + $0x10c0] sm:$0xff] }
  0xf8   : > { %6542 = vmatpush1.bf16.msra.mxu0 %v8747_v55  ;;  %6706 = vmatpush1.bf16.msra.mxu1 %v8749_v56  ;;  %v8876_v55 = vcombine.high %v782_v48, %v790_v49  ;;  %v8878_v56 = vcombine.high %v783_v50, %v791_v51  ;;  %v8972_v48 = vcombine.high %v878_v39, %v886_v40  ;;  %v894_v50 = vld [vmem:[%s10309_s3 + $0x1100] sm:$0xff] }
  0xf9   : > { %6543 = vmatprep.subr.bf16.mxu0 %v8764_v57  ;;  %6707 = vmatprep.subr.bf16.mxu1 %v8766_v58  ;;  %v798_v57 = vld [vmem:[%s10309_s3 + $0xe00] sm:$0xff] }
  0xfa   : > { %v806_v58 = vld [vmem:[%s10309_s3 + $0xe40] sm:$0xff] }
  0xfb   : > { %v8891_v7 = vcombine.low %v798_v57, %v806_v58  ;;  %v902_v51 = vld [vmem:[%s10309_s3 + $0x1140] sm:$0xff] }
  0xfc   : > { %6544 = vmatpush1.bf16.msra.mxu0 %v8763_v1  ;;  %6708 = vmatpush1.bf16.msra.mxu1 %v8765_v2  ;;  %v8892_v1 = vcombine.high %v798_v57, %v806_v58  ;;  %v8894_v2 = vcombine.high %v799_v59, %v807_v61  ;;  %v8988_v57 = vcombine.high %v894_v50, %v902_v51  ;;  %v910_v59 = vld [vmem:[%s10309_s3 + $0x1180] sm:$0xff] }
  0xfd   : > { %6545 = vmatprep.subr.bf16.mxu0 %v8780_v3  ;;  %6709 = vmatprep.subr.bf16.mxu1 %v8782_v4  ;;  %v814_v3 = vld [vmem:[%s10309_s3 + $0xe80] sm:$0xff] }
  0xfe   : > { %v822_v4 = vld [vmem:[%s10309_s3 + $0xec0] sm:$0xff] }
  0xff   : > { %v8907_v16 = vcombine.low %v814_v3, %v822_v4  ;;  %v918_v61 = vld [vmem:[%s10309_s3 + $0x11c0] sm:$0xff] }
 0x100   : > { %6546 = vmatpush1.bf16.msra.mxu0 %v8779_v9  ;;  %6710 = vmatpush1.bf16.msra.mxu1 %v8781_v11  ;;  %v8908_v9 = vcombine.high %v814_v3, %v822_v4  ;;  %v8910_v11 = vcombine.high %v815_v5, %v823_v6  ;;  %v9004_v3 = vcombine.high %v910_v59, %v918_v61  ;;  %v926_v5 = vld [vmem:[%s10309_s3 + $0x1200] sm:$0xff] }
 0x101   : > { %6547 = vmatprep.subr.bf16.mxu0 %v8796_v12  ;;  %6711 = vmatprep.subr.bf16.mxu1 %v8798_v13  ;;  %v830_v12 = vld [vmem:[%s10309_s3 + $0xf00] sm:$0xff] }
 0x102   : > { %v838_v13 = vld [vmem:[%s10309_s3 + $0xf40] sm:$0xff] }
 0x103   : > { %v8923_v25 = vcombine.low %v830_v12, %v838_v13  ;;  %v934_v6 = vld [vmem:[%s10309_s3 + $0x1240] sm:$0xff] }
 0x104   : > { %6548 = vmatpush1.bf16.msra.mxu0 %v8795_v18  ;;  %6712 = vmatpush1.bf16.msra.mxu1 %v8797_v19  ;;  %v8924_v18 = vcombine.high %v830_v12, %v838_v13  ;;  %v8926_v19 = vcombine.high %v831_v14, %v839_v15  ;;  %v9020_v12 = vcombine.high %v926_v5, %v934_v6 }
 0x105   : > { %6549 = vmatprep.subr.bf16.mxu0 %v8812_v20  ;;  %6713 = vmatprep.subr.bf16.mxu1 %v8814_v21  ;;  %v846_v20 = vld [vmem:[%s10309_s3 + $0xf80] sm:$0xff] }
 0x106   : > { %v854_v21 = vld [vmem:[%s10309_s3 + $0xfc0] sm:$0xff] }
 0x108   : > { %6550 = vmatpush1.bf16.msra.mxu0 %v8811_v27  ;;  %6714 = vmatpush1.bf16.msra.mxu1 %v8813_v28  ;;  %v8925_v27 = vcombine.low %v831_v14, %v839_v15  ;;  %v8940_v28 = vcombine.high %v846_v20, %v854_v21  ;;  %v942_v14 = vld [vmem:[%s10309_s3 + $0x1280] sm:$0xff] }
 0x109   : > { %6551 = vmatprep.subr.bf16.mxu0 %v8828_v29  ;;  %6715 = vmatprep.subr.bf16.mxu1 %v8830_v30  ;;  %v8942_v29 = vcombine.high %v847_v22, %v855_v23  ;;  %v862_v30 = vld [vmem:[%s10309_s3 + $0x1000] sm:$0xff] }
 0x10a   : > { %v950_v15 = vld [vmem:[%s10309_s3 + $0x12c0] sm:$0xff] }
 0x10c   : > { %6552 = vmatpush1.bf16.msra.mxu0 %v8827_v0  ;;  %6716 = vmatpush1.bf16.msra.mxu1 %v8829_v36  ;;  %v8939_v0 = vcombine.low %v846_v20, %v854_v21  ;;  %v8941_v36 = vcombine.low %v847_v22, %v855_v23  ;;  %v9036_v20 = vcombine.high %v942_v14, %v950_v15  ;;  %v958_v22 = vld [vmem:[%s10309_s3 + $0x1300] sm:$0xff] }
 0x10d   : > { %6553 = vmatprep.subr.bf16.mxu0 %v8844_v37  ;;  %6717 = vmatprep.subr.bf16.mxu1 %v8846_v38  ;;  %v8956_v37 = vcombine.high %v862_v30, %v870_v31  ;;  %v8958_v38 = vcombine.high %v863_v33, %v871_v34  ;;  %v966_v23 = vld [vmem:[%s10309_s3 + $0x1340] sm:$0xff] }
 0x110   : > { %6554 = vmatpush1.bf16.msra.mxu0 %v8843_v43  ;;  %6718 = vmatpush1.bf16.msra.mxu1 %v8845_v44  ;;  %v879_v43 = vld [vmem:[%s10309_s3 + $0x1088] sm:$0xff] }
 0x111   : > { %6555 = vmatprep.subr.bf16.mxu0 %v8860_v46  ;;  %6719 = vmatprep.subr.bf16.mxu1 %v8862_v47  ;;  %v887_v44 = vld [vmem:[%s10309_s3 + $0x10c8] sm:$0xff]  ;;  %v8955_v46 = vcombine.low %v862_v30, %v870_v31  ;;  %v8957_v47 = vcombine.low %v863_v33, %v871_v34  ;;  %v9052_v30 = vcombine.high %v958_v22, %v966_v23  ;;  %v974_v33 = vld [vmem:[%s10309_s3 + $0x1380] sm:$0xff] }
 0x112   : > { %v8974_v49 = vcombine.high %v879_v43, %v887_v44  ;;  %v982_v34 = vld [vmem:[%s10309_s3 + $0x13c0] sm:$0xff] }
 0x114   : > { %6556 = vmatpush1.bf16.msra.mxu0 %v8859_v52  ;;  %6720 = vmatpush1.bf16.msra.mxu1 %v8861_v53  ;;  %v10517_v52 = vpack.c.bf16 %v328_v41, %v328_v41  ;;  %v903_v53 = vld [vmem:[%s10309_s3 + $0x1148] sm:$0xff]  ;;  %v990_v41 = vld [vmem:[%s10309_s3 + $0x1400] sm:$0xff] }
 0x115   : > { %6557 = vmatprep.subr.bf16.mxu0 %v8876_v55  ;;  %6721 = vmatprep.subr.bf16.mxu1 %v8878_v56  ;;  %v8971_v55 = vcombine.low %v878_v39, %v886_v40  ;;  %v8973_v56 = vcombine.low %v879_v43, %v887_v44  ;;  %v8990_v58 = vcombine.high %v895_v17, %v903_v53  ;;  %v998_v43 = vld [vmem:[%s10309_s3 + $0x1440] sm:$0xff]  ;;  %v991_v44 = vld [vmem:[%s10309_s3 + $0x1408] sm:$0xff] }
 0x116   : > { %v9068_v39 = vcombine.high %v974_v33, %v982_v34 }
 0x118   : > { %6558 = vmatpush1.bf16.msra.mxu0 %v8875_v62  ;;  %6722 = vmatpush1.bf16.msra.mxu1 %v8877_v63  ;;  %v911_v62 = vld [vmem:[%s10309_s3 + $0x1188] sm:$0xff] }
 0x119   : > { %6559 = vmatprep.subr.bf16.mxu0 %v8892_v1  ;;  %6723 = vmatprep.subr.bf16.mxu1 %v8894_v2  ;;  %v919_v63 = vld [vmem:[%s10309_s3 + $0x11c8] sm:$0xff]  ;;  %v8987_v1 = vcombine.low %v894_v50, %v902_v51  ;;  %v8989_v2 = vcombine.low %v895_v17, %v903_v53  ;;  %v1006_v51 = vld [vmem:[%s10309_s3 + $0x1480] sm:$0xff] }
 0x11a   : > { %v9006_v4 = vcombine.high %v911_v62, %v919_v63  ;;  %v1014_v17 = vld [vmem:[%s10309_s3 + $0x14c0] sm:$0xff]  ;;  %v1007_v53 = vld [vmem:[%s10309_s3 + $0x1488] sm:$0xff] }
 0x11c   : > { %6560 = vmatpush1.bf16.msra.mxu0 %v8891_v7  ;;  %6724 = vmatpush1.bf16.msra.mxu1 %v8893_v8  ;;  %v927_v7 = vld [vmem:[%s10309_s3 + $0x1208] sm:$0xff] }
 0x11d   : > { %6561 = vmatprep.subr.bf16.mxu0 %v8908_v9  ;;  %6725 = vmatprep.subr.bf16.mxu1 %v8910_v11  ;;  %v935_v8 = vld [vmem:[%s10309_s3 + $0x1248] sm:$0xff]  ;;  %v9003_v9 = vcombine.low %v910_v59, %v918_v61  ;;  %v9005_v11 = vcombine.low %v911_v62, %v919_v63  ;;  %v1022_v61 = vld [vmem:[%s10309_s3 + $0x1500] sm:$0xff] }
 0x11e   : > { %v9022_v13 = vcombine.high %v927_v7, %v935_v8  ;;  %v1030_v62 = vld [vmem:[%s10309_s3 + $0x1540] sm:$0xff]  ;;  %v1023_v63 = vld [vmem:[%s10309_s3 + $0x1508] sm:$0xff] }
 0x120   : > { %6562 = vmatpush1.bf16.msra.mxu0 %v8907_v16  ;;  %6726 = vmatpush1.bf16.msra.mxu1 %v8909_v60  ;;  %v943_v16 = vld [vmem:[%s10309_s3 + $0x1288] sm:$0xff] }
 0x121   : > { %6563 = vmatprep.subr.bf16.mxu0 %v8924_v18  ;;  %6727 = vmatprep.subr.bf16.mxu1 %v8926_v19  ;;  %v951_v60 = vld [vmem:[%s10309_s3 + $0x12c8] sm:$0xff]  ;;  %v9019_v18 = vcombine.low %v926_v5, %v934_v6  ;;  %v9021_v19 = vcombine.low %v927_v7, %v935_v8  ;;  %v1038_v6 = vld [vmem:[%s10309_s3 + $0x1580] sm:$0xff] }
 0x122   : > { %v9038_v21 = vcombine.high %v943_v16, %v951_v60  ;;  %v1046_v7 = vld [vmem:[%s10309_s3 + $0x15c0] sm:$0xff]  ;;  %v1039_v8 = vld [vmem:[%s10309_s3 + $0x1588] sm:$0xff] }
 0x124   : > { %6564 = vmatpush1.bf16.msra.mxu0 %v8923_v25  ;;  %6728 = vmatpush1.bf16.msra.mxu1 %v8925_v27  ;;  %v959_v25 = vld [vmem:[%s10309_s3 + $0x1308] sm:$0xff] }
 0x125   : > { %6565 = vmatprep.subr.bf16.mxu0 %v8940_v28  ;;  %6729 = vmatprep.subr.bf16.mxu1 %v8942_v29  ;;  %v967_v27 = vld [vmem:[%s10309_s3 + $0x1348] sm:$0xff]  ;;  %v9035_v28 = vcombine.low %v942_v14, %v950_v15  ;;  %v9037_v29 = vcombine.low %v943_v16, %v951_v60  ;;  %v1054_v15 = vld [vmem:[%s10309_s3 + $0x1600] sm:$0xff] }
 0x126   : > { %v9054_v31 = vcombine.high %v959_v25, %v967_v27  ;;  %v1062_v16 = vld [vmem:[%s10309_s3 + $0x1640] sm:$0xff]  ;;  %v1055_v60 = vld [vmem:[%s10309_s3 + $0x1608] sm:$0xff] }
 0x128   : > { %6566 = vmatpush1.bf16.msra.mxu0 %v8939_v0  ;;  %6730 = vmatpush1.bf16.msra.mxu1 %v8941_v36  ;;  %v975_v0 = vld [vmem:[%s10309_s3 + $0x1388] sm:$0xff] }
 0x129   : > { %6576 = vmatprep.subr.bf16.mxu0 %v8956_v37  ;;  %6740 = vmatprep.subr.bf16.mxu1 %v8958_v38  ;;  %v983_v36 = vld [vmem:[%s10309_s3 + $0x13c8] sm:$0xff]  ;;  %v9051_v37 = vcombine.low %v958_v22, %v966_v23  ;;  %v9053_v38 = vcombine.low %v959_v25, %v967_v27  ;;  %v1070_v23 = vld [vmem:[%s10309_s3 + $0x1680] sm:$0xff] }
 0x12a   : > { %v9070_v40 = vcombine.high %v975_v0, %v983_v36  ;;  %v1078_v25 = vld [vmem:[%s10309_s3 + $0x16c0] sm:$0xff]  ;;  %v1071_v27 = vld [vmem:[%s10309_s3 + $0x1688] sm:$0xff] }
 0x12b   : > { %6568 = vmatmul.mubr.bf16.vlgmr.msra.gmra.mrb[0].mxu0 %v10511_v42  ;;  %6732 = vmatmul.mubr.bf16.vlgmr.msra.gmra.mrb[0].mxu1 %v10511_v42 }
 0x12c   : > { %6577 = vmatpush1.bf16.msra.mxu0 %v8955_v46  ;;  %6741 = vmatpush1.bf16.msra.mxu1 %v8957_v47  ;;  %v999_v46 = vld [vmem:[%s10309_s3 + $0x1448] sm:$0xff]  ;;  %v9067_v47 = vcombine.low %v974_v33, %v982_v34  ;;  %v1086_v34 = vld [vmem:[%s10309_s3 + $0x1700] sm:$0xff] }
 0x12d   : > { %6578 = vmatprep.subr.bf16.mxu0 %v8972_v48  ;;  %6742 = vmatprep.subr.bf16.mxu1 %v8974_v49  ;;  %v9069_v48 = vcombine.low %v975_v0, %v983_v36  ;;  %v9084_v49 = vcombine.high %v990_v41, %v998_v43  ;;  %v9086_v50 = vcombine.high %v991_v44, %v999_v46  ;;  %v1094_v0 = vld [vmem:[%s10309_s3 + $0x1740] sm:$0xff]  ;;  %v1087_v36 = vld [vmem:[%s10309_s3 + $0x1708] sm:$0xff] }
 0x12e   : > { %6608 = vmatprep.mubr.bf16.mxu0 %v10517_v52  ;;  %6772 = vmatprep.mubr.bf16.mxu1 %v10517_v52 }
 0x130   : > { %6579 = vmatpush1.bf16.msra.mxu0 %v8971_v55  ;;  %6743 = vmatpush1.bf16.msra.mxu1 %v8973_v56  ;;  %v1015_v55 = vld [vmem:[%s10309_s3 + $0x14c8] sm:$0xff]  ;;  %v9083_v56 = vcombine.low %v990_v41, %v998_v43  ;;  %v1102_v43 = vld [vmem:[%s10309_s3 + $0x1780] sm:$0xff] }
 0x131   : > { %6580 = vmatprep.subr.bf16.mxu0 %v8988_v57  ;;  %6744 = vmatprep.subr.bf16.mxu1 %v8990_v58  ;;  %v9085_v57 = vcombine.low %v991_v44, %v999_v46  ;;  %v9100_v58 = vcombine.high %v1006_v51, %v1014_v17  ;;  %v9102_v59 = vcombine.high %v1007_v53, %v1015_v55  ;;  %v1110_v44 = vld [vmem:[%s10309_s3 + $0x17c0] sm:$0xff] }
 0x132   : > { %v313_v46 = vcombine.high %v10495_v24, %v10495_v24  ;;  %v1119_v24 = vld [vmem:[%s10309_s3 + $0x1808] sm:$0xff] }
 0x134   : > { %6581 = vmatpush1.bf16.msra.mxu0 %v8987_v1  ;;  %6745 = vmatpush1.bf16.msra.mxu1 %v8989_v2  ;;  %v1031_v1 = vld [vmem:[%s10309_s3 + $0x1548] sm:$0xff]  ;;  %v9099_v2 = vcombine.low %v1006_v51, %v1014_v17  ;;  %v9196_v51 = vcombine.high %v1102_v43, %v1110_v44 }
 0x135   : > { %6582 = vmatprep.subr.bf16.mxu0 %v9004_v3  ;;  %6746 = vmatprep.subr.bf16.mxu1 %v9006_v4  ;;  %v9101_v3 = vcombine.low %v1007_v53, %v1015_v55  ;;  %v9116_v4 = vcombine.high %v1022_v61, %v1030_v62  ;;  %v9118_v5 = vcombine.high %v1023_v63, %v1031_v1  ;;  %v1118_v53 = vld [vmem:[%s10309_s3 + $0x1800] sm:$0xff] }
 0x136   : > { %v1126_v55 = vld [vmem:[%s10309_s3 + $0x1840] sm:$0xff] }
 0x138   : > { %6583 = vmatpush1.bf16.msra.mxu0 %v9003_v9  ;;  %6747 = vmatpush1.bf16.msra.mxu1 %v9005_v11  ;;  %v1047_v9 = vld [vmem:[%s10309_s3 + $0x15c8] sm:$0xff]  ;;  %v9115_v11 = vcombine.low %v1022_v61, %v1030_v62  ;;  %v9212_v61 = vcombine.high %v1118_v53, %v1126_v55 }
 0x139   : > { %6584 = vmatprep.subr.bf16.mxu0 %v9020_v12  ;;  %6748 = vmatprep.subr.bf16.mxu1 %v9022_v13  ;;  %v9117_v12 = vcombine.low %v1023_v63, %v1031_v1  ;;  %v9132_v13 = vcombine.high %v1038_v6, %v1046_v7  ;;  %v9134_v14 = vcombine.high %v1039_v8, %v1047_v9  ;;  %v1134_v63 = vld [vmem:[%s10309_s3 + $0x1880] sm:$0xff] }
 0x13a   : > { %v1142_v1 = vld [vmem:[%s10309_s3 + $0x18c0] sm:$0xff] }
 0x13c   : > { %6585 = vmatpush1.bf16.msra.mxu0 %v9019_v18  ;;  %6749 = vmatpush1.bf16.msra.mxu1 %v9021_v19  ;;  %v1063_v18 = vld [vmem:[%s10309_s3 + $0x1648] sm:$0xff]  ;;  %v9131_v19 = vcombine.low %v1038_v6, %v1046_v7  ;;  %v9211_v6 = vcombine.low %v1118_v53, %v1126_v55 }
 0x13d   : > { %6586 = vmatprep.subr.bf16.mxu0 %v9036_v20  ;;  %6750 = vmatprep.subr.bf16.mxu1 %v9038_v21  ;;  %v9133_v20 = vcombine.low %v1039_v8, %v1047_v9  ;;  %v9148_v21 = vcombine.high %v1054_v15, %v1062_v16  ;;  %v9150_v22 = vcombine.high %v1055_v60, %v1063_v18 }
 0x13e   : > { %v9228_v8 = vcombine.high %v1134_v63, %v1142_v1 }
 0x140   : > { %6587 = vmatpush1.bf16.msra.mxu0 %v9035_v28  ;;  %6751 = vmatpush1.bf16.msra.mxu1 %v9037_v29  ;;  %v1079_v28 = vld [vmem:[%s10309_s3 + $0x16c8] sm:$0xff]  ;;  %v9147_v29 = vcombine.low %v1054_v15, %v1062_v16  ;;  %v9227_v15 = vcombine.low %v1134_v63, %v1142_v1 }
 0x141   : > { %6588 = vmatprep.subr.bf16.mxu0 %v9052_v30  ;;  %6752 = vmatprep.subr.bf16.mxu1 %v9054_v31  ;;  %v9149_v30 = vcombine.low %v1055_v60, %v1063_v18  ;;  %v9164_v31 = vcombine.high %v1070_v23, %v1078_v25  ;;  %v9166_v33 = vcombine.high %v1071_v27, %v1079_v28 }
 0x144   : > { %6589 = vmatpush1.bf16.msra.mxu0 %v9051_v37  ;;  %6753 = vmatpush1.bf16.msra.mxu1 %v9053_v38  ;;  %v1095_v37 = vld [vmem:[%s10309_s3 + $0x1748] sm:$0xff]  ;;  %v9163_v38 = vcombine.low %v1070_v23, %v1078_v25 }
 0x145   : > { %6590 = vmatprep.subr.bf16.mxu0 %v9068_v39  ;;  %6754 = vmatprep.subr.bf16.mxu1 %v9070_v40  ;;  %v9165_v39 = vcombine.low %v1071_v27, %v1079_v28  ;;  %v9180_v40 = vcombine.high %v1086_v34, %v1094_v0  ;;  %v9182_v41 = vcombine.high %v1087_v36, %v1095_v37 }
 0x148   : > { %6591 = vmatpush1.bf16.msra.mxu0 %v9067_v47  ;;  %6755 = vmatpush1.bf16.msra.mxu1 %v9069_v48  ;;  %v1103_v47 = vld [vmem:[%s10309_s3 + $0x1788] sm:$0xff] }
 0x149   : > { %6592 = vmatprep.subr.bf16.mxu0 %v9084_v49  ;;  %6756 = vmatprep.subr.bf16.mxu1 %v9086_v50  ;;  %v1111_v48 = vld [vmem:[%s10309_s3 + $0x17c8] sm:$0xff]  ;;  %v9179_v49 = vcombine.low %v1086_v34, %v1094_v0  ;;  %v9181_v50 = vcombine.low %v1087_v36, %v1095_v37 }
 0x14a   : > { %v9198_v17 = vcombine.high %v1103_v47, %v1111_v48 }
 0x14c   : > { %6593 = vmatpush1.bf16.msra.mxu0 %v9083_v56  ;;  %6757 = vmatpush1.bf16.msra.mxu1 %v9085_v57  ;;  %v10582_v56 = vrot.slane %v313_v46, %v10358_v54  ;;  %v1127_v57 = vld [vmem:[%s10309_s3 + $0x1848] sm:$0xff] }
 0x14d   : > { %6594 = vmatprep.subr.bf16.mxu0 %v9100_v58  ;;  %6758 = vmatprep.subr.bf16.mxu1 %v9102_v59  ;;  %v9195_v58 = vcombine.low %v1102_v43, %v1110_v44  ;;  %v9197_v59 = vcombine.low %v1103_v47, %v1111_v48  ;;  %v9214_v62 = vcombine.high %v1119_v24, %v1127_v57  ;;  %v1214_v48 = vld [vmem:[%s10309_s3 + $0x1b00] sm:$0xff] }
 0x14e   : > { %v9213_v7 = vcombine.low %v1119_v24, %v1127_v57  ;;  %v1230_v57 = vld [vmem:[%s10309_s3 + $0x1b80] sm:$0xff] }
 0x150   : > { %6595 = vmatpush1.bf16.msra.mxu0 %v9099_v2  ;;  %6759 = vmatpush1.bf16.msra.mxu1 %v9101_v3  ;;  %v329_v2 = vcombine.high %v10582_v56, %v10582_v56  ;;  %v10592_v3 = vpack.c.bf16 %v10501_v32, %v10501_v32  ;;  %v1151_v32 = vld [vmem:[%s10309_s3 + $0x1908] sm:$0xff] }
 0x151   : > { %6596 = vmatprep.subr.bf16.mxu0 %v9116_v4  ;;  %6760 = vmatprep.subr.bf16.mxu1 %v9118_v5  ;;  %v1135_v4 = vld [vmem:[%s10309_s3 + $0x1888] sm:$0xff] }
 0x152   : > { %v1143_v5 = vld [vmem:[%s10309_s3 + $0x18c8] sm:$0xff] }
 0x153   : > { %v9230_v9 = vcombine.high %v1135_v4, %v1143_v5  ;;  %v9229_v16 = vcombine.low %v1135_v4, %v1143_v5  ;;  %v1246_v4 = vld [vmem:[%s10309_s3 + $0x1c00] sm:$0xff] }
 0x154   : > { %6597 = vmatpush1.bf16.msra.mxu0 %v9115_v11  ;;  %6761 = vmatpush1.bf16.msra.mxu1 %v9117_v12  ;;  %v1150_v11 = vld [vmem:[%s10309_s3 + $0x1900] sm:$0xff] }
 0x155   : > { %6598 = vmatprep.subr.bf16.mxu0 %v9132_v13  ;;  %6762 = vmatprep.subr.bf16.mxu1 %v9134_v14  ;;  %v1158_v12 = vld [vmem:[%s10309_s3 + $0x1940] sm:$0xff]  ;;  %v10598_v13 = vpack.c.bf16 %v329_v2, %v329_v2  ;;  %v1159_v14 = vld [vmem:[%s10309_s3 + $0x1948] sm:$0xff] }
 0x156   : > { %v9244_v60 = vcombine.high %v1150_v11, %v1158_v12  ;;  %v9246_v18 = vcombine.high %v1151_v32, %v1159_v14  ;;  %v9243_v23 = vcombine.low %v1150_v11, %v1158_v12  ;;  %v9245_v25 = vcombine.low %v1151_v32, %v1159_v14  ;;  %v1254_v5 = vld [vmem:[%s10309_s3 + $0x1c40] sm:$0xff] }
 0x157   : > { %v9340_v11 = vcombine.high %v1246_v4, %v1254_v5  ;;  %v1262_v32 = vld [vmem:[%s10309_s3 + $0x1c80] sm:$0xff] }
 0x158   : > { %6599 = vmatpush1.bf16.msra.mxu0 %v9131_v19  ;;  %6763 = vmatpush1.bf16.msra.mxu1 %v9133_v20  ;;  %v1166_v19 = vld [vmem:[%s10309_s3 + $0x1980] sm:$0xff] }
 0x159   : > { %6600 = vmatprep.subr.bf16.mxu0 %v9148_v21  ;;  %6764 = vmatprep.subr.bf16.mxu1 %v9150_v22  ;;  %v1174_v20 = vld [vmem:[%s10309_s3 + $0x19c0] sm:$0xff]  ;;  %v1167_v21 = vld [vmem:[%s10309_s3 + $0x1988] sm:$0xff] }
 0x15a   : > { %v1175_v22 = vld [vmem:[%s10309_s3 + $0x19c8] sm:$0xff]  ;;  %v9260_v27 = vcombine.high %v1166_v19, %v1174_v20  ;;  %v9259_v34 = vcombine.low %v1166_v19, %v1174_v20  ;;  %v1270_v14 = vld [vmem:[%s10309_s3 + $0x1cc0] sm:$0xff] }
 0x15b   : > { %v9262_v28 = vcombine.high %v1167_v21, %v1175_v22  ;;  %v9261_v0 = vcombine.low %v1167_v21, %v1175_v22  ;;  %v9356_v19 = vcombine.high %v1262_v32, %v1270_v14  ;;  %v1278_v21 = vld [vmem:[%s10309_s3 + $0x1d00] sm:$0xff] }
 0x15c   : > { %6601 = vmatpush1.bf16.msra.mxu0 %v9147_v29  ;;  %6765 = vmatpush1.bf16.msra.mxu1 %v9149_v30  ;;  %v1182_v29 = vld [vmem:[%s10309_s3 + $0x1a00] sm:$0xff] }
 0x15d   : > { %6602 = vmatprep.subr.bf16.mxu0 %v9164_v31  ;;  %6766 = vmatprep.subr.bf16.mxu1 %v9166_v33  ;;  %v1190_v30 = vld [vmem:[%s10309_s3 + $0x1a40] sm:$0xff]  ;;  %v1183_v31 = vld [vmem:[%s10309_s3 + $0x1a08] sm:$0xff] }
 0x15e   : > { %v1191_v33 = vld [vmem:[%s10309_s3 + $0x1a48] sm:$0xff]  ;;  %v9276_v36 = vcombine.high %v1182_v29, %v1190_v30  ;;  %v9275_v43 = vcombine.low %v1182_v29, %v1190_v30  ;;  %v1286_v22 = vld [vmem:[%s10309_s3 + $0x1d40] sm:$0xff] }
 0x15f   : > { %v9278_v37 = vcombine.high %v1183_v31, %v1191_v33  ;;  %v9277_v44 = vcombine.low %v1183_v31, %v1191_v33  ;;  %v9372_v29 = vcombine.high %v1278_v21, %v1286_v22  ;;  %v1294_v31 = vld [vmem:[%s10309_s3 + $0x1d80] sm:$0xff] }
 0x160   : > { %6603 = vmatpush1.bf16.msra.mxu0 %v9163_v38  ;;  %6767 = vmatpush1.bf16.msra.mxu1 %v9165_v39  ;;  %v1198_v38 = vld [vmem:[%s10309_s3 + $0x1a80] sm:$0xff] }
 0x161   : > { %6604 = vmatprep.subr.bf16.mxu0 %v9180_v40  ;;  %6768 = vmatprep.subr.bf16.mxu1 %v9182_v41  ;;  %v1206_v39 = vld [vmem:[%s10309_s3 + $0x1ac0] sm:$0xff]  ;;  %v1199_v40 = vld [vmem:[%s10309_s3 + $0x1a88] sm:$0xff] }
 0x162   : > { %v1207_v41 = vld [vmem:[%s10309_s3 + $0x1ac8] sm:$0xff]  ;;  %v9292_v46 = vcombine.high %v1198_v38, %v1206_v39  ;;  %v1302_v33 = vld [vmem:[%s10309_s3 + $0x1dc0] sm:$0xff] }
 0x163   : > { %v9294_v47 = vcombine.high %v1199_v40, %v1207_v41  ;;  %v9293_v53 = vcombine.low %v1199_v40, %v1207_v41  ;;  %v1310_v40 = vld [vmem:[%s10309_s3 + $0x1e00] sm:$0xff] }
 0x164   : > { %6605 = vmatpush1.bf16.msra.mxu0 %v9179_v49  ;;  %6769 = vmatpush1.bf16.msra.mxu1 %v9181_v50  ;;  %v1222_v49 = vld [vmem:[%s10309_s3 + $0x1b40] sm:$0xff]  ;;  %v1215_v50 = vld [vmem:[%s10309_s3 + $0x1b08] sm:$0xff] }
 0x165   : > { %6606 = vmatprep.subr.bf16.mxu0 %v9196_v51  ;;  %6770 = vmatprep.subr.bf16.mxu1 %v9198_v17  ;;  %v1223_v51 = vld [vmem:[%s10309_s3 + $0x1b48] sm:$0xff]  ;;  %v9291_v17 = vcombine.low %v1198_v38, %v1206_v39  ;;  %v9308_v55 = vcombine.high %v1214_v48, %v1222_v49  ;;  %v9388_v38 = vcombine.high %v1294_v31, %v1302_v33  ;;  %v1318_v41 = vld [vmem:[%s10309_s3 + $0x1e40] sm:$0xff] }
 0x166   : > { %v9310_v24 = vcombine.high %v1215_v50, %v1223_v51  ;;  %v9309_v63 = vcombine.low %v1215_v50, %v1223_v51  ;;  %v1326_v50 = vld [vmem:[%s10309_s3 + $0x1e80] sm:$0xff] }
 0x167   : > { %v1334_v51 = vld [vmem:[%s10309_s3 + $0x1ec0] sm:$0xff] }
 0x168   : > { %6607 = vmatpush1.bf16.msra.mxu0 %v9195_v58  ;;  %6771 = vmatpush1.bf16.msra.mxu1 %v9197_v59  ;;  %v1238_v58 = vld [vmem:[%s10309_s3 + $0x1bc0] sm:$0xff]  ;;  %v1231_v59 = vld [vmem:[%s10309_s3 + $0x1b88] sm:$0xff] }
 0x169   : > { %6617 = vmatprep.subr.bf16.mxu0 %v9212_v61  ;;  %6781 = vmatprep.subr.bf16.mxu1 %v9214_v62  ;;  %v1239_v61 = vld [vmem:[%s10309_s3 + $0x1bc8] sm:$0xff]  ;;  %v9307_v62 = vcombine.low %v1214_v48, %v1222_v49  ;;  %v9324_v1 = vcombine.high %v1230_v57, %v1238_v58  ;;  %v9404_v48 = vcombine.high %v1310_v40, %v1318_v41 }
 0x16a   : > { %v9326_v2 = vcombine.high %v1231_v59, %v1239_v61 }
 0x16b   : > { %6609 = vmatmul.mubr.bf16.vlgmr.msra.gmra.mrb[0].mxu0 %v10592_v3  ;;  %6773 = vmatmul.mubr.bf16.vlgmr.msra.gmra.mrb[0].mxu1 %v10592_v3 }
 0x16c   : > { %6618 = vmatpush1.bf16.msra.mxu0 %v9211_v6  ;;  %6782 = vmatpush1.bf16.msra.mxu1 %v9213_v7  ;;  %v1247_v6 = vld [vmem:[%s10309_s3 + $0x1c08] sm:$0xff] }
 0x16d   : > { %6619 = vmatprep.subr.bf16.mxu0 %v9228_v8  ;;  %6783 = vmatprep.subr.bf16.mxu1 %v9230_v9  ;;  %v1255_v7 = vld [vmem:[%s10309_s3 + $0x1c48] sm:$0xff]  ;;  %v9323_v8 = vcombine.low %v1230_v57, %v1238_v58  ;;  %v9325_v9 = vcombine.low %v1231_v59, %v1239_v61  ;;  %v9420_v57 = vcombine.high %v1326_v50, %v1334_v51  ;;  %v1342_v59 = vld [vmem:[%s10309_s3 + $0x1f00] sm:$0xff] }
 0x16e   : > { %6649 = vmatprep.mubr.bf16.mxu0 %v10598_v13  ;;  %6813 = vmatprep.mubr.bf16.mxu1 %v10598_v13  ;;  %v9342_v12 = vcombine.high %v1247_v6, %v1255_v7  ;;  %v1350_v61 = vld [vmem:[%s10309_s3 + $0x1f40] sm:$0xff] }
 0x170   : > { %6620 = vmatpush1.bf16.msra.mxu0 %v9227_v15  ;;  %6784 = vmatpush1.bf16.msra.mxu1 %v9229_v16  ;;  %v1263_v15 = vld [vmem:[%s10309_s3 + $0x1c88] sm:$0xff] }
 0x171   : > { %6621 = vmatprep.subr.bf16.mxu0 %v9244_v60  ;;  %6785 = vmatprep.subr.bf16.mxu1 %v9246_v18  ;;  %v1271_v16 = vld [vmem:[%s10309_s3 + $0x1cc8] sm:$0xff]  ;;  %v9339_v60 = vcombine.low %v1246_v4, %v1254_v5  ;;  %v9341_v18 = vcombine.low %v1247_v6, %v1255_v7  ;;  %v9436_v4 = vcombine.high %v1342_v59, %v1350_v61  ;;  %v1358_v6 = vld [vmem:[%s10309_s3 + $0x1f80] sm:$0xff] }
 0x172   : > { %v9358_v20 = vcombine.high %v1263_v15, %v1271_v16  ;;  %v1366_v7 = vld [vmem:[%s10309_s3 + $0x1fc0] sm:$0xff] }
 0x174   : > { %6622 = vmatpush1.bf16.msra.mxu0 %v9243_v23  ;;  %6786 = vmatpush1.bf16.msra.mxu1 %v9245_v25  ;;  %v1279_v23 = vld [vmem:[%s10309_s3 + $0x1d08] sm:$0xff] }
 0x175   : > { %6623 = vmatprep.subr.bf16.mxu0 %v9260_v27  ;;  %6787 = vmatprep.subr.bf16.mxu1 %v9262_v28  ;;  %v1287_v25 = vld [vmem:[%s10309_s3 + $0x1d48] sm:$0xff]  ;;  %v9355_v27 = vcombine.low %v1262_v32, %v1270_v14  ;;  %v9357_v28 = vcombine.low %v1263_v15, %v1271_v16  ;;  %v9452_v32 = vcombine.high %v1358_v6, %v1366_v7  ;;  %v352_v15 = vld [vmem:[%s10309_s3 + $0x10] sm:$0xff] }
 0x176   : > { %v9374_v30 = vcombine.high %v1279_v23, %v1287_v25  ;;  %v360_v16 = vld [vmem:[%s10309_s3 + $0x50] sm:$0xff] }
 0x178   : > { %6624 = vmatpush1.bf16.msra.mxu0 %v9259_v34  ;;  %6788 = vmatpush1.bf16.msra.mxu1 %v9261_v0  ;;  %v1295_v34 = vld [vmem:[%s10309_s3 + $0x1d88] sm:$0xff] }
 0x179   : > { %6625 = vmatprep.subr.bf16.mxu0 %v9276_v36  ;;  %6789 = vmatprep.subr.bf16.mxu1 %v9278_v37  ;;  %v1303_v0 = vld [vmem:[%s10309_s3 + $0x1dc8] sm:$0xff]  ;;  %v9371_v36 = vcombine.low %v1278_v21, %v1286_v22  ;;  %v9373_v37 = vcombine.low %v1279_v23, %v1287_v25  ;;  %v8448_v21 = vcombine.high %v352_v15, %v360_v16  ;;  %v368_v23 = vld [vmem:[%s10309_s3 + $0x90] sm:$0xff] }
 0x17a   : > { %v9390_v39 = vcombine.high %v1295_v34, %v1303_v0  ;;  %v376_v25 = vld [vmem:[%s10309_s3 + $0xd0] sm:$0xff] }
 0x17c   : > { %6626 = vmatpush1.bf16.msra.mxu0 %v9275_v43  ;;  %6790 = vmatpush1.bf16.msra.mxu1 %v9277_v44  ;;  %v1311_v43 = vld [vmem:[%s10309_s3 + $0x1e08] sm:$0xff] }
 0x17d   : > { %6627 = vmatprep.subr.bf16.mxu0 %v9292_v46  ;;  %6791 = vmatprep.subr.bf16.mxu1 %v9294_v47  ;;  %v1319_v44 = vld [vmem:[%s10309_s3 + $0x1e48] sm:$0xff]  ;;  %v9387_v46 = vcombine.low %v1294_v31, %v1302_v33  ;;  %v9389_v47 = vcombine.low %v1295_v34, %v1303_v0  ;;  %v8464_v33 = vcombine.high %v368_v23, %v376_v25  ;;  %v384_v0 = vld [vmem:[%s10309_s3 + $0x110] sm:$0xff] }
 0x17e   : > { %v9406_v49 = vcombine.high %v1311_v43, %v1319_v44 }
 0x180   : > { %6628 = vmatpush1.bf16.msra.mxu0 %v9291_v17  ;;  %6792 = vmatpush1.bf16.msra.mxu1 %v9293_v53  ;;  %v1327_v17 = vld [vmem:[%s10309_s3 + $0x1e88] sm:$0xff] }
 0x181   : > { %6629 = vmatprep.subr.bf16.mxu0 %v9308_v55  ;;  %6793 = vmatprep.subr.bf16.mxu1 %v9310_v24  ;;  %v1335_v53 = vld [vmem:[%s10309_s3 + $0x1ec8] sm:$0xff]  ;;  %v9403_v55 = vcombine.low %v1310_v40, %v1318_v41  ;;  %v9405_v24 = vcombine.low %v1311_v43, %v1319_v44  ;;  %v400_v43 = vld [vmem:[%s10309_s3 + $0x190] sm:$0xff] }
 0x182   : > { %v9422_v58 = vcombine.high %v1327_v17, %v1335_v53  ;;  %v408_v44 = vld [vmem:[%s10309_s3 + $0x1d0] sm:$0xff] }
 0x184   : > { %6630 = vmatpush1.bf16.msra.mxu0 %v9307_v62  ;;  %6794 = vmatpush1.bf16.msra.mxu1 %v9309_v63  ;;  %v1343_v62 = vld [vmem:[%s10309_s3 + $0x1f08] sm:$0xff] }
 0x185   : > { %6631 = vmatprep.subr.bf16.mxu0 %v9324_v1  ;;  %6795 = vmatprep.subr.bf16.mxu1 %v9326_v2  ;;  %v1351_v63 = vld [vmem:[%s10309_s3 + $0x1f48] sm:$0xff]  ;;  %v9419_v1 = vcombine.low %v1326_v50, %v1334_v51  ;;  %v9421_v2 = vcombine.low %v1327_v17, %v1335_v53  ;;  %v8496_v50 = vcombine.high %v400_v43, %v408_v44  ;;  %v416_v17 = vld [vmem:[%s10309_s3 + $0x210] sm:$0xff] }
 0x186   : > { %v9438_v5 = vcombine.high %v1343_v62, %v1351_v63  ;;  %v424_v53 = vld [vmem:[%s10309_s3 + $0x250] sm:$0xff] }
 0x188   : > { %6632 = vmatpush1.bf16.msra.mxu0 %v9323_v8  ;;  %6796 = vmatpush1.bf16.msra.mxu1 %v9325_v9  ;;  %v1359_v8 = vld [vmem:[%s10309_s3 + $0x1f88] sm:$0xff] }
 0x189   : > { %6633 = vmatprep.subr.bf16.mxu0 %v9340_v11  ;;  %6797 = vmatprep.subr.bf16.mxu1 %v9342_v12  ;;  %v1367_v9 = vld [vmem:[%s10309_s3 + $0x1fc8] sm:$0xff]  ;;  %v9435_v11 = vcombine.low %v1342_v59, %v1350_v61  ;;  %v9437_v12 = vcombine.low %v1343_v62, %v1351_v63  ;;  %v8512_v59 = vcombine.high %v416_v17, %v424_v53  ;;  %v432_v62 = vld [vmem:[%s10309_s3 + $0x290] sm:$0xff] }
 0x18a   : > { %v9454_v14 = vcombine.high %v1359_v8, %v1367_v9  ;;  %v440_v63 = vld [vmem:[%s10309_s3 + $0x2d0] sm:$0xff] }
 0x18c   : > { %6634 = vmatpush1.bf16.msra.mxu0 %v9339_v60  ;;  %6798 = vmatpush1.bf16.msra.mxu1 %v9341_v18  ;;  %v353_v60 = vld [vmem:[%s10309_s3 + $0x18] sm:$0xff] }
 0x18d   : > { %6635 = vmatprep.subr.bf16.mxu0 %v9356_v19  ;;  %6799 = vmatprep.subr.bf16.mxu1 %v9358_v20  ;;  %v361_v18 = vld [vmem:[%s10309_s3 + $0x58] sm:$0xff]  ;;  %v9451_v19 = vcombine.low %v1358_v6, %v1366_v7  ;;  %v9453_v20 = vcombine.low %v1359_v8, %v1367_v9  ;;  %v8528_v6 = vcombine.high %v432_v62, %v440_v63  ;;  %v448_v8 = vld [vmem:[%s10309_s3 + $0x310] sm:$0xff] }
 0x18e   : > { %v8450_v22 = vcombine.high %v353_v60, %v361_v18  ;;  %v8449_v31 = vcombine.low %v353_v60, %v361_v18  ;;  %v456_v9 = vld [vmem:[%s10309_s3 + $0x350] sm:$0xff] }
 0x18f   : > { %v464_v60 = vld [vmem:[%s10309_s3 + $0x390] sm:$0xff] }
 0x190   : > { %6636 = vmatpush1.bf16.msra.mxu0 %v9355_v27  ;;  %6800 = vmatpush1.bf16.msra.mxu1 %v9357_v28  ;;  %v10666_v27 = vpack.c.bf16 %v10582_v56, %v10582_v56  ;;  %v369_v28 = vld [vmem:[%s10309_s3 + $0x98] sm:$0xff]  ;;  %v472_v18 = vld [vmem:[%s10309_s3 + $0x3d0] sm:$0xff] }
 0x191   : > { %6637 = vmatprep.subr.bf16.mxu0 %v9372_v29  ;;  %6801 = vmatprep.subr.bf16.mxu1 %v9374_v30  ;;  %v377_v29 = vld [vmem:[%s10309_s3 + $0xd8] sm:$0xff]  ;;  %v8447_v30 = vcombine.low %v352_v15, %v360_v16  ;;  %v8544_v15 = vcombine.high %v448_v8, %v456_v9 }
 0x192   : > { %v8466_v34 = vcombine.high %v369_v28, %v377_v29  ;;  %v385_v56 = vld [vmem:[%s10309_s3 + $0x118] sm:$0xff] }
 0x194   : > { %6638 = vmatpush1.bf16.msra.mxu0 %v9371_v36  ;;  %6802 = vmatpush1.bf16.msra.mxu1 %v9373_v37  ;;  %v392_v36 = vld [vmem:[%s10309_s3 + $0x150] sm:$0xff]  ;;  %v393_v37 = vld [vmem:[%s10309_s3 + $0x158] sm:$0xff] }
 0x195   : > { %6639 = vmatprep.subr.bf16.mxu0 %v9388_v38  ;;  %6803 = vmatprep.subr.bf16.mxu1 %v9390_v39  ;;  %v8463_v38 = vcombine.low %v368_v23, %v376_v25  ;;  %v8465_v39 = vcombine.low %v369_v28, %v377_v29  ;;  %v8480_v40 = vcombine.high %v384_v0, %v392_v36  ;;  %v480_v28 = vld [vmem:[%s10309_s3 + $0x410] sm:$0xff] }
 0x196   : > { %v8482_v41 = vcombine.high %v385_v56, %v393_v37  ;;  %v8560_v23 = vcombine.high %v464_v60, %v472_v18  ;;  %v488_v29 = vld [vmem:[%s10309_s3 + $0x450] sm:$0xff] }
 0x198   : > { %6640 = vmatpush1.bf16.msra.mxu0 %v9387_v46  ;;  %6804 = vmatpush1.bf16.msra.mxu1 %v9389_v47  ;;  %v401_v46 = vld [vmem:[%s10309_s3 + $0x198] sm:$0xff] }
 0x199   : > { %6641 = vmatprep.subr.bf16.mxu0 %v9404_v48  ;;  %6805 = vmatprep.subr.bf16.mxu1 %v9406_v49  ;;  %v409_v47 = vld [vmem:[%s10309_s3 + $0x1d8] sm:$0xff]  ;;  %v8479_v48 = vcombine.low %v384_v0, %v392_v36  ;;  %v8481_v49 = vcombine.low %v385_v56, %v393_v37  ;;  %v8576_v0 = vcombine.high %v480_v28, %v488_v29  ;;  %v496_v56 = vld [vmem:[%s10309_s3 + $0x490] sm:$0xff] }
 0x19a   : > { %v8498_v51 = vcombine.high %v401_v46, %v409_v47  ;;  %v504_v37 = vld [vmem:[%s10309_s3 + $0x4d0] sm:$0xff] }
 0x19c   : > { %6642 = vmatpush1.bf16.msra.mxu0 %v9403_v55  ;;  %6806 = vmatpush1.bf16.msra.mxu1 %v9405_v24  ;;  %v417_v55 = vld [vmem:[%s10309_s3 + $0x218] sm:$0xff] }
 0x19d   : > { %6643 = vmatprep.subr.bf16.mxu0 %v9420_v57  ;;  %6807 = vmatprep.subr.bf16.mxu1 %v9422_v58  ;;  %v425_v24 = vld [vmem:[%s10309_s3 + $0x258] sm:$0xff]  ;;  %v8495_v57 = vcombine.low %v400_v43, %v408_v44  ;;  %v8497_v58 = vcombine.low %v401_v46, %v409_v47  ;;  %v8592_v43 = vcombine.high %v496_v56, %v504_v37  ;;  %v512_v46 = vld [vmem:[%s10309_s3 + $0x510] sm:$0xff] }
 0x19e   : > { %v8514_v61 = vcombine.high %v417_v55, %v425_v24  ;;  %v520_v47 = vld [vmem:[%s10309_s3 + $0x550] sm:$0xff] }
 0x1a0   : > { %6644 = vmatpush1.bf16.msra.mxu0 %v9419_v1  ;;  %6808 = vmatpush1.bf16.msra.mxu1 %v9421_v2  ;;  %v433_v1 = vld [vmem:[%s10309_s3 + $0x298] sm:$0xff] }
 0x1a1   : > { %6645 = vmatprep.subr.bf16.mxu0 %v9436_v4  ;;  %6809 = vmatprep.subr.bf16.mxu1 %v9438_v5  ;;  %v441_v2 = vld [vmem:[%s10309_s3 + $0x2d8] sm:$0xff]  ;;  %v8511_v4 = vcombine.low %v416_v17, %v424_v53  ;;  %v8513_v5 = vcombine.low %v417_v55, %v425_v24  ;;  %v8608_v17 = vcombine.high %v512_v46, %v520_v47  ;;  %v528_v55 = vld [vmem:[%s10309_s3 + $0x590] sm:$0xff] }
 0x1a2   : > { %v8530_v7 = vcombine.high %v433_v1, %v441_v2  ;;  %v536_v24 = vld [vmem:[%s10309_s3 + $0x5d0] sm:$0xff] }
 0x1a4   : > { %6646 = vmatpush1.bf16.msra.mxu0 %v9435_v11  ;;  %6810 = vmatpush1.bf16.msra.mxu1 %v9437_v12  ;;  %v449_v11 = vld [vmem:[%s10309_s3 + $0x318] sm:$0xff] }
 0x1a5   : > { %6647 = vmatprep.subr.bf16.mxu0 %v9452_v32  ;;  %6811 = vmatprep.subr.bf16.mxu1 %v9454_v14  ;;  %v457_v12 = vld [vmem:[%s10309_s3 + $0x358] sm:$0xff]  ;;  %v8527_v32 = vcombine.low %v432_v62, %v440_v63  ;;  %v8529_v14 = vcombine.low %v433_v1, %v441_v2  ;;  %v8624_v62 = vcombine.high %v528_v55, %v536_v24  ;;  %v544_v1 = vld [vmem:[%s10309_s3 + $0x610] sm:$0xff] }
 0x1a6   : > { %v8546_v16 = vcombine.high %v449_v11, %v457_v12  ;;  %v552_v2 = vld [vmem:[%s10309_s3 + $0x650] sm:$0xff] }
 0x1a8   : > { %6648 = vmatpush1.bf16.msra.mxu0 %v9451_v19  ;;  %6812 = vmatpush1.bf16.msra.mxu1 %v9453_v20  ;;  %v465_v19 = vld [vmem:[%s10309_s3 + $0x398] sm:$0xff] }
 0x1a9   : > { %6822 = vmatprep.subr.bf16.mxu0 %v8448_v21  ;;  %6986 = vmatprep.subr.bf16.mxu1 %v8450_v22  ;;  %v473_v20 = vld [vmem:[%s10309_s3 + $0x3d8] sm:$0xff]  ;;  %v8543_v21 = vcombine.low %v448_v8, %v456_v9  ;;  %v8545_v22 = vcombine.low %v449_v11, %v457_v12  ;;  %v8640_v8 = vcombine.high %v544_v1, %v552_v2  ;;  %v560_v11 = vld [vmem:[%s10309_s3 + $0x690] sm:$0xff] }
 0x1aa   : > { %v8562_v25 = vcombine.high %v465_v19, %v473_v20  ;;  %v568_v12 = vld [vmem:[%s10309_s3 + $0x6d0] sm:$0xff] }
 0x1ab   : > { %6650 = vmatmul.mubr.bf16.vlgmr.msra.gmra.mrb[0].mxu0 %v10666_v27  ;;  %6814 = vmatmul.mubr.bf16.vlgmr.msra.gmra.mrb[0].mxu1 %v10666_v27 }
 0x1ac   : > { %6823 = vmatpush1.bf16.msra.mxu0 %v8447_v30  ;;  %6987 = vmatpush1.bf16.msra.mxu1 %v8449_v31  ;;  %v481_v30 = vld [vmem:[%s10309_s3 + $0x418] sm:$0xff] }
 0x1ad   : > { %6824 = vmatprep.subr.bf16.mxu0 %v8464_v33  ;;  %6988 = vmatprep.subr.bf16.mxu1 %v8466_v34  ;;  %v489_v31 = vld [vmem:[%s10309_s3 + $0x458] sm:$0xff]  ;;  %v8559_v33 = vcombine.low %v464_v60, %v472_v18  ;;  %v8561_v34 = vcombine.low %v465_v19, %v473_v20  ;;  %v8656_v60 = vcombine.high %v560_v11, %v568_v12  ;;  %v576_v19 = vld [vmem:[%s10309_s3 + $0x710] sm:$0xff] }
 0x1ae   : > { %6854 = vmatprep.mubr.bf16.mxu0 %v10378_v10  ;;  %7018 = vmatprep.mubr.bf16.mxu1 %v10378_v10  ;;  %v8578_v36 = vcombine.high %v481_v30, %v489_v31  ;;  %v584_v20 = vld [vmem:[%s10309_s3 + $0x750] sm:$0xff] }
 0x1b0   : > { %6825 = vmatpush1.bf16.msra.mxu0 %v8463_v38  ;;  %6989 = vmatpush1.bf16.msra.mxu1 %v8465_v39  ;;  %v497_v38 = vld [vmem:[%s10309_s3 + $0x498] sm:$0xff] }
 0x1b1   : > { %6826 = vmatprep.subr.bf16.mxu0 %v8480_v40  ;;  %6990 = vmatprep.subr.bf16.mxu1 %v8482_v41  ;;  %v505_v39 = vld [vmem:[%s10309_s3 + $0x4d8] sm:$0xff]  ;;  %v8575_v40 = vcombine.low %v480_v28, %v488_v29  ;;  %v8577_v41 = vcombine.low %v481_v30, %v489_v31  ;;  %v8672_v28 = vcombine.high %v576_v19, %v584_v20  ;;  %v592_v30 = vld [vmem:[%s10309_s3 + $0x790] sm:$0xff] }
 0x1b2   : > { %v8594_v44 = vcombine.high %v497_v38, %v505_v39  ;;  %v600_v31 = vld [vmem:[%s10309_s3 + $0x7d0] sm:$0xff] }
 0x1b4   : > { %6827 = vmatpush1.bf16.msra.mxu0 %v8479_v48  ;;  %6991 = vmatpush1.bf16.msra.mxu1 %v8481_v49  ;;  %v513_v48 = vld [vmem:[%s10309_s3 + $0x518] sm:$0xff] }
 0x1b5   : > { %6828 = vmatprep.subr.bf16.mxu0 %v8496_v50  ;;  %6992 = vmatprep.subr.bf16.mxu1 %v8498_v51  ;;  %v521_v49 = vld [vmem:[%s10309_s3 + $0x558] sm:$0xff]  ;;  %v8591_v50 = vcombine.low %v496_v56, %v504_v37  ;;  %v8593_v51 = vcombine.low %v497_v38, %v505_v39  ;;  %v8688_v56 = vcombine.high %v592_v30, %v600_v31  ;;  %v608_v38 = vld [vmem:[%s10309_s3 + $0x810] sm:$0xff] }
 0x1b6   : > { %v8610_v53 = vcombine.high %v513_v48, %v521_v49  ;;  %v616_v39 = vld [vmem:[%s10309_s3 + $0x850] sm:$0xff] }
 0x1b8   : > { %6829 = vmatpush1.bf16.msra.mxu0 %v8495_v57  ;;  %6993 = vmatpush1.bf16.msra.mxu1 %v8497_v58  ;;  %v529_v57 = vld [vmem:[%s10309_s3 + $0x598] sm:$0xff] }
 0x1b9   : > { %6830 = vmatprep.subr.bf16.mxu0 %v8512_v59  ;;  %6994 = vmatprep.subr.bf16.mxu1 %v8514_v61  ;;  %v537_v58 = vld [vmem:[%s10309_s3 + $0x5d8] sm:$0xff]  ;;  %v8607_v59 = vcombine.low %v512_v46, %v520_v47  ;;  %v8609_v61 = vcombine.low %v513_v48, %v521_v49  ;;  %v8704_v46 = vcombine.high %v608_v38, %v616_v39  ;;  %v624_v48 = vld [vmem:[%s10309_s3 + $0x890] sm:$0xff] }
 0x1ba   : > { %v8626_v63 = vcombine.high %v529_v57, %v537_v58  ;;  %v632_v49 = vld [vmem:[%s10309_s3 + $0x8d0] sm:$0xff] }
 0x1bc   : > { %6831 = vmatpush1.bf16.msra.mxu0 %v8511_v4  ;;  %6995 = vmatpush1.bf16.msra.mxu1 %v8513_v5  ;;  %v545_v4 = vld [vmem:[%s10309_s3 + $0x618] sm:$0xff] }
 0x1bd   : > { %6832 = vmatprep.subr.bf16.mxu0 %v8528_v6  ;;  %6996 = vmatprep.subr.bf16.mxu1 %v8530_v7  ;;  %v553_v5 = vld [vmem:[%s10309_s3 + $0x658] sm:$0xff]  ;;  %v8623_v6 = vcombine.low %v528_v55, %v536_v24  ;;  %v8625_v7 = vcombine.low %v529_v57, %v537_v58  ;;  %v8720_v55 = vcombine.high %v624_v48, %v632_v49  ;;  %v640_v57 = vld [vmem:[%s10309_s3 + $0x910] sm:$0xff] }
 0x1be   : > { %v8642_v9 = vcombine.high %v545_v4, %v553_v5  ;;  %v648_v58 = vld [vmem:[%s10309_s3 + $0x950] sm:$0xff] }
 0x1c0   : > { %6833 = vmatpush1.bf16.msra.mxu0 %v8527_v32  ;;  %6997 = vmatpush1.bf16.msra.mxu1 %v8529_v14  ;;  %v561_v32 = vld [vmem:[%s10309_s3 + $0x698] sm:$0xff] }
 0x1c1   : > { %6834 = vmatprep.subr.bf16.mxu0 %v8544_v15  ;;  %6998 = vmatprep.subr.bf16.mxu1 %v8546_v16  ;;  %v569_v14 = vld [vmem:[%s10309_s3 + $0x6d8] sm:$0xff]  ;;  %v8639_v15 = vcombine.low %v544_v1, %v552_v2  ;;  %v8641_v16 = vcombine.low %v545_v4, %v553_v5  ;;  %v8736_v1 = vcombine.high %v640_v57, %v648_v58  ;;  %v656_v4 = vld [vmem:[%s10309_s3 + $0x990] sm:$0xff] }
 0x1c2   : > { %v8658_v18 = vcombine.high %v561_v32, %v569_v14  ;;  %v664_v5 = vld [vmem:[%s10309_s3 + $0x9d0] sm:$0xff] }
 0x1c4   : > { %6835 = vmatpush1.bf16.msra.mxu0 %v8543_v21  ;;  %6999 = vmatpush1.bf16.msra.mxu1 %v8545_v22  ;;  %v577_v21 = vld [vmem:[%s10309_s3 + $0x718] sm:$0xff] }
 0x1c5   : > { %6836 = vmatprep.subr.bf16.mxu0 %v8560_v23  ;;  %7000 = vmatprep.subr.bf16.mxu1 %v8562_v25  ;;  %v585_v22 = vld [vmem:[%s10309_s3 + $0x758] sm:$0xff]  ;;  %v8655_v23 = vcombine.low %v560_v11, %v568_v12  ;;  %v8657_v25 = vcombine.low %v561_v32, %v569_v14  ;;  %v8752_v11 = vcombine.high %v656_v4, %v664_v5  ;;  %v672_v32 = vld [vmem:[%s10309_s3 + $0xa10] sm:$0xff] }
 0x1c6   : > { %v8674_v29 = vcombine.high %v577_v21, %v585_v22  ;;  %v680_v14 = vld [vmem:[%s10309_s3 + $0xa50] sm:$0xff] }
 0x1c8   : > { %6837 = vmatpush1.bf16.msra.mxu0 %v8559_v33  ;;  %7001 = vmatpush1.bf16.msra.mxu1 %v8561_v34  ;;  %v593_v33 = vld [vmem:[%s10309_s3 + $0x798] sm:$0xff] }
 0x1c9   : > { %6838 = vmatprep.subr.bf16.mxu0 %v8576_v0  ;;  %7002 = vmatprep.subr.bf16.mxu1 %v8578_v36  ;;  %v601_v34 = vld [vmem:[%s10309_s3 + $0x7d8] sm:$0xff]  ;;  %v8671_v0 = vcombine.low %v576_v19, %v584_v20  ;;  %v8673_v36 = vcombine.low %v577_v21, %v585_v22  ;;  %v8768_v19 = vcombine.high %v672_v32, %v680_v14  ;;  %v688_v21 = vld [vmem:[%s10309_s3 + $0xa90] sm:$0xff] }
 0x1ca   : > { %v8690_v37 = vcombine.high %v593_v33, %v601_v34  ;;  %v696_v22 = vld [vmem:[%s10309_s3 + $0xad0] sm:$0xff] }
 0x1cc   : > { %6839 = vmatpush1.bf16.msra.mxu0 %v8575_v40  ;;  %7003 = vmatpush1.bf16.msra.mxu1 %v8577_v41  ;;  %v609_v40 = vld [vmem:[%s10309_s3 + $0x818] sm:$0xff] }
 0x1cd   : > { %6840 = vmatprep.subr.bf16.mxu0 %v8592_v43  ;;  %7004 = vmatprep.subr.bf16.mxu1 %v8594_v44  ;;  %v617_v41 = vld [vmem:[%s10309_s3 + $0x858] sm:$0xff]  ;;  %v8687_v43 = vcombine.low %v592_v30, %v600_v31  ;;  %v8689_v44 = vcombine.low %v593_v33, %v601_v34  ;;  %v8784_v30 = vcombine.high %v688_v21, %v696_v22  ;;  %v704_v33 = vld [vmem:[%s10309_s3 + $0xb10] sm:$0xff] }
 0x1ce   : > { %v8706_v47 = vcombine.high %v609_v40, %v617_v41  ;;  %v712_v34 = vld [vmem:[%s10309_s3 + $0xb50] sm:$0xff] }
 0x1d0   : > { %6841 = vmatpush1.bf16.msra.mxu0 %v8591_v50  ;;  %7005 = vmatpush1.bf16.msra.mxu1 %v8593_v51  ;;  %v625_v50 = vld [vmem:[%s10309_s3 + $0x898] sm:$0xff] }
 0x1d1   : > { %6842 = vmatprep.subr.bf16.mxu0 %v8608_v17  ;;  %7006 = vmatprep.subr.bf16.mxu1 %v8610_v53  ;;  %v633_v51 = vld [vmem:[%s10309_s3 + $0x8d8] sm:$0xff]  ;;  %v8703_v17 = vcombine.low %v608_v38, %v616_v39  ;;  %v8705_v53 = vcombine.low %v609_v40, %v617_v41  ;;  %v8800_v38 = vcombine.high %v704_v33, %v712_v34  ;;  %v720_v40 = vld [vmem:[%s10309_s3 + $0xb90] sm:$0xff] }
 0x1d2   : > { %v8722_v24 = vcombine.high %v625_v50, %v633_v51  ;;  %v728_v41 = vld [vmem:[%s10309_s3 + $0xbd0] sm:$0xff] }
 0x1d4   : > { %6843 = vmatpush1.bf16.msra.mxu0 %v8607_v59  ;;  %7007 = vmatpush1.bf16.msra.mxu1 %v8609_v61  ;;  %v641_v59 = vld [vmem:[%s10309_s3 + $0x918] sm:$0xff] }
 0x1d5   : > { %6844 = vmatprep.subr.bf16.mxu0 %v8624_v62  ;;  %7008 = vmatprep.subr.bf16.mxu1 %v8626_v63  ;;  %v649_v61 = vld [vmem:[%s10309_s3 + $0x958] sm:$0xff]  ;;  %v8719_v62 = vcombine.low %v624_v48, %v632_v49  ;;  %v8721_v63 = vcombine.low %v625_v50, %v633_v51  ;;  %v8816_v48 = vcombine.high %v720_v40, %v728_v41  ;;  %v736_v50 = vld [vmem:[%s10309_s3 + $0xc10] sm:$0xff] }
 0x1d6   : > { %v8738_v2 = vcombine.high %v641_v59, %v649_v61  ;;  %v744_v51 = vld [vmem:[%s10309_s3 + $0xc50] sm:$0xff] }
 0x1d8   : > { %6845 = vmatpush1.bf16.msra.mxu0 %v8623_v6  ;;  %7009 = vmatpush1.bf16.msra.mxu1 %v8625_v7  ;;  %v657_v6 = vld [vmem:[%s10309_s3 + $0x998] sm:$0xff] }
 0x1d9   : > { %6846 = vmatprep.subr.bf16.mxu0 %v8640_v8  ;;  %7010 = vmatprep.subr.bf16.mxu1 %v8642_v9  ;;  %v665_v7 = vld [vmem:[%s10309_s3 + $0x9d8] sm:$0xff]  ;;  %v8735_v8 = vcombine.low %v640_v57, %v648_v58  ;;  %v8737_v9 = vcombine.low %v641_v59, %v649_v61  ;;  %v8832_v57 = vcombine.high %v736_v50, %v744_v51  ;;  %v752_v59 = vld [vmem:[%s10309_s3 + $0xc90] sm:$0xff] }
 0x1da   : > { %v8754_v12 = vcombine.high %v657_v6, %v665_v7  ;;  %v760_v61 = vld [vmem:[%s10309_s3 + $0xcd0] sm:$0xff] }
 0x1dc   : > { %6847 = vmatpush1.bf16.msra.mxu0 %v8639_v15  ;;  %7011 = vmatpush1.bf16.msra.mxu1 %v8641_v16  ;;  %v673_v15 = vld [vmem:[%s10309_s3 + $0xa18] sm:$0xff] }
 0x1dd   : > { %6848 = vmatprep.subr.bf16.mxu0 %v8656_v60  ;;  %7012 = vmatprep.subr.bf16.mxu1 %v8658_v18  ;;  %v681_v16 = vld [vmem:[%s10309_s3 + $0xa58] sm:$0xff]  ;;  %v8751_v60 = vcombine.low %v656_v4, %v664_v5  ;;  %v8753_v18 = vcombine.low %v657_v6, %v665_v7  ;;  %v8848_v4 = vcombine.high %v752_v59, %v760_v61  ;;  %v768_v6 = vld [vmem:[%s10309_s3 + $0xd10] sm:$0xff] }
 0x1de   : > { %v8770_v20 = vcombine.high %v673_v15, %v681_v16  ;;  %v776_v7 = vld [vmem:[%s10309_s3 + $0xd50] sm:$0xff] }
 0x1e0   : > { %6849 = vmatpush1.bf16.msra.mxu0 %v8655_v23  ;;  %7013 = vmatpush1.bf16.msra.mxu1 %v8657_v25  ;;  %v689_v23 = vld [vmem:[%s10309_s3 + $0xa98] sm:$0xff] }
 0x1e1   : > { %6850 = vmatprep.subr.bf16.mxu0 %v8672_v28  ;;  %7014 = vmatprep.subr.bf16.mxu1 %v8674_v29  ;;  %v697_v25 = vld [vmem:[%s10309_s3 + $0xad8] sm:$0xff]  ;;  %v8767_v28 = vcombine.low %v672_v32, %v680_v14  ;;  %v8769_v29 = vcombine.low %v673_v15, %v681_v16  ;;  %v8864_v32 = vcombine.high %v768_v6, %v776_v7  ;;  %v784_v15 = vld [vmem:[%s10309_s3 + $0xd90] sm:$0xff] }
 0x1e2   : > { %v8786_v31 = vcombine.high %v689_v23, %v697_v25  ;;  %v792_v16 = vld [vmem:[%s10309_s3 + $0xdd0] sm:$0xff] }
 0x1e4   : > { %6851 = vmatpush1.bf16.msra.mxu0 %v8671_v0  ;;  %7015 = vmatpush1.bf16.msra.mxu1 %v8673_v36  ;;  %v705_v0 = vld [vmem:[%s10309_s3 + $0xb18] sm:$0xff] }
 0x1e5   : > { %6852 = vmatprep.subr.bf16.mxu0 %v8688_v56  ;;  %7016 = vmatprep.subr.bf16.mxu1 %v8690_v37  ;;  %v713_v36 = vld [vmem:[%s10309_s3 + $0xb58] sm:$0xff]  ;;  %v8783_v56 = vcombine.low %v688_v21, %v696_v22  ;;  %v8785_v37 = vcombine.low %v689_v23, %v697_v25  ;;  %v8880_v21 = vcombine.high %v784_v15, %v792_v16  ;;  %v800_v23 = vld [vmem:[%s10309_s3 + $0xe10] sm:$0xff] }
 0x1e6   : > { %v8802_v39 = vcombine.high %v705_v0, %v713_v36  ;;  %v808_v25 = vld [vmem:[%s10309_s3 + $0xe50] sm:$0xff] }
 0x1e8   : > { %6853 = vmatpush1.bf16.msra.mxu0 %v8687_v43  ;;  %7017 = vmatpush1.bf16.msra.mxu1 %v8689_v44  ;;  %v721_v43 = vld [vmem:[%s10309_s3 + $0xb98] sm:$0xff] }
 0x1e9   : > { %6863 = vmatprep.subr.bf16.mxu0 %v8704_v46  ;;  %7027 = vmatprep.subr.bf16.mxu1 %v8706_v47  ;;  %v729_v44 = vld [vmem:[%s10309_s3 + $0xbd8] sm:$0xff]  ;;  %v8799_v46 = vcombine.low %v704_v33, %v712_v34  ;;  %v8801_v47 = vcombine.low %v705_v0, %v713_v36  ;;  %v8896_v33 = vcombine.high %v800_v23, %v808_v25  ;;  %v816_v0 = vld [vmem:[%s10309_s3 + $0xe90] sm:$0xff] }
 0x1ea   : > { %v8818_v49 = vcombine.high %v721_v43, %v729_v44  ;;  %v824_v36 = vld [vmem:[%s10309_s3 + $0xed0] sm:$0xff] }
 0x1eb   : > { %6855 = vmatmul.mubr.bf16.vlgmr.msra.gmra.mrb[4].mxu0 %v10427_v26  ;;  %7019 = vmatmul.mubr.bf16.vlgmr.msra.gmra.mrb[4].mxu1 %v10427_v26 }
 0x1ec   : > { %6864 = vmatpush1.bf16.msra.mxu0 %v8703_v17  ;;  %7028 = vmatpush1.bf16.msra.mxu1 %v8705_v53  ;;  %v737_v17 = vld [vmem:[%s10309_s3 + $0xc18] sm:$0xff] }
 0x1ed   : > { %6865 = vmatprep.subr.bf16.mxu0 %v8720_v55  ;;  %7029 = vmatprep.subr.bf16.mxu1 %v8722_v24  ;;  %v745_v53 = vld [vmem:[%s10309_s3 + $0xc58] sm:$0xff]  ;;  %v8815_v55 = vcombine.low %v720_v40, %v728_v41  ;;  %v8817_v24 = vcombine.low %v721_v43, %v729_v44  ;;  %v8912_v40 = vcombine.high %v816_v0, %v824_v36  ;;  %v832_v43 = vld [vmem:[%s10309_s3 + $0xf10] sm:$0xff] }
 0x1ee   : > { %6895 = vmatprep.mubr.bf16.mxu0 %v10433_v35  ;;  %7059 = vmatprep.mubr.bf16.mxu1 %v10433_v35  ;;  %v8834_v58 = vcombine.high %v737_v17, %v745_v53  ;;  %v840_v44 = vld [vmem:[%s10309_s3 + $0xf50] sm:$0xff] }
 0x1f0   : > { %6866 = vmatpush1.bf16.msra.mxu0 %v8719_v62  ;;  %7030 = vmatpush1.bf16.msra.mxu1 %v8721_v63  ;;  %v753_v62 = vld [vmem:[%s10309_s3 + $0xc98] sm:$0xff] }
 0x1f1   : > { %6867 = vmatprep.subr.bf16.mxu0 %v8736_v1  ;;  %7031 = vmatprep.subr.bf16.mxu1 %v8738_v2  ;;  %v761_v63 = vld [vmem:[%s10309_s3 + $0xcd8] sm:$0xff]  ;;  %v8831_v1 = vcombine.low %v736_v50, %v744_v51  ;;  %v8833_v2 = vcombine.low %v737_v17, %v745_v53  ;;  %v8928_v50 = vcombine.high %v832_v43, %v840_v44  ;;  %v848_v17 = vld [vmem:[%s10309_s3 + $0xf90] sm:$0xff] }
 0x1f2   : > { %v8850_v5 = vcombine.high %v753_v62, %v761_v63  ;;  %v856_v53 = vld [vmem:[%s10309_s3 + $0xfd0] sm:$0xff] }
 0x1f4   : > { %6868 = vmatpush1.bf16.msra.mxu0 %v8735_v8  ;;  %7032 = vmatpush1.bf16.msra.mxu1 %v8737_v9  ;;  %v769_v8 = vld [vmem:[%s10309_s3 + $0xd18] sm:$0xff] }
 0x1f5   : > { %6869 = vmatprep.subr.bf16.mxu0 %v8752_v11  ;;  %7033 = vmatprep.subr.bf16.mxu1 %v8754_v12  ;;  %v777_v9 = vld [vmem:[%s10309_s3 + $0xd58] sm:$0xff]  ;;  %v8847_v11 = vcombine.low %v752_v59, %v760_v61  ;;  %v8849_v12 = vcombine.low %v753_v62, %v761_v63  ;;  %v8944_v59 = vcombine.high %v848_v17, %v856_v53  ;;  %v864_v62 = vld [vmem:[%s10309_s3 + $0x1010] sm:$0xff] }
 0x1f6   : > { %v8866_v14 = vcombine.high %v769_v8, %v777_v9  ;;  %v872_v63 = vld [vmem:[%s10309_s3 + $0x1050] sm:$0xff] }
 0x1f8   : > { %6870 = vmatpush1.bf16.msra.mxu0 %v8751_v60  ;;  %7034 = vmatpush1.bf16.msra.mxu1 %v8753_v18  ;;  %v785_v60 = vld [vmem:[%s10309_s3 + $0xd98] sm:$0xff] }
 0x1f9   : > { %6871 = vmatprep.subr.bf16.mxu0 %v8768_v19  ;;  %7035 = vmatprep.subr.bf16.mxu1 %v8770_v20  ;;  %v793_v18 = vld [vmem:[%s10309_s3 + $0xdd8] sm:$0xff]  ;;  %v8863_v19 = vcombine.low %v768_v6, %v776_v7  ;;  %v8865_v20 = vcombine.low %v769_v8, %v777_v9  ;;  %v8960_v6 = vcombine.high %v864_v62, %v872_v63  ;;  %v880_v8 = vld [vmem:[%s10309_s3 + $0x1090] sm:$0xff] }
 0x1fa   : > { %v8882_v22 = vcombine.high %v785_v60, %v793_v18  ;;  %v888_v9 = vld [vmem:[%s10309_s3 + $0x10d0] sm:$0xff] }
 0x1fc   : > { %6872 = vmatpush1.bf16.msra.mxu0 %v8767_v28  ;;  %7036 = vmatpush1.bf16.msra.mxu1 %v8769_v29  ;;  %v801_v28 = vld [vmem:[%s10309_s3 + $0xe18] sm:$0xff] }
 0x1fd   : > { %6873 = vmatprep.subr.bf16.mxu0 %v8784_v30  ;;  %7037 = vmatprep.subr.bf16.mxu1 %v8786_v31  ;;  %v809_v29 = vld [vmem:[%s10309_s3 + $0xe58] sm:$0xff]  ;;  %v8879_v30 = vcombine.low %v784_v15, %v792_v16  ;;  %v8881_v31 = vcombine.low %v785_v60, %v793_v18  ;;  %v8976_v15 = vcombine.high %v880_v8, %v888_v9  ;;  %v896_v60 = vld [vmem:[%s10309_s3 + $0x1110] sm:$0xff] }
 0x1fe   : > { %v8898_v34 = vcombine.high %v801_v28, %v809_v29  ;;  %v904_v18 = vld [vmem:[%s10309_s3 + $0x1150] sm:$0xff] }
 0x200   : > { %6874 = vmatpush1.bf16.msra.mxu0 %v8783_v56  ;;  %7038 = vmatpush1.bf16.msra.mxu1 %v8785_v37  ;;  %v817_v56 = vld [vmem:[%s10309_s3 + $0xe98] sm:$0xff] }
 0x201   : > { %6875 = vmatprep.subr.bf16.mxu0 %v8800_v38  ;;  %7039 = vmatprep.subr.bf16.mxu1 %v8802_v39  ;;  %v825_v37 = vld [vmem:[%s10309_s3 + $0xed8] sm:$0xff]  ;;  %v8895_v38 = vcombine.low %v800_v23, %v808_v25  ;;  %v8897_v39 = vcombine.low %v801_v28, %v809_v29  ;;  %v8992_v23 = vcombine.high %v896_v60, %v904_v18  ;;  %v912_v28 = vld [vmem:[%s10309_s3 + $0x1190] sm:$0xff] }
 0x202   : > { %v8914_v41 = vcombine.high %v817_v56, %v825_v37  ;;  %v920_v29 = vld [vmem:[%s10309_s3 + $0x11d0] sm:$0xff] }
 0x204   : > { %6876 = vmatpush1.bf16.msra.mxu0 %v8799_v46  ;;  %7040 = vmatpush1.bf16.msra.mxu1 %v8801_v47  ;;  %v833_v46 = vld [vmem:[%s10309_s3 + $0xf18] sm:$0xff] }
 0x205   : > { %6877 = vmatprep.subr.bf16.mxu0 %v8816_v48  ;;  %7041 = vmatprep.subr.bf16.mxu1 %v8818_v49  ;;  %v841_v47 = vld [vmem:[%s10309_s3 + $0xf58] sm:$0xff]  ;;  %v8911_v48 = vcombine.low %v816_v0, %v824_v36  ;;  %v8913_v49 = vcombine.low %v817_v56, %v825_v37  ;;  %v9008_v0 = vcombine.high %v912_v28, %v920_v29  ;;  %v928_v56 = vld [vmem:[%s10309_s3 + $0x1210] sm:$0xff] }
 0x206   : > { %v8930_v51 = vcombine.high %v833_v46, %v841_v47  ;;  %v936_v37 = vld [vmem:[%s10309_s3 + $0x1250] sm:$0xff] }
 0x208   : > { %6878 = vmatpush1.bf16.msra.mxu0 %v8815_v55  ;;  %7042 = vmatpush1.bf16.msra.mxu1 %v8817_v24  ;;  %v849_v55 = vld [vmem:[%s10309_s3 + $0xf98] sm:$0xff] }
 0x209   : > { %6879 = vmatprep.subr.bf16.mxu0 %v8832_v57  ;;  %7043 = vmatprep.subr.bf16.mxu1 %v8834_v58  ;;  %v857_v24 = vld [vmem:[%s10309_s3 + $0xfd8] sm:$0xff]  ;;  %v8927_v57 = vcombine.low %v832_v43, %v840_v44  ;;  %v8929_v58 = vcombine.low %v833_v46, %v841_v47  ;;  %v9024_v43 = vcombine.high %v928_v56, %v936_v37  ;;  %v944_v46 = vld [vmem:[%s10309_s3 + $0x1290] sm:$0xff] }
 0x20a   : > { %v8946_v61 = vcombine.high %v849_v55, %v857_v24  ;;  %v952_v47 = vld [vmem:[%s10309_s3 + $0x12d0] sm:$0xff] }
 0x20c   : > { %6880 = vmatpush1.bf16.msra.mxu0 %v8831_v1  ;;  %7044 = vmatpush1.bf16.msra.mxu1 %v8833_v2  ;;  %v865_v1 = vld [vmem:[%s10309_s3 + $0x1018] sm:$0xff] }
 0x20d   : > { %6881 = vmatprep.subr.bf16.mxu0 %v8848_v4  ;;  %7045 = vmatprep.subr.bf16.mxu1 %v8850_v5  ;;  %v873_v2 = vld [vmem:[%s10309_s3 + $0x1058] sm:$0xff]  ;;  %v8943_v4 = vcombine.low %v848_v17, %v856_v53  ;;  %v8945_v5 = vcombine.low %v849_v55, %v857_v24  ;;  %v9040_v17 = vcombine.high %v944_v46, %v952_v47  ;;  %v960_v55 = vld [vmem:[%s10309_s3 + $0x1310] sm:$0xff] }
 0x20e   : > { %v8962_v7 = vcombine.high %v865_v1, %v873_v2  ;;  %v968_v24 = vld [vmem:[%s10309_s3 + $0x1350] sm:$0xff] }
 0x210   : > { %6882 = vmatpush1.bf16.msra.mxu0 %v8847_v11  ;;  %7046 = vmatpush1.bf16.msra.mxu1 %v8849_v12  ;;  %v881_v11 = vld [vmem:[%s10309_s3 + $0x1098] sm:$0xff] }
 0x211   : > { %6883 = vmatprep.subr.bf16.mxu0 %v8864_v32  ;;  %7047 = vmatprep.subr.bf16.mxu1 %v8866_v14  ;;  %v889_v12 = vld [vmem:[%s10309_s3 + $0x10d8] sm:$0xff]  ;;  %v8959_v32 = vcombine.low %v864_v62, %v872_v63  ;;  %v8961_v14 = vcombine.low %v865_v1, %v873_v2  ;;  %v9056_v62 = vcombine.high %v960_v55, %v968_v24  ;;  %v976_v1 = vld [vmem:[%s10309_s3 + $0x1390] sm:$0xff] }
 0x212   : > { %v8978_v16 = vcombine.high %v881_v11, %v889_v12  ;;  %v984_v2 = vld [vmem:[%s10309_s3 + $0x13d0] sm:$0xff] }
 0x214   : > { %6884 = vmatpush1.bf16.msra.mxu0 %v8863_v19  ;;  %7048 = vmatpush1.bf16.msra.mxu1 %v8865_v20  ;;  %v897_v19 = vld [vmem:[%s10309_s3 + $0x1118] sm:$0xff] }
 0x215   : > { %6885 = vmatprep.subr.bf16.mxu0 %v8880_v21  ;;  %7049 = vmatprep.subr.bf16.mxu1 %v8882_v22  ;;  %v905_v20 = vld [vmem:[%s10309_s3 + $0x1158] sm:$0xff]  ;;  %v8975_v21 = vcombine.low %v880_v8, %v888_v9  ;;  %v8977_v22 = vcombine.low %v881_v11, %v889_v12  ;;  %v9072_v8 = vcombine.high %v976_v1, %v984_v2  ;;  %v992_v11 = vld [vmem:[%s10309_s3 + $0x1410] sm:$0xff] }
 0x216   : > { %v8994_v25 = vcombine.high %v897_v19, %v905_v20  ;;  %v1000_v12 = vld [vmem:[%s10309_s3 + $0x1450] sm:$0xff] }
 0x218   : > { %6886 = vmatpush1.bf16.msra.mxu0 %v8879_v30  ;;  %7050 = vmatpush1.bf16.msra.mxu1 %v8881_v31  ;;  %v913_v30 = vld [vmem:[%s10309_s3 + $0x1198] sm:$0xff] }
 0x219   : > { %6887 = vmatprep.subr.bf16.mxu0 %v8896_v33  ;;  %7051 = vmatprep.subr.bf16.mxu1 %v8898_v34  ;;  %v921_v31 = vld [vmem:[%s10309_s3 + $0x11d8] sm:$0xff]  ;;  %v8991_v33 = vcombine.low %v896_v60, %v904_v18  ;;  %v8993_v34 = vcombine.low %v897_v19, %v905_v20  ;;  %v9088_v60 = vcombine.high %v992_v11, %v1000_v12  ;;  %v1008_v19 = vld [vmem:[%s10309_s3 + $0x1490] sm:$0xff] }
 0x21a   : > { %v9010_v36 = vcombine.high %v913_v30, %v921_v31  ;;  %v1016_v20 = vld [vmem:[%s10309_s3 + $0x14d0] sm:$0xff] }
 0x21c   : > { %6888 = vmatpush1.bf16.msra.mxu0 %v8895_v38  ;;  %7052 = vmatpush1.bf16.msra.mxu1 %v8897_v39  ;;  %v929_v38 = vld [vmem:[%s10309_s3 + $0x1218] sm:$0xff] }
 0x21d   : > { %6889 = vmatprep.subr.bf16.mxu0 %v8912_v40  ;;  %7053 = vmatprep.subr.bf16.mxu1 %v8914_v41  ;;  %v937_v39 = vld [vmem:[%s10309_s3 + $0x1258] sm:$0xff]  ;;  %v9007_v40 = vcombine.low %v912_v28, %v920_v29  ;;  %v9009_v41 = vcombine.low %v913_v30, %v921_v31  ;;  %v9104_v28 = vcombine.high %v1008_v19, %v1016_v20  ;;  %v1024_v30 = vld [vmem:[%s10309_s3 + $0x1510] sm:$0xff] }
 0x21e   : > { %v9026_v44 = vcombine.high %v929_v38, %v937_v39  ;;  %v1032_v31 = vld [vmem:[%s10309_s3 + $0x1550] sm:$0xff] }
 0x220   : > { %6890 = vmatpush1.bf16.msra.mxu0 %v8911_v48  ;;  %7054 = vmatpush1.bf16.msra.mxu1 %v8913_v49  ;;  %v945_v48 = vld [vmem:[%s10309_s3 + $0x1298] sm:$0xff] }
 0x221   : > { %6891 = vmatprep.subr.bf16.mxu0 %v8928_v50  ;;  %7055 = vmatprep.subr.bf16.mxu1 %v8930_v51  ;;  %v953_v49 = vld [vmem:[%s10309_s3 + $0x12d8] sm:$0xff]  ;;  %v9023_v50 = vcombine.low %v928_v56, %v936_v37  ;;  %v9025_v51 = vcombine.low %v929_v38, %v937_v39  ;;  %v9120_v56 = vcombine.high %v1024_v30, %v1032_v31  ;;  %v1040_v38 = vld [vmem:[%s10309_s3 + $0x1590] sm:$0xff] }
 0x222   : > { %v9042_v53 = vcombine.high %v945_v48, %v953_v49  ;;  %v1048_v39 = vld [vmem:[%s10309_s3 + $0x15d0] sm:$0xff] }
 0x224   : > { %6892 = vmatpush1.bf16.msra.mxu0 %v8927_v57  ;;  %7056 = vmatpush1.bf16.msra.mxu1 %v8929_v58  ;;  %v961_v57 = vld [vmem:[%s10309_s3 + $0x1318] sm:$0xff] }
 0x225   : > { %6893 = vmatprep.subr.bf16.mxu0 %v8944_v59  ;;  %7057 = vmatprep.subr.bf16.mxu1 %v8946_v61  ;;  %v969_v58 = vld [vmem:[%s10309_s3 + $0x1358] sm:$0xff]  ;;  %v9039_v59 = vcombine.low %v944_v46, %v952_v47  ;;  %v9041_v61 = vcombine.low %v945_v48, %v953_v49  ;;  %v9136_v46 = vcombine.high %v1040_v38, %v1048_v39  ;;  %v1056_v48 = vld [vmem:[%s10309_s3 + $0x1610] sm:$0xff] }
 0x226   : > { %v9058_v63 = vcombine.high %v961_v57, %v969_v58  ;;  %v1064_v49 = vld [vmem:[%s10309_s3 + $0x1650] sm:$0xff] }
 0x228   : > { %6894 = vmatpush1.bf16.msra.mxu0 %v8943_v4  ;;  %7058 = vmatpush1.bf16.msra.mxu1 %v8945_v5  ;;  %v977_v4 = vld [vmem:[%s10309_s3 + $0x1398] sm:$0xff] }
 0x229   : > { %6904 = vmatprep.subr.bf16.mxu0 %v8960_v6  ;;  %7068 = vmatprep.subr.bf16.mxu1 %v8962_v7  ;;  %v985_v5 = vld [vmem:[%s10309_s3 + $0x13d8] sm:$0xff]  ;;  %v9055_v6 = vcombine.low %v960_v55, %v968_v24  ;;  %v9057_v7 = vcombine.low %v961_v57, %v969_v58  ;;  %v9152_v55 = vcombine.high %v1056_v48, %v1064_v49  ;;  %v1072_v57 = vld [vmem:[%s10309_s3 + $0x1690] sm:$0xff] }
 0x22a   : > { %v9074_v9 = vcombine.high %v977_v4, %v985_v5  ;;  %v1080_v58 = vld [vmem:[%s10309_s3 + $0x16d0] sm:$0xff] }
 0x22b   : > { %6896 = vmatmul.mubr.bf16.vlgmr.msra.gmra.mrb[4].mxu0 %v10511_v42  ;;  %7060 = vmatmul.mubr.bf16.vlgmr.msra.gmra.mrb[4].mxu1 %v10511_v42 }
 0x22c   : > { %6905 = vmatpush1.bf16.msra.mxu0 %v8959_v32  ;;  %7069 = vmatpush1.bf16.msra.mxu1 %v8961_v14  ;;  %v993_v32 = vld [vmem:[%s10309_s3 + $0x1418] sm:$0xff] }
 0x22d   : > { %6906 = vmatprep.subr.bf16.mxu0 %v8976_v15  ;;  %7070 = vmatprep.subr.bf16.mxu1 %v8978_v16  ;;  %v1001_v14 = vld [vmem:[%s10309_s3 + $0x1458] sm:$0xff]  ;;  %v9071_v15 = vcombine.low %v976_v1, %v984_v2  ;;  %v9073_v16 = vcombine.low %v977_v4, %v985_v5  ;;  %v9168_v1 = vcombine.high %v1072_v57, %v1080_v58  ;;  %v1088_v4 = vld [vmem:[%s10309_s3 + $0x1710] sm:$0xff] }
 0x22e   : > { %6936 = vmatprep.mubr.bf16.mxu0 %v10517_v52  ;;  %7100 = vmatprep.mubr.bf16.mxu1 %v10517_v52  ;;  %v9090_v18 = vcombine.high %v993_v32, %v1001_v14  ;;  %v1096_v5 = vld [vmem:[%s10309_s3 + $0x1750] sm:$0xff] }
 0x230   : > { %6907 = vmatpush1.bf16.msra.mxu0 %v8975_v21  ;;  %7071 = vmatpush1.bf16.msra.mxu1 %v8977_v22  ;;  %v1009_v21 = vld [vmem:[%s10309_s3 + $0x1498] sm:$0xff] }
 0x231   : > { %6908 = vmatprep.subr.bf16.mxu0 %v8992_v23  ;;  %7072 = vmatprep.subr.bf16.mxu1 %v8994_v25  ;;  %v1017_v22 = vld [vmem:[%s10309_s3 + $0x14d8] sm:$0xff]  ;;  %v9087_v23 = vcombine.low %v992_v11, %v1000_v12  ;;  %v9089_v25 = vcombine.low %v993_v32, %v1001_v14  ;;  %v9184_v11 = vcombine.high %v1088_v4, %v1096_v5  ;;  %v1104_v32 = vld [vmem:[%s10309_s3 + $0x1790] sm:$0xff] }
 0x232   : > { %v9106_v29 = vcombine.high %v1009_v21, %v1017_v22  ;;  %v1112_v14 = vld [vmem:[%s10309_s3 + $0x17d0] sm:$0xff] }
 0x234   : > { %6909 = vmatpush1.bf16.msra.mxu0 %v8991_v33  ;;  %7073 = vmatpush1.bf16.msra.mxu1 %v8993_v34  ;;  %v1025_v33 = vld [vmem:[%s10309_s3 + $0x1518] sm:$0xff] }
 0x235   : > { %6910 = vmatprep.subr.bf16.mxu0 %v9008_v0  ;;  %7074 = vmatprep.subr.bf16.mxu1 %v9010_v36  ;;  %v1033_v34 = vld [vmem:[%s10309_s3 + $0x1558] sm:$0xff]  ;;  %v9103_v0 = vcombine.low %v1008_v19, %v1016_v20  ;;  %v9105_v36 = vcombine.low %v1009_v21, %v1017_v22  ;;  %v9200_v19 = vcombine.high %v1104_v32, %v1112_v14  ;;  %v1120_v21 = vld [vmem:[%s10309_s3 + $0x1810] sm:$0xff] }
 0x236   : > { %v9122_v37 = vcombine.high %v1025_v33, %v1033_v34  ;;  %v1128_v22 = vld [vmem:[%s10309_s3 + $0x1850] sm:$0xff] }
 0x238   : > { %6911 = vmatpush1.bf16.msra.mxu0 %v9007_v40  ;;  %7075 = vmatpush1.bf16.msra.mxu1 %v9009_v41  ;;  %v1041_v40 = vld [vmem:[%s10309_s3 + $0x1598] sm:$0xff] }
 0x239   : > { %6912 = vmatprep.subr.bf16.mxu0 %v9024_v43  ;;  %7076 = vmatprep.subr.bf16.mxu1 %v9026_v44  ;;  %v1049_v41 = vld [vmem:[%s10309_s3 + $0x15d8] sm:$0xff]  ;;  %v9119_v43 = vcombine.low %v1024_v30, %v1032_v31  ;;  %v9121_v44 = vcombine.low %v1025_v33, %v1033_v34  ;;  %v9216_v30 = vcombine.high %v1120_v21, %v1128_v22  ;;  %v1136_v33 = vld [vmem:[%s10309_s3 + $0x1890] sm:$0xff] }
 0x23a   : > { %v9138_v47 = vcombine.high %v1041_v40, %v1049_v41  ;;  %v1144_v34 = vld [vmem:[%s10309_s3 + $0x18d0] sm:$0xff] }
 0x23c   : > { %6913 = vmatpush1.bf16.msra.mxu0 %v9023_v50  ;;  %7077 = vmatpush1.bf16.msra.mxu1 %v9025_v51  ;;  %v1057_v50 = vld [vmem:[%s10309_s3 + $0x1618] sm:$0xff] }
 0x23d   : > { %6914 = vmatprep.subr.bf16.mxu0 %v9040_v17  ;;  %7078 = vmatprep.subr.bf16.mxu1 %v9042_v53  ;;  %v1065_v51 = vld [vmem:[%s10309_s3 + $0x1658] sm:$0xff]  ;;  %v9135_v17 = vcombine.low %v1040_v38, %v1048_v39  ;;  %v9137_v53 = vcombine.low %v1041_v40, %v1049_v41  ;;  %v9232_v38 = vcombine.high %v1136_v33, %v1144_v34  ;;  %v1152_v40 = vld [vmem:[%s10309_s3 + $0x1910] sm:$0xff] }
 0x23e   : > { %v9154_v24 = vcombine.high %v1057_v50, %v1065_v51  ;;  %v1160_v41 = vld [vmem:[%s10309_s3 + $0x1950] sm:$0xff] }
 0x240   : > { %6915 = vmatpush1.bf16.msra.mxu0 %v9039_v59  ;;  %7079 = vmatpush1.bf16.msra.mxu1 %v9041_v61  ;;  %v1073_v59 = vld [vmem:[%s10309_s3 + $0x1698] sm:$0xff] }
 0x241   : > { %6916 = vmatprep.subr.bf16.mxu0 %v9056_v62  ;;  %7080 = vmatprep.subr.bf16.mxu1 %v9058_v63  ;;  %v1081_v61 = vld [vmem:[%s10309_s3 + $0x16d8] sm:$0xff]  ;;  %v9151_v62 = vcombine.low %v1056_v48, %v1064_v49  ;;  %v9153_v63 = vcombine.low %v1057_v50, %v1065_v51  ;;  %v9248_v48 = vcombine.high %v1152_v40, %v1160_v41  ;;  %v1168_v50 = vld [vmem:[%s10309_s3 + $0x1990] sm:$0xff] }
 0x242   : > { %v9170_v2 = vcombine.high %v1073_v59, %v1081_v61  ;;  %v1176_v51 = vld [vmem:[%s10309_s3 + $0x19d0] sm:$0xff] }
 0x244   : > { %6917 = vmatpush1.bf16.msra.mxu0 %v9055_v6  ;;  %7081 = vmatpush1.bf16.msra.mxu1 %v9057_v7  ;;  %v1089_v6 = vld [vmem:[%s10309_s3 + $0x1718] sm:$0xff] }
 0x245   : > { %6918 = vmatprep.subr.bf16.mxu0 %v9072_v8  ;;  %7082 = vmatprep.subr.bf16.mxu1 %v9074_v9  ;;  %v1097_v7 = vld [vmem:[%s10309_s3 + $0x1758] sm:$0xff]  ;;  %v9167_v8 = vcombine.low %v1072_v57, %v1080_v58  ;;  %v9169_v9 = vcombine.low %v1073_v59, %v1081_v61  ;;  %v9264_v57 = vcombine.high %v1168_v50, %v1176_v51  ;;  %v1184_v59 = vld [vmem:[%s10309_s3 + $0x1a10] sm:$0xff] }
 0x246   : > { %v9186_v12 = vcombine.high %v1089_v6, %v1097_v7  ;;  %v1192_v61 = vld [vmem:[%s10309_s3 + $0x1a50] sm:$0xff] }
 0x248   : > { %6919 = vmatpush1.bf16.msra.mxu0 %v9071_v15  ;;  %7083 = vmatpush1.bf16.msra.mxu1 %v9073_v16  ;;  %v1105_v15 = vld [vmem:[%s10309_s3 + $0x1798] sm:$0xff] }
 0x249   : > { %6920 = vmatprep.subr.bf16.mxu0 %v9088_v60  ;;  %7084 = vmatprep.subr.bf16.mxu1 %v9090_v18  ;;  %v1113_v16 = vld [vmem:[%s10309_s3 + $0x17d8] sm:$0xff]  ;;  %v9183_v60 = vcombine.low %v1088_v4, %v1096_v5  ;;  %v9185_v18 = vcombine.low %v1089_v6, %v1097_v7  ;;  %v9280_v4 = vcombine.high %v1184_v59, %v1192_v61  ;;  %v1200_v6 = vld [vmem:[%s10309_s3 + $0x1a90] sm:$0xff] }
 0x24a   : > { %v9202_v20 = vcombine.high %v1105_v15, %v1113_v16  ;;  %v1208_v7 = vld [vmem:[%s10309_s3 + $0x1ad0] sm:$0xff] }
 0x24c   : > { %6921 = vmatpush1.bf16.msra.mxu0 %v9087_v23  ;;  %7085 = vmatpush1.bf16.msra.mxu1 %v9089_v25  ;;  %v1121_v23 = vld [vmem:[%s10309_s3 + $0x1818] sm:$0xff] }
 0x24d   : > { %6922 = vmatprep.subr.bf16.mxu0 %v9104_v28  ;;  %7086 = vmatprep.subr.bf16.mxu1 %v9106_v29  ;;  %v1129_v25 = vld [vmem:[%s10309_s3 + $0x1858] sm:$0xff]  ;;  %v9199_v28 = vcombine.low %v1104_v32, %v1112_v14  ;;  %v9201_v29 = vcombine.low %v1105_v15, %v1113_v16  ;;  %v9296_v32 = vcombine.high %v1200_v6, %v1208_v7  ;;  %v1216_v15 = vld [vmem:[%s10309_s3 + $0x1b10] sm:$0xff] }
 0x24e   : > { %v9218_v31 = vcombine.high %v1121_v23, %v1129_v25  ;;  %v1224_v16 = vld [vmem:[%s10309_s3 + $0x1b50] sm:$0xff] }
 0x250   : > { %6923 = vmatpush1.bf16.msra.mxu0 %v9103_v0  ;;  %7087 = vmatpush1.bf16.msra.mxu1 %v9105_v36  ;;  %v1137_v0 = vld [vmem:[%s10309_s3 + $0x1898] sm:$0xff] }
 0x251   : > { %6924 = vmatprep.subr.bf16.mxu0 %v9120_v56  ;;  %7088 = vmatprep.subr.bf16.mxu1 %v9122_v37  ;;  %v1145_v36 = vld [vmem:[%s10309_s3 + $0x18d8] sm:$0xff]  ;;  %v9215_v56 = vcombine.low %v1120_v21, %v1128_v22  ;;  %v9217_v37 = vcombine.low %v1121_v23, %v1129_v25  ;;  %v9312_v21 = vcombine.high %v1216_v15, %v1224_v16  ;;  %v1232_v25 = vld [vmem:[%s10309_s3 + $0x1b90] sm:$0xff] }
 0x252   : > { %v9234_v39 = vcombine.high %v1137_v0, %v1145_v36 }
 0x254   : > { %6925 = vmatpush1.bf16.msra.mxu0 %v9119_v43  ;;  %7089 = vmatpush1.bf16.msra.mxu1 %v9121_v44  ;;  %v1153_v43 = vld [vmem:[%s10309_s3 + $0x1918] sm:$0xff] }
 0x255   : > { %6926 = vmatprep.subr.bf16.mxu0 %v9136_v46  ;;  %7090 = vmatprep.subr.bf16.mxu1 %v9138_v47  ;;  %v1161_v44 = vld [vmem:[%s10309_s3 + $0x1958] sm:$0xff]  ;;  %v9231_v46 = vcombine.low %v1136_v33, %v1144_v34  ;;  %v9233_v47 = vcombine.low %v1137_v0, %v1145_v36 }
 0x256   : > { %v9250_v49 = vcombine.high %v1153_v43, %v1161_v44  ;;  %v1241_v33 = vld [vmem:[%s10309_s3 + $0x1bd8] sm:$0xff] }
 0x258   : > { %6927 = vmatpush1.bf16.msra.mxu0 %v9135_v17  ;;  %7091 = vmatpush1.bf16.msra.mxu1 %v9137_v53  ;;  %v1169_v17 = vld [vmem:[%s10309_s3 + $0x1998] sm:$0xff] }
 0x259   : > { %6928 = vmatprep.subr.bf16.mxu0 %v9152_v55  ;;  %7092 = vmatprep.subr.bf16.mxu1 %v9154_v24  ;;  %v1177_v53 = vld [vmem:[%s10309_s3 + $0x19d8] sm:$0xff]  ;;  %v9247_v55 = vcombine.low %v1152_v40, %v1160_v41  ;;  %v9249_v24 = vcombine.low %v1153_v43, %v1161_v44 }
 0x25a   : > { %v9266_v58 = vcombine.high %v1169_v17, %v1177_v53 }
 0x25c   : > { %6929 = vmatpush1.bf16.msra.mxu0 %v9151_v62  ;;  %7093 = vmatpush1.bf16.msra.mxu1 %v9153_v63  ;;  %v1185_v62 = vld [vmem:[%s10309_s3 + $0x1a18] sm:$0xff] }
 0x25d   : > { %6930 = vmatprep.subr.bf16.mxu0 %v9168_v1  ;;  %7094 = vmatprep.subr.bf16.mxu1 %v9170_v2  ;;  %v1193_v63 = vld [vmem:[%s10309_s3 + $0x1a58] sm:$0xff]  ;;  %v9263_v1 = vcombine.low %v1168_v50, %v1176_v51  ;;  %v9265_v2 = vcombine.low %v1169_v17, %v1177_v53  ;;  %v346_v17 = vld [vmem:[#allocation2] sm:$0xff] }
 0x25e   : > { %v9282_v5 = vcombine.high %v1185_v62, %v1193_v63  ;;  %v1249_v50 = vld [vmem:[%s10309_s3 + $0x1c18] sm:$0xff] }
 0x25f   : > { %v1257_v51 = vld [vmem:[%s10309_s3 + $0x1c58] sm:$0xff] }
 0x260   : > { %6931 = vmatpush1.bf16.msra.mxu0 %v9167_v8  ;;  %7095 = vmatpush1.bf16.msra.mxu1 %v9169_v9  ;;  %v1201_v8 = vld [vmem:[%s10309_s3 + $0x1a98] sm:$0xff] }
 0x261   : > { %6932 = vmatprep.subr.bf16.mxu0 %v9184_v11  ;;  %7096 = vmatprep.subr.bf16.mxu1 %v9186_v12  ;;  %v1209_v9 = vld [vmem:[%s10309_s3 + $0x1ad8] sm:$0xff]  ;;  %v9279_v11 = vcombine.low %v1184_v59, %v1192_v61  ;;  %v9281_v12 = vcombine.low %v1185_v62, %v1193_v63  ;;  %v1264_v59 = vld [vmem:[%s10309_s3 + $0x1c90] sm:$0xff] }
 0x262   : > { %v9298_v14 = vcombine.high %v1201_v8, %v1209_v9  ;;  %v1272_v61 = vld [vmem:[%s10309_s3 + $0x1cd0] sm:$0xff]  ;;  %v1265_v63 = vld [vmem:[%s10309_s3 + $0x1c98] sm:$0xff] }
 0x264   : > { %6933 = vmatpush1.bf16.msra.mxu0 %v9183_v60  ;;  %7097 = vmatpush1.bf16.msra.mxu1 %v9185_v18  ;;  %v1217_v60 = vld [vmem:[%s10309_s3 + $0x1b18] sm:$0xff] }
 0x265   : > { %6934 = vmatprep.subr.bf16.mxu0 %v9200_v19  ;;  %7098 = vmatprep.subr.bf16.mxu1 %v9202_v20  ;;  %v1225_v18 = vld [vmem:[%s10309_s3 + $0x1b58] sm:$0xff]  ;;  %v9295_v19 = vcombine.low %v1200_v6, %v1208_v7  ;;  %v9297_v20 = vcombine.low %v1201_v8, %v1209_v9  ;;  %v1280_v7 = vld [vmem:[%s10309_s3 + $0x1d10] sm:$0xff] }
 0x266   : > { %v9314_v23 = vcombine.high %v1217_v60, %v1225_v18  ;;  %v9313_v40 = vcombine.low %v1217_v60, %v1225_v18  ;;  %v1288_v8 = vld [vmem:[%s10309_s3 + $0x1d50] sm:$0xff]  ;;  %v1281_v9 = vld [vmem:[%s10309_s3 + $0x1d18] sm:$0xff] }
 0x267   : > { %v1304_v60 = vld [vmem:[%s10309_s3 + $0x1dd0] sm:$0xff]  ;;  %v1297_v18 = vld [vmem:[%s10309_s3 + $0x1d98] sm:$0xff] }
 0x268   : > { %6935 = vmatpush1.bf16.msra.mxu0 %v9199_v28  ;;  %7099 = vmatpush1.bf16.msra.mxu1 %v9201_v29  ;;  %v1240_v28 = vld [vmem:[%s10309_s3 + $0x1bd0] sm:$0xff] }
 0x269   : > { %6945 = vmatprep.subr.bf16.mxu0 %v9216_v30  ;;  %7109 = vmatprep.subr.bf16.mxu1 %v9218_v31  ;;  %v1233_v31 = vld [vmem:[%s10309_s3 + $0x1b98] sm:$0xff]  ;;  %v9328_v41 = vcombine.high %v1232_v25, %v1240_v28  ;;  %v9327_v53 = vcombine.low %v1232_v25, %v1240_v28  ;;  %v1312_v25 = vld [vmem:[%s10309_s3 + $0x1e10] sm:$0xff] }
 0x26a   : > { %v1320_v28 = vld [vmem:[%s10309_s3 + $0x1e50] sm:$0xff] }
 0x26b   : > { %6937 = vmatmul.mubr.bf16.vlgmr.msra.gmra.mrb[4].mxu0 %v10592_v3  ;;  %7101 = vmatmul.mubr.bf16.vlgmr.msra.gmra.mrb[4].mxu1 %v10592_v3 }
 0x26c   : > { %6946 = vmatpush1.bf16.msra.mxu0 %v9215_v56  ;;  %7110 = vmatpush1.bf16.msra.mxu1 %v9217_v37  ;;  %v9311_v56 = vcombine.low %v1216_v15, %v1224_v16  ;;  %v1296_v16 = vld [vmem:[%s10309_s3 + $0x1d90] sm:$0xff] }
 0x26d   : > { %6947 = vmatprep.subr.bf16.mxu0 %v9232_v38  ;;  %7111 = vmatprep.subr.bf16.mxu1 %v9234_v39 }
 0x26e   : > { %6977 = vmatprep.mubr.bf16.mxu0 %v10598_v13  ;;  %7141 = vmatprep.mubr.bf16.mxu1 %v10598_v13 }
 0x270   : > { %6948 = vmatpush1.bf16.msra.mxu0 %v9231_v46  ;;  %7112 = vmatpush1.bf16.msra.mxu1 %v9233_v47  ;;  %v9330_v46 = vcombine.high %v1233_v31, %v1241_v33  ;;  %v1248_v47 = vld [vmem:[%s10309_s3 + $0x1c10] sm:$0xff] }
 0x271   : > { %6949 = vmatprep.subr.bf16.mxu0 %v9248_v48  ;;  %7113 = vmatprep.subr.bf16.mxu1 %v9250_v49  ;;  %v1256_v48 = vld [vmem:[%s10309_s3 + $0x1c50] sm:$0xff] }
 0x274   : > { %6950 = vmatpush1.bf16.msra.mxu0 %v9247_v55  ;;  %7114 = vmatpush1.bf16.msra.mxu1 %v9249_v24  ;;  %v9329_v24 = vcombine.low %v1233_v31, %v1241_v33  ;;  %v9391_v31 = vcombine.low %v1296_v16, %v1304_v60 }
 0x275   : > { %6951 = vmatprep.subr.bf16.mxu0 %v9264_v57  ;;  %7115 = vmatprep.subr.bf16.mxu1 %v9266_v58  ;;  %v9344_v57 = vcombine.high %v1248_v47, %v1256_v48  ;;  %v9346_v58 = vcombine.high %v1249_v50, %v1257_v51 }
 0x278   : > { %6952 = vmatpush1.bf16.msra.mxu0 %v9263_v1  ;;  %7116 = vmatpush1.bf16.msra.mxu1 %v9265_v2  ;;  %v1273_v1 = vld [vmem:[%s10309_s3 + $0x1cd8] sm:$0xff]  ;;  %v9343_v2 = vcombine.low %v1248_v47, %v1256_v48 }
 0x279   : > { %6953 = vmatprep.subr.bf16.mxu0 %v9280_v4  ;;  %7117 = vmatprep.subr.bf16.mxu1 %v9282_v5  ;;  %v9345_v4 = vcombine.low %v1249_v50, %v1257_v51  ;;  %v9360_v5 = vcombine.high %v1264_v59, %v1272_v61  ;;  %v9362_v6 = vcombine.high %v1265_v63, %v1273_v1  ;;  %v1345_v47 = vld [vmem:[%s10309_s3 + $0x1f18] sm:$0xff] }
 0x27a   : > { %v1353_v48 = vld [vmem:[%s10309_s3 + $0x1f58] sm:$0xff] }
 0x27c   : > { %6954 = vmatpush1.bf16.msra.mxu0 %v9279_v11  ;;  %7118 = vmatpush1.bf16.msra.mxu1 %v9281_v12  ;;  %v1289_v11 = vld [vmem:[%s10309_s3 + $0x1d58] sm:$0xff]  ;;  %v9359_v12 = vcombine.low %v1264_v59, %v1272_v61  ;;  %v9441_v59 = vcombine.low %v1345_v47, %v1353_v48 }
 0x27d   : > { %6955 = vmatprep.subr.bf16.mxu0 %v9296_v32  ;;  %7119 = vmatprep.subr.bf16.mxu1 %v9298_v14  ;;  %v9361_v32 = vcombine.low %v1265_v63, %v1273_v1  ;;  %v9376_v14 = vcombine.high %v1280_v7, %v1288_v8  ;;  %v9378_v15 = vcombine.high %v1281_v9, %v1289_v11  ;;  %v354_v63 = vld [vmem:[%s10309_s3 + $0x20] sm:$0xff] }
 0x27e   : > { %v6651_v22 = vpop.f32.mrb[0].mxu0  ;;  %v6815_v29 = vpop.f32.mrb[0].mxu1  ;;  %v362_v1 = vld [vmem:[%s10309_s3 + $0x60] sm:$0xff] }
 0x27f   : > { %v6653_v30 = vpop.f32.mrb[1].mxu0  ;;  %v6817_v0 = vpop.f32.mrb[1].mxu1 }
 0x280   : > { %v7822_v34 = vcombine.low %v6651_v22, %v6653_v30  ;;  %v6655_v36 = vpop.f32.mrb[2].mxu0  ;;  %6956 = vmatpush1.bf16.msra.mxu0 %v9295_v19  ;;  %v7823_v37 = vcombine.low %v6815_v29, %v6817_v0  ;;  %v6819_v38 = vpop.f32.mrb[2].mxu1  ;;  %7120 = vmatpush1.bf16.msra.mxu1 %v9297_v20  ;;  %v1305_v19 = vld [vmem:[%s10309_s3 + $0x1dd8] sm:$0xff]  ;;  %v9375_v20 = vcombine.low %v1280_v7, %v1288_v8 }
 0x281   : > { %v6656_v39 = vpop.f32.mrb[3].mxu0  ;;  %6957 = vmatprep.subr.bf16.mxu0 %v9312_v21  ;;  %v6820_v44 = vpop.f32.mrb[3].mxu1  ;;  %7121 = vmatprep.subr.bf16.mxu1 %v9314_v23  ;;  %v9377_v21 = vcombine.low %v1281_v9, %v1289_v11  ;;  %v9392_v22 = vcombine.high %v1296_v16, %v1304_v60  ;;  %v9394_v23 = vcombine.high %v1297_v18, %v1305_v19  ;;  %v1313_v29 = vld [vmem:[%s10309_s3 + $0x1e18] sm:$0xff]  ;;  %v1328_v36 = vld [vmem:[%s10309_s3 + $0x1e90] sm:$0xff]  ;;  %v370_v9 = vld [vmem:[%s10309_s3 + $0xa0] sm:$0xff] }
 0x282   : > { %v7830_v43 = vrot.slane %v7822_v34, %v10358_v54  ;;  %v7837_v49 = vrot.slane %v7823_v37, %v10358_v54  ;;  %v1321_v30 = vld [vmem:[%s10309_s3 + $0x1e58] sm:$0xff]  ;;  %v9393_v33 = vcombine.low %v1297_v18, %v1305_v19  ;;  %v9408_v34 = vcombine.high %v1312_v25, %v1320_v28  ;;  %v1344_v44 = vld [vmem:[%s10309_s3 + $0x1f10] sm:$0xff]  ;;  %v378_v11 = vld [vmem:[%s10309_s3 + $0xe0] sm:$0xff] }
 0x283   : > { %v9410_v0 = vcombine.high %v1313_v29, %v1321_v30  ;;  %v1329_v37 = vld [vmem:[%s10309_s3 + $0x1e98] sm:$0xff]  ;;  %v9407_v39 = vcombine.low %v1312_v25, %v1320_v28  ;;  %v8452_v7 = vcombine.high %v354_v63, %v362_v1  ;;  %v8468_v16 = vcombine.high %v370_v9, %v378_v11  ;;  %v386_v18 = vld [vmem:[%s10309_s3 + $0x120] sm:$0xff] }
 0x284   : > { %6958 = vmatpush1.bf16.msra.mxu0 %v9311_v56  ;;  %v7838_v55 = vcombine.low %v7830_v43, %v7837_v49  ;;  %7122 = vmatpush1.bf16.msra.mxu1 %v9313_v40  ;;  %v1336_v56 = vld [vmem:[%s10309_s3 + $0x1ed0] sm:$0xff]  ;;  %v1337_v38 = vld [vmem:[%s10309_s3 + $0x1ed8] sm:$0xff]  ;;  %v9409_v40 = vcombine.low %v1313_v29, %v1321_v30  ;;  %v394_v19 = vld [vmem:[%s10309_s3 + $0x160] sm:$0xff] }
 0x285   : > { %6959 = vmatprep.subr.bf16.mxu0 %v9328_v41  ;;  %7123 = vmatprep.subr.bf16.mxu1 %v9330_v46  ;;  %v9424_v41 = vcombine.high %v1328_v36, %v1336_v56  ;;  %v9426_v43 = vcombine.high %v1329_v37, %v1337_v38  ;;  %v1352_v46 = vld [vmem:[%s10309_s3 + $0x1f50] sm:$0xff]  ;;  %v9423_v49 = vcombine.low %v1328_v36, %v1336_v56  ;;  %v402_v29 = vld [vmem:[%s10309_s3 + $0x1a0] sm:$0xff] }
 0x286   : > { %v7894_v62 = vadd.f32 %v7838_v55, %v346_v17  ;;  %v9425_v50 = vcombine.low %v1329_v37, %v1337_v38  ;;  %v9440_v51 = vcombine.high %v1344_v44, %v1352_v46  ;;  %v9442_v17 = vcombine.high %v1345_v47, %v1353_v48  ;;  %v1368_v55 = vld [vmem:[%s10309_s3 + $0x1fd0] sm:$0xff]  ;;  %v410_v30 = vld [vmem:[%s10309_s3 + $0x1e0] sm:$0xff] }
 0x287   : > { %v8484_v25 = vcombine.high %v386_v18, %v394_v19  ;;  %v8500_v36 = vcombine.high %v402_v29, %v410_v30  ;;  %v418_v37 = vld [vmem:[%s10309_s3 + $0x220] sm:$0xff] }
 0x288   : > { %6960 = vmatpush1.bf16.msra.mxu0 %v9327_v53  ;;  %7898 = vst [vmem:[#allocation2] sm:$0xff] %v7894_v62  ;;  %7124 = vmatpush1.bf16.msra.mxu1 %v9329_v24  ;;  %v1360_v53 = vld [vmem:[%s10309_s3 + $0x1f90] sm:$0xff]  ;;  %v1361_v24 = vld [vmem:[%s10309_s3 + $0x1f98] sm:$0xff]  ;;  %v426_v38 = vld [vmem:[%s10309_s3 + $0x260] sm:$0xff] }
 0x289   : > { %6961 = vmatprep.subr.bf16.mxu0 %v9344_v57  ;;  %7125 = vmatprep.subr.bf16.mxu1 %v9346_v58  ;;  %v1369_v57 = vld [vmem:[%s10309_s3 + $0x1fd8] sm:$0xff]  ;;  %v9439_v58 = vcombine.low %v1344_v44, %v1352_v46  ;;  %v9456_v61 = vcombine.high %v1360_v53, %v1368_v55  ;;  %v8516_v44 = vcombine.high %v418_v37, %v426_v38  ;;  %v434_v47 = vld [vmem:[%s10309_s3 + $0x2a0] sm:$0xff] }
 0x28a   : > { %v9458_v62 = vcombine.high %v1361_v24, %v1369_v57  ;;  %v442_v48 = vld [vmem:[%s10309_s3 + $0x2e0] sm:$0xff] }
 0x28c   : > { %6962 = vmatpush1.bf16.msra.mxu0 %v9343_v2  ;;  %7126 = vmatpush1.bf16.msra.mxu1 %v9345_v4  ;;  %v355_v2 = vld [vmem:[%s10309_s3 + $0x28] sm:$0xff] }
 0x28d   : > { %6963 = vmatprep.subr.bf16.mxu0 %v9360_v5  ;;  %7127 = vmatprep.subr.bf16.mxu1 %v9362_v6  ;;  %v363_v4 = vld [vmem:[%s10309_s3 + $0x68] sm:$0xff]  ;;  %v9455_v5 = vcombine.low %v1360_v53, %v1368_v55  ;;  %v9457_v6 = vcombine.low %v1361_v24, %v1369_v57  ;;  %v8532_v53 = vcombine.high %v434_v47, %v442_v48  ;;  %v450_v24 = vld [vmem:[%s10309_s3 + $0x320] sm:$0xff] }
 0x28e   : > { %v8454_v8 = vcombine.high %v355_v2, %v363_v4  ;;  %v458_v57 = vld [vmem:[%s10309_s3 + $0x360] sm:$0xff] }
 0x290   : > { %6964 = vmatpush1.bf16.msra.mxu0 %v9359_v12  ;;  %7128 = vmatpush1.bf16.msra.mxu1 %v9361_v32  ;;  %v371_v12 = vld [vmem:[%s10309_s3 + $0xa8] sm:$0xff] }
 0x291   : > { %6965 = vmatprep.subr.bf16.mxu0 %v9376_v14  ;;  %7129 = vmatprep.subr.bf16.mxu1 %v9378_v15  ;;  %v379_v32 = vld [vmem:[%s10309_s3 + $0xe8] sm:$0xff]  ;;  %v8451_v14 = vcombine.low %v354_v63, %v362_v1  ;;  %v8453_v15 = vcombine.low %v355_v2, %v363_v4  ;;  %v8548_v63 = vcombine.high %v450_v24, %v458_v57  ;;  %v466_v2 = vld [vmem:[%s10309_s3 + $0x3a0] sm:$0xff] }
 0x292   : > { %v8470_v60 = vcombine.high %v371_v12, %v379_v32  ;;  %v474_v4 = vld [vmem:[%s10309_s3 + $0x3e0] sm:$0xff] }
 0x294   : > { %6966 = vmatpush1.bf16.msra.mxu0 %v9375_v20  ;;  %7130 = vmatpush1.bf16.msra.mxu1 %v9377_v21  ;;  %v387_v20 = vld [vmem:[%s10309_s3 + $0x128] sm:$0xff] }
 0x295   : > { %6967 = vmatprep.subr.bf16.mxu0 %v9392_v22  ;;  %7131 = vmatprep.subr.bf16.mxu1 %v9394_v23  ;;  %v395_v21 = vld [vmem:[%s10309_s3 + $0x168] sm:$0xff]  ;;  %v8467_v22 = vcombine.low %v370_v9, %v378_v11  ;;  %v8469_v23 = vcombine.low %v371_v12, %v379_v32  ;;  %v8564_v9 = vcombine.high %v466_v2, %v474_v4  ;;  %v482_v12 = vld [vmem:[%s10309_s3 + $0x420] sm:$0xff] }
 0x296   : > { %v8486_v28 = vcombine.high %v387_v20, %v395_v21  ;;  %v490_v32 = vld [vmem:[%s10309_s3 + $0x460] sm:$0xff] }
 0x298   : > { %6968 = vmatpush1.bf16.msra.mxu0 %v9391_v31  ;;  %7132 = vmatpush1.bf16.msra.mxu1 %v9393_v33  ;;  %v403_v31 = vld [vmem:[%s10309_s3 + $0x1a8] sm:$0xff] }
 0x299   : > { %6969 = vmatprep.subr.bf16.mxu0 %v9408_v34  ;;  %7133 = vmatprep.subr.bf16.mxu1 %v9410_v0  ;;  %v411_v33 = vld [vmem:[%s10309_s3 + $0x1e8] sm:$0xff]  ;;  %v8483_v34 = vcombine.low %v386_v18, %v394_v19  ;;  %v8485_v0 = vcombine.low %v387_v20, %v395_v21  ;;  %v8580_v18 = vcombine.high %v482_v12, %v490_v32  ;;  %v498_v20 = vld [vmem:[%s10309_s3 + $0x4a0] sm:$0xff] }
 0x29a   : > { %v8502_v56 = vcombine.high %v403_v31, %v411_v33  ;;  %v506_v21 = vld [vmem:[%s10309_s3 + $0x4e0] sm:$0xff] }
 0x29c   : > { %6970 = vmatpush1.bf16.msra.mxu0 %v9407_v39  ;;  %7134 = vmatpush1.bf16.msra.mxu1 %v9409_v40  ;;  %v419_v39 = vld [vmem:[%s10309_s3 + $0x228] sm:$0xff] }
 0x29d   : > { %6971 = vmatprep.subr.bf16.mxu0 %v9424_v41  ;;  %7135 = vmatprep.subr.bf16.mxu1 %v9426_v43  ;;  %v427_v40 = vld [vmem:[%s10309_s3 + $0x268] sm:$0xff]  ;;  %v8499_v41 = vcombine.low %v402_v29, %v410_v30  ;;  %v8501_v43 = vcombine.low %v403_v31, %v411_v33  ;;  %v8596_v29 = vcombine.high %v498_v20, %v506_v21  ;;  %v514_v31 = vld [vmem:[%s10309_s3 + $0x520] sm:$0xff] }
 0x29e   : > { %v8518_v46 = vcombine.high %v419_v39, %v427_v40  ;;  %v522_v33 = vld [vmem:[%s10309_s3 + $0x560] sm:$0xff] }
 0x2a0   : > { %6972 = vmatpush1.bf16.msra.mxu0 %v9423_v49  ;;  %7136 = vmatpush1.bf16.msra.mxu1 %v9425_v50  ;;  %v435_v49 = vld [vmem:[%s10309_s3 + $0x2a8] sm:$0xff] }
 0x2a1   : > { %6973 = vmatprep.subr.bf16.mxu0 %v9440_v51  ;;  %7137 = vmatprep.subr.bf16.mxu1 %v9442_v17  ;;  %v443_v50 = vld [vmem:[%s10309_s3 + $0x2e8] sm:$0xff]  ;;  %v8515_v51 = vcombine.low %v418_v37, %v426_v38  ;;  %v8517_v17 = vcombine.low %v419_v39, %v427_v40  ;;  %v8612_v37 = vcombine.high %v514_v31, %v522_v33  ;;  %v530_v39 = vld [vmem:[%s10309_s3 + $0x5a0] sm:$0xff] }
 0x2a2   : > { %v8534_v55 = vcombine.high %v435_v49, %v443_v50  ;;  %v538_v40 = vld [vmem:[%s10309_s3 + $0x5e0] sm:$0xff] }
 0x2a4   : > { %6974 = vmatpush1.bf16.msra.mxu0 %v9439_v58  ;;  %7138 = vmatpush1.bf16.msra.mxu1 %v9441_v59  ;;  %v451_v58 = vld [vmem:[%s10309_s3 + $0x328] sm:$0xff] }
 0x2a5   : > { %6975 = vmatprep.subr.bf16.mxu0 %v9456_v61  ;;  %7139 = vmatprep.subr.bf16.mxu1 %v9458_v62  ;;  %v459_v59 = vld [vmem:[%s10309_s3 + $0x368] sm:$0xff]  ;;  %v8531_v61 = vcombine.low %v434_v47, %v442_v48  ;;  %v8533_v62 = vcombine.low %v435_v49, %v443_v50  ;;  %v8628_v47 = vcombine.high %v530_v39, %v538_v40  ;;  %v546_v49 = vld [vmem:[%s10309_s3 + $0x620] sm:$0xff] }
 0x2a6   : > { %v8550_v1 = vcombine.high %v451_v58, %v459_v59  ;;  %v554_v50 = vld [vmem:[%s10309_s3 + $0x660] sm:$0xff] }
 0x2a8   : > { %6976 = vmatpush1.bf16.msra.mxu0 %v9455_v5  ;;  %7140 = vmatpush1.bf16.msra.mxu1 %v9457_v6  ;;  %v467_v5 = vld [vmem:[%s10309_s3 + $0x3a8] sm:$0xff] }
 0x2a9   : > { %7150 = vmatprep.subr.bf16.mxu0 %v8452_v7  ;;  %7314 = vmatprep.subr.bf16.mxu1 %v8454_v8  ;;  %v475_v6 = vld [vmem:[%s10309_s3 + $0x3e8] sm:$0xff]  ;;  %v8547_v7 = vcombine.low %v450_v24, %v458_v57  ;;  %v8549_v8 = vcombine.low %v451_v58, %v459_v59  ;;  %v8644_v24 = vcombine.high %v546_v49, %v554_v50  ;;  %v562_v58 = vld [vmem:[%s10309_s3 + $0x6a0] sm:$0xff] }
 0x2aa   : > { %v8566_v11 = vcombine.high %v467_v5, %v475_v6  ;;  %v570_v59 = vld [vmem:[%s10309_s3 + $0x6e0] sm:$0xff] }
 0x2ab   : > { %6978 = vmatmul.mubr.bf16.vlgmr.msra.gmra.mrb[4].mxu0 %v10666_v27  ;;  %7142 = vmatmul.mubr.bf16.vlgmr.msra.gmra.mrb[4].mxu1 %v10666_v27 }
 0x2ac   : > { %7151 = vmatpush1.bf16.msra.mxu0 %v8451_v14  ;;  %7315 = vmatpush1.bf16.msra.mxu1 %v8453_v15  ;;  %v483_v14 = vld [vmem:[%s10309_s3 + $0x428] sm:$0xff] }
 0x2ad   : > { %7152 = vmatprep.subr.bf16.mxu0 %v8468_v16  ;;  %7316 = vmatprep.subr.bf16.mxu1 %v8470_v60  ;;  %v491_v15 = vld [vmem:[%s10309_s3 + $0x468] sm:$0xff]  ;;  %v8563_v16 = vcombine.low %v466_v2, %v474_v4  ;;  %v8565_v60 = vcombine.low %v467_v5, %v475_v6  ;;  %v8660_v2 = vcombine.high %v562_v58, %v570_v59  ;;  %v578_v5 = vld [vmem:[%s10309_s3 + $0x720] sm:$0xff] }
 0x2ae   : > { %7182 = vmatprep.mubr.bf16.mxu0 %v10378_v10  ;;  %7346 = vmatprep.mubr.bf16.mxu1 %v10378_v10  ;;  %v8582_v19 = vcombine.high %v483_v14, %v491_v15  ;;  %v586_v6 = vld [vmem:[%s10309_s3 + $0x760] sm:$0xff] }
 0x2b0   : > { %7153 = vmatpush1.bf16.msra.mxu0 %v8467_v22  ;;  %7317 = vmatpush1.bf16.msra.mxu1 %v8469_v23  ;;  %v499_v22 = vld [vmem:[%s10309_s3 + $0x4a8] sm:$0xff] }
 0x2b1   : > { %7154 = vmatprep.subr.bf16.mxu0 %v8484_v25  ;;  %7318 = vmatprep.subr.bf16.mxu1 %v8486_v28  ;;  %v507_v23 = vld [vmem:[%s10309_s3 + $0x4e8] sm:$0xff]  ;;  %v8579_v25 = vcombine.low %v482_v12, %v490_v32  ;;  %v8581_v28 = vcombine.low %v483_v14, %v491_v15  ;;  %v8676_v12 = vcombine.high %v578_v5, %v586_v6  ;;  %v594_v14 = vld [vmem:[%s10309_s3 + $0x7a0] sm:$0xff] }
 0x2b2   : > { %v8598_v30 = vcombine.high %v499_v22, %v507_v23  ;;  %v602_v15 = vld [vmem:[%s10309_s3 + $0x7e0] sm:$0xff] }
 0x2b4   : > { %7155 = vmatpush1.bf16.msra.mxu0 %v8483_v34  ;;  %7319 = vmatpush1.bf16.msra.mxu1 %v8485_v0  ;;  %v515_v34 = vld [vmem:[%s10309_s3 + $0x528] sm:$0xff] }
 0x2b5   : > { %7156 = vmatprep.subr.bf16.mxu0 %v8500_v36  ;;  %7320 = vmatprep.subr.bf16.mxu1 %v8502_v56  ;;  %v523_v0 = vld [vmem:[%s10309_s3 + $0x568] sm:$0xff]  ;;  %v8595_v36 = vcombine.low %v498_v20, %v506_v21  ;;  %v8597_v56 = vcombine.low %v499_v22, %v507_v23  ;;  %v8692_v20 = vcombine.high %v594_v14, %v602_v15  ;;  %v610_v22 = vld [vmem:[%s10309_s3 + $0x820] sm:$0xff] }
 0x2b6   : > { %v8614_v38 = vcombine.high %v515_v34, %v523_v0  ;;  %v618_v23 = vld [vmem:[%s10309_s3 + $0x860] sm:$0xff] }
 0x2b8   : > { %7157 = vmatpush1.bf16.msra.mxu0 %v8499_v41  ;;  %7321 = vmatpush1.bf16.msra.mxu1 %v8501_v43  ;;  %v531_v41 = vld [vmem:[%s10309_s3 + $0x5a8] sm:$0xff] }
 0x2b9   : > { %7158 = vmatprep.subr.bf16.mxu0 %v8516_v44  ;;  %7322 = vmatprep.subr.bf16.mxu1 %v8518_v46  ;;  %v539_v43 = vld [vmem:[%s10309_s3 + $0x5e8] sm:$0xff]  ;;  %v8611_v44 = vcombine.low %v514_v31, %v522_v33  ;;  %v8613_v46 = vcombine.low %v515_v34, %v523_v0  ;;  %v8708_v31 = vcombine.high %v610_v22, %v618_v23  ;;  %v626_v34 = vld [vmem:[%s10309_s3 + $0x8a0] sm:$0xff] }
 0x2ba   : > { %v8630_v48 = vcombine.high %v531_v41, %v539_v43  ;;  %v634_v0 = vld [vmem:[%s10309_s3 + $0x8e0] sm:$0xff] }
 0x2bc   : > { %7159 = vmatpush1.bf16.msra.mxu0 %v8515_v51  ;;  %7323 = vmatpush1.bf16.msra.mxu1 %v8517_v17  ;;  %v547_v51 = vld [vmem:[%s10309_s3 + $0x628] sm:$0xff] }
 0x2bd   : > { %7160 = vmatprep.subr.bf16.mxu0 %v8532_v53  ;;  %7324 = vmatprep.subr.bf16.mxu1 %v8534_v55  ;;  %v555_v17 = vld [vmem:[%s10309_s3 + $0x668] sm:$0xff]  ;;  %v8627_v53 = vcombine.low %v530_v39, %v538_v40  ;;  %v8629_v55 = vcombine.low %v531_v41, %v539_v43  ;;  %v8724_v39 = vcombine.high %v626_v34, %v634_v0  ;;  %v642_v41 = vld [vmem:[%s10309_s3 + $0x920] sm:$0xff] }
 0x2be   : > { %v8646_v57 = vcombine.high %v547_v51, %v555_v17  ;;  %v650_v43 = vld [vmem:[%s10309_s3 + $0x960] sm:$0xff] }
 0x2c0   : > { %7161 = vmatpush1.bf16.msra.mxu0 %v8531_v61  ;;  %7325 = vmatpush1.bf16.msra.mxu1 %v8533_v62  ;;  %v563_v61 = vld [vmem:[%s10309_s3 + $0x6a8] sm:$0xff] }
 0x2c1   : > { %7162 = vmatprep.subr.bf16.mxu0 %v8548_v63  ;;  %7326 = vmatprep.subr.bf16.mxu1 %v8550_v1  ;;  %v571_v62 = vld [vmem:[%s10309_s3 + $0x6e8] sm:$0xff]  ;;  %v8643_v63 = vcombine.low %v546_v49, %v554_v50  ;;  %v8645_v1 = vcombine.low %v547_v51, %v555_v17  ;;  %v8740_v49 = vcombine.high %v642_v41, %v650_v43  ;;  %v658_v51 = vld [vmem:[%s10309_s3 + $0x9a0] sm:$0xff] }
 0x2c2   : > { %v8662_v4 = vcombine.high %v563_v61, %v571_v62  ;;  %v666_v17 = vld [vmem:[%s10309_s3 + $0x9e0] sm:$0xff] }
 0x2c4   : > { %7163 = vmatpush1.bf16.msra.mxu0 %v8547_v7  ;;  %7327 = vmatpush1.bf16.msra.mxu1 %v8549_v8  ;;  %v579_v7 = vld [vmem:[%s10309_s3 + $0x728] sm:$0xff] }
 0x2c5   : > { %7164 = vmatprep.subr.bf16.mxu0 %v8564_v9  ;;  %7328 = vmatprep.subr.bf16.mxu1 %v8566_v11  ;;  %v587_v8 = vld [vmem:[%s10309_s3 + $0x768] sm:$0xff]  ;;  %v8659_v9 = vcombine.low %v562_v58, %v570_v59  ;;  %v8661_v11 = vcombine.low %v563_v61, %v571_v62  ;;  %v8756_v58 = vcombine.high %v658_v51, %v666_v17  ;;  %v674_v61 = vld [vmem:[%s10309_s3 + $0xa20] sm:$0xff] }
 0x2c6   : > { %v8678_v32 = vcombine.high %v579_v7, %v587_v8  ;;  %v682_v62 = vld [vmem:[%s10309_s3 + $0xa60] sm:$0xff] }
 0x2c8   : > { %7165 = vmatpush1.bf16.msra.mxu0 %v8563_v16  ;;  %7329 = vmatpush1.bf16.msra.mxu1 %v8565_v60  ;;  %v595_v16 = vld [vmem:[%s10309_s3 + $0x7a8] sm:$0xff] }
 0x2c9   : > { %7166 = vmatprep.subr.bf16.mxu0 %v8580_v18  ;;  %7330 = vmatprep.subr.bf16.mxu1 %v8582_v19  ;;  %v603_v60 = vld [vmem:[%s10309_s3 + $0x7e8] sm:$0xff]  ;;  %v8675_v18 = vcombine.low %v578_v5, %v586_v6  ;;  %v8677_v19 = vcombine.low %v579_v7, %v587_v8  ;;  %v8772_v5 = vcombine.high %v674_v61, %v682_v62  ;;  %v690_v7 = vld [vmem:[%s10309_s3 + $0xaa0] sm:$0xff] }
 0x2ca   : > { %v8694_v21 = vcombine.high %v595_v16, %v603_v60  ;;  %v698_v8 = vld [vmem:[%s10309_s3 + $0xae0] sm:$0xff] }
 0x2cc   : > { %7167 = vmatpush1.bf16.msra.mxu0 %v8579_v25  ;;  %7331 = vmatpush1.bf16.msra.mxu1 %v8581_v28  ;;  %v611_v25 = vld [vmem:[%s10309_s3 + $0x828] sm:$0xff] }
 0x2cd   : > { %7168 = vmatprep.subr.bf16.mxu0 %v8596_v29  ;;  %7332 = vmatprep.subr.bf16.mxu1 %v8598_v30  ;;  %v619_v28 = vld [vmem:[%s10309_s3 + $0x868] sm:$0xff]  ;;  %v8691_v29 = vcombine.low %v594_v14, %v602_v15  ;;  %v8693_v30 = vcombine.low %v595_v16, %v603_v60  ;;  %v8788_v14 = vcombine.high %v690_v7, %v698_v8  ;;  %v706_v16 = vld [vmem:[%s10309_s3 + $0xb20] sm:$0xff] }
 0x2ce   : > { %v8710_v33 = vcombine.high %v611_v25, %v619_v28  ;;  %v714_v60 = vld [vmem:[%s10309_s3 + $0xb60] sm:$0xff] }
 0x2d0   : > { %7169 = vmatpush1.bf16.msra.mxu0 %v8595_v36  ;;  %7333 = vmatpush1.bf16.msra.mxu1 %v8597_v56  ;;  %v627_v36 = vld [vmem:[%s10309_s3 + $0x8a8] sm:$0xff] }
 0x2d1   : > { %7170 = vmatprep.subr.bf16.mxu0 %v8612_v37  ;;  %7334 = vmatprep.subr.bf16.mxu1 %v8614_v38  ;;  %v635_v56 = vld [vmem:[%s10309_s3 + $0x8e8] sm:$0xff]  ;;  %v8707_v37 = vcombine.low %v610_v22, %v618_v23  ;;  %v8709_v38 = vcombine.low %v611_v25, %v619_v28  ;;  %v8804_v22 = vcombine.high %v706_v16, %v714_v60  ;;  %v722_v25 = vld [vmem:[%s10309_s3 + $0xba0] sm:$0xff] }
 0x2d2   : > { %v8726_v40 = vcombine.high %v627_v36, %v635_v56  ;;  %v730_v28 = vld [vmem:[%s10309_s3 + $0xbe0] sm:$0xff] }
 0x2d4   : > { %7171 = vmatpush1.bf16.msra.mxu0 %v8611_v44  ;;  %7335 = vmatpush1.bf16.msra.mxu1 %v8613_v46  ;;  %v643_v44 = vld [vmem:[%s10309_s3 + $0x928] sm:$0xff] }
 0x2d5   : > { %7172 = vmatprep.subr.bf16.mxu0 %v8628_v47  ;;  %7336 = vmatprep.subr.bf16.mxu1 %v8630_v48  ;;  %v651_v46 = vld [vmem:[%s10309_s3 + $0x968] sm:$0xff]  ;;  %v8723_v47 = vcombine.low %v626_v34, %v634_v0  ;;  %v8725_v48 = vcombine.low %v627_v36, %v635_v56  ;;  %v8820_v34 = vcombine.high %v722_v25, %v730_v28  ;;  %v738_v36 = vld [vmem:[%s10309_s3 + $0xc20] sm:$0xff] }
 0x2d6   : > { %v8742_v50 = vcombine.high %v643_v44, %v651_v46  ;;  %v746_v56 = vld [vmem:[%s10309_s3 + $0xc60] sm:$0xff] }
 0x2d8   : > { %7173 = vmatpush1.bf16.msra.mxu0 %v8627_v53  ;;  %7337 = vmatpush1.bf16.msra.mxu1 %v8629_v55  ;;  %v659_v53 = vld [vmem:[%s10309_s3 + $0x9a8] sm:$0xff] }
 0x2d9   : > { %7174 = vmatprep.subr.bf16.mxu0 %v8644_v24  ;;  %7338 = vmatprep.subr.bf16.mxu1 %v8646_v57  ;;  %v667_v55 = vld [vmem:[%s10309_s3 + $0x9e8] sm:$0xff]  ;;  %v8739_v24 = vcombine.low %v642_v41, %v650_v43  ;;  %v8741_v57 = vcombine.low %v643_v44, %v651_v46  ;;  %v8836_v41 = vcombine.high %v738_v36, %v746_v56  ;;  %v754_v44 = vld [vmem:[%s10309_s3 + $0xca0] sm:$0xff] }
 0x2da   : > { %v8758_v59 = vcombine.high %v659_v53, %v667_v55  ;;  %v762_v46 = vld [vmem:[%s10309_s3 + $0xce0] sm:$0xff] }
 0x2dc   : > { %7175 = vmatpush1.bf16.msra.mxu0 %v8643_v63  ;;  %7339 = vmatpush1.bf16.msra.mxu1 %v8645_v1  ;;  %v675_v63 = vld [vmem:[%s10309_s3 + $0xa28] sm:$0xff] }
 0x2dd   : > { %7176 = vmatprep.subr.bf16.mxu0 %v8660_v2  ;;  %7340 = vmatprep.subr.bf16.mxu1 %v8662_v4  ;;  %v683_v1 = vld [vmem:[%s10309_s3 + $0xa68] sm:$0xff]  ;;  %v8755_v2 = vcombine.low %v658_v51, %v666_v17  ;;  %v8757_v4 = vcombine.low %v659_v53, %v667_v55  ;;  %v8852_v51 = vcombine.high %v754_v44, %v762_v46  ;;  %v770_v53 = vld [vmem:[%s10309_s3 + $0xd20] sm:$0xff] }
 0x2de   : > { %v8774_v6 = vcombine.high %v675_v63, %v683_v1  ;;  %v778_v55 = vld [vmem:[%s10309_s3 + $0xd60] sm:$0xff] }
 0x2e0   : > { %7177 = vmatpush1.bf16.msra.mxu0 %v8659_v9  ;;  %7341 = vmatpush1.bf16.msra.mxu1 %v8661_v11  ;;  %v691_v9 = vld [vmem:[%s10309_s3 + $0xaa8] sm:$0xff] }
 0x2e1   : > { %7178 = vmatprep.subr.bf16.mxu0 %v8676_v12  ;;  %7342 = vmatprep.subr.bf16.mxu1 %v8678_v32  ;;  %v699_v11 = vld [vmem:[%s10309_s3 + $0xae8] sm:$0xff]  ;;  %v8771_v12 = vcombine.low %v674_v61, %v682_v62  ;;  %v8773_v32 = vcombine.low %v675_v63, %v683_v1  ;;  %v8868_v61 = vcombine.high %v770_v53, %v778_v55  ;;  %v786_v63 = vld [vmem:[%s10309_s3 + $0xda0] sm:$0xff] }
 0x2e2   : > { %v8790_v15 = vcombine.high %v691_v9, %v699_v11  ;;  %v794_v1 = vld [vmem:[%s10309_s3 + $0xde0] sm:$0xff] }
 0x2e4   : > { %7179 = vmatpush1.bf16.msra.mxu0 %v8675_v18  ;;  %7343 = vmatpush1.bf16.msra.mxu1 %v8677_v19  ;;  %v707_v18 = vld [vmem:[%s10309_s3 + $0xb28] sm:$0xff] }
 0x2e5   : > { %7180 = vmatprep.subr.bf16.mxu0 %v8692_v20  ;;  %7344 = vmatprep.subr.bf16.mxu1 %v8694_v21  ;;  %v715_v19 = vld [vmem:[%s10309_s3 + $0xb68] sm:$0xff]  ;;  %v8787_v20 = vcombine.low %v690_v7, %v698_v8  ;;  %v8789_v21 = vcombine.low %v691_v9, %v699_v11  ;;  %v8884_v7 = vcombine.high %v786_v63, %v794_v1  ;;  %v802_v9 = vld [vmem:[%s10309_s3 + $0xe20] sm:$0xff] }
 0x2e6   : > { %v8806_v23 = vcombine.high %v707_v18, %v715_v19  ;;  %v810_v11 = vld [vmem:[%s10309_s3 + $0xe60] sm:$0xff] }
 0x2e8   : > { %7181 = vmatpush1.bf16.msra.mxu0 %v8691_v29  ;;  %7345 = vmatpush1.bf16.msra.mxu1 %v8693_v30  ;;  %v723_v29 = vld [vmem:[%s10309_s3 + $0xba8] sm:$0xff] }
 0x2e9   : > { %7191 = vmatprep.subr.bf16.mxu0 %v8708_v31  ;;  %7355 = vmatprep.subr.bf16.mxu1 %v8710_v33  ;;  %v731_v30 = vld [vmem:[%s10309_s3 + $0xbe8] sm:$0xff]  ;;  %v8803_v31 = vcombine.low %v706_v16, %v714_v60  ;;  %v8805_v33 = vcombine.low %v707_v18, %v715_v19  ;;  %v8900_v16 = vcombine.high %v802_v9, %v810_v11  ;;  %v818_v18 = vld [vmem:[%s10309_s3 + $0xea0] sm:$0xff] }
 0x2ea   : > { %v8822_v0 = vcombine.high %v723_v29, %v731_v30  ;;  %v826_v19 = vld [vmem:[%s10309_s3 + $0xee0] sm:$0xff] }
 0x2eb   : > { %7183 = vmatmul.mubr.bf16.vlgmr.msra.gmra.mrb[8].mxu0 %v10427_v26  ;;  %7347 = vmatmul.mubr.bf16.vlgmr.msra.gmra.mrb[8].mxu1 %v10427_v26 }
 0x2ec   : > { %7192 = vmatpush1.bf16.msra.mxu0 %v8707_v37  ;;  %7356 = vmatpush1.bf16.msra.mxu1 %v8709_v38  ;;  %v739_v37 = vld [vmem:[%s10309_s3 + $0xc28] sm:$0xff] }
 0x2ed   : > { %7193 = vmatprep.subr.bf16.mxu0 %v8724_v39  ;;  %7357 = vmatprep.subr.bf16.mxu1 %v8726_v40  ;;  %v747_v38 = vld [vmem:[%s10309_s3 + $0xc68] sm:$0xff]  ;;  %v8819_v39 = vcombine.low %v722_v25, %v730_v28  ;;  %v8821_v40 = vcombine.low %v723_v29, %v731_v30  ;;  %v8916_v25 = vcombine.high %v818_v18, %v826_v19  ;;  %v834_v29 = vld [vmem:[%s10309_s3 + $0xf20] sm:$0xff] }
 0x2ee   : > { %7223 = vmatprep.mubr.bf16.mxu0 %v10433_v35  ;;  %7387 = vmatprep.mubr.bf16.mxu1 %v10433_v35  ;;  %v8838_v43 = vcombine.high %v739_v37, %v747_v38  ;;  %v842_v30 = vld [vmem:[%s10309_s3 + $0xf60] sm:$0xff] }
 0x2f0   : > { %7194 = vmatpush1.bf16.msra.mxu0 %v8723_v47  ;;  %7358 = vmatpush1.bf16.msra.mxu1 %v8725_v48  ;;  %v755_v47 = vld [vmem:[%s10309_s3 + $0xca8] sm:$0xff] }
 0x2f1   : > { %7195 = vmatprep.subr.bf16.mxu0 %v8740_v49  ;;  %7359 = vmatprep.subr.bf16.mxu1 %v8742_v50  ;;  %v763_v48 = vld [vmem:[%s10309_s3 + $0xce8] sm:$0xff]  ;;  %v8835_v49 = vcombine.low %v738_v36, %v746_v56  ;;  %v8837_v50 = vcombine.low %v739_v37, %v747_v38  ;;  %v8932_v36 = vcombine.high %v834_v29, %v842_v30  ;;  %v850_v37 = vld [vmem:[%s10309_s3 + $0xfa0] sm:$0xff] }
 0x2f2   : > { %v8854_v17 = vcombine.high %v755_v47, %v763_v48  ;;  %v858_v38 = vld [vmem:[%s10309_s3 + $0xfe0] sm:$0xff] }
 0x2f4   : > { %7196 = vmatpush1.bf16.msra.mxu0 %v8739_v24  ;;  %7360 = vmatpush1.bf16.msra.mxu1 %v8741_v57  ;;  %v771_v24 = vld [vmem:[%s10309_s3 + $0xd28] sm:$0xff] }
 0x2f5   : > { %7197 = vmatprep.subr.bf16.mxu0 %v8756_v58  ;;  %7361 = vmatprep.subr.bf16.mxu1 %v8758_v59  ;;  %v779_v57 = vld [vmem:[%s10309_s3 + $0xd68] sm:$0xff]  ;;  %v8851_v58 = vcombine.low %v754_v44, %v762_v46  ;;  %v8853_v59 = vcombine.low %v755_v47, %v763_v48  ;;  %v8948_v44 = vcombine.high %v850_v37, %v858_v38  ;;  %v866_v47 = vld [vmem:[%s10309_s3 + $0x1020] sm:$0xff] }
 0x2f6   : > { %v8870_v62 = vcombine.high %v771_v24, %v779_v57  ;;  %v874_v48 = vld [vmem:[%s10309_s3 + $0x1060] sm:$0xff] }
 0x2f8   : > { %7198 = vmatpush1.bf16.msra.mxu0 %v8755_v2  ;;  %7362 = vmatpush1.bf16.msra.mxu1 %v8757_v4  ;;  %v787_v2 = vld [vmem:[%s10309_s3 + $0xda8] sm:$0xff] }
 0x2f9   : > { %7199 = vmatprep.subr.bf16.mxu0 %v8772_v5  ;;  %7363 = vmatprep.subr.bf16.mxu1 %v8774_v6  ;;  %v795_v4 = vld [vmem:[%s10309_s3 + $0xde8] sm:$0xff]  ;;  %v8867_v5 = vcombine.low %v770_v53, %v778_v55  ;;  %v8869_v6 = vcombine.low %v771_v24, %v779_v57  ;;  %v8964_v53 = vcombine.high %v866_v47, %v874_v48  ;;  %v882_v24 = vld [vmem:[%s10309_s3 + $0x10a0] sm:$0xff] }
 0x2fa   : > { %v8886_v8 = vcombine.high %v787_v2, %v795_v4  ;;  %v890_v57 = vld [vmem:[%s10309_s3 + $0x10e0] sm:$0xff] }
 0x2fc   : > { %7200 = vmatpush1.bf16.msra.mxu0 %v8771_v12  ;;  %7364 = vmatpush1.bf16.msra.mxu1 %v8773_v32  ;;  %v803_v12 = vld [vmem:[%s10309_s3 + $0xe28] sm:$0xff] }
 0x2fd   : > { %7201 = vmatprep.subr.bf16.mxu0 %v8788_v14  ;;  %7365 = vmatprep.subr.bf16.mxu1 %v8790_v15  ;;  %v811_v32 = vld [vmem:[%s10309_s3 + $0xe68] sm:$0xff]  ;;  %v8883_v14 = vcombine.low %v786_v63, %v794_v1  ;;  %v8885_v15 = vcombine.low %v787_v2, %v795_v4  ;;  %v8980_v63 = vcombine.high %v882_v24, %v890_v57  ;;  %v898_v2 = vld [vmem:[%s10309_s3 + $0x1120] sm:$0xff] }
 0x2fe   : > { %v8902_v60 = vcombine.high %v803_v12, %v811_v32  ;;  %v906_v4 = vld [vmem:[%s10309_s3 + $0x1160] sm:$0xff] }
 0x300   : > { %7202 = vmatpush1.bf16.msra.mxu0 %v8787_v20  ;;  %7366 = vmatpush1.bf16.msra.mxu1 %v8789_v21  ;;  %v819_v20 = vld [vmem:[%s10309_s3 + $0xea8] sm:$0xff] }
 0x301   : > { %7203 = vmatprep.subr.bf16.mxu0 %v8804_v22  ;;  %7367 = vmatprep.subr.bf16.mxu1 %v8806_v23  ;;  %v827_v21 = vld [vmem:[%s10309_s3 + $0xee8] sm:$0xff]  ;;  %v8899_v22 = vcombine.low %v802_v9, %v810_v11  ;;  %v8901_v23 = vcombine.low %v803_v12, %v811_v32  ;;  %v8996_v9 = vcombine.high %v898_v2, %v906_v4  ;;  %v914_v12 = vld [vmem:[%s10309_s3 + $0x11a0] sm:$0xff] }
 0x302   : > { %v8918_v28 = vcombine.high %v819_v20, %v827_v21  ;;  %v922_v32 = vld [vmem:[%s10309_s3 + $0x11e0] sm:$0xff] }
 0x304   : > { %7204 = vmatpush1.bf16.msra.mxu0 %v8803_v31  ;;  %7368 = vmatpush1.bf16.msra.mxu1 %v8805_v33  ;;  %v835_v31 = vld [vmem:[%s10309_s3 + $0xf28] sm:$0xff] }
 0x305   : > { %7205 = vmatprep.subr.bf16.mxu0 %v8820_v34  ;;  %7369 = vmatprep.subr.bf16.mxu1 %v8822_v0  ;;  %v843_v33 = vld [vmem:[%s10309_s3 + $0xf68] sm:$0xff]  ;;  %v8915_v34 = vcombine.low %v818_v18, %v826_v19  ;;  %v8917_v0 = vcombine.low %v819_v20, %v827_v21  ;;  %v9012_v18 = vcombine.high %v914_v12, %v922_v32  ;;  %v930_v20 = vld [vmem:[%s10309_s3 + $0x1220] sm:$0xff] }
 0x306   : > { %v8934_v56 = vcombine.high %v835_v31, %v843_v33  ;;  %v938_v21 = vld [vmem:[%s10309_s3 + $0x1260] sm:$0xff] }
 0x308   : > { %7206 = vmatpush1.bf16.msra.mxu0 %v8819_v39  ;;  %7370 = vmatpush1.bf16.msra.mxu1 %v8821_v40  ;;  %v851_v39 = vld [vmem:[%s10309_s3 + $0xfa8] sm:$0xff] }
 0x309   : > { %7207 = vmatprep.subr.bf16.mxu0 %v8836_v41  ;;  %7371 = vmatprep.subr.bf16.mxu1 %v8838_v43  ;;  %v859_v40 = vld [vmem:[%s10309_s3 + $0xfe8] sm:$0xff]  ;;  %v8931_v41 = vcombine.low %v834_v29, %v842_v30  ;;  %v8933_v43 = vcombine.low %v835_v31, %v843_v33  ;;  %v9028_v29 = vcombine.high %v930_v20, %v938_v21  ;;  %v946_v31 = vld [vmem:[%s10309_s3 + $0x12a0] sm:$0xff] }
 0x30a   : > { %v8950_v46 = vcombine.high %v851_v39, %v859_v40  ;;  %v954_v33 = vld [vmem:[%s10309_s3 + $0x12e0] sm:$0xff] }
 0x30c   : > { %7208 = vmatpush1.bf16.msra.mxu0 %v8835_v49  ;;  %7372 = vmatpush1.bf16.msra.mxu1 %v8837_v50  ;;  %v867_v49 = vld [vmem:[%s10309_s3 + $0x1028] sm:$0xff] }
 0x30d   : > { %7209 = vmatprep.subr.bf16.mxu0 %v8852_v51  ;;  %7373 = vmatprep.subr.bf16.mxu1 %v8854_v17  ;;  %v875_v50 = vld [vmem:[%s10309_s3 + $0x1068] sm:$0xff]  ;;  %v8947_v51 = vcombine.low %v850_v37, %v858_v38  ;;  %v8949_v17 = vcombine.low %v851_v39, %v859_v40  ;;  %v9044_v37 = vcombine.high %v946_v31, %v954_v33  ;;  %v962_v39 = vld [vmem:[%s10309_s3 + $0x1320] sm:$0xff] }
 0x30e   : > { %v8966_v55 = vcombine.high %v867_v49, %v875_v50  ;;  %v970_v40 = vld [vmem:[%s10309_s3 + $0x1360] sm:$0xff] }
 0x310   : > { %7210 = vmatpush1.bf16.msra.mxu0 %v8851_v58  ;;  %7374 = vmatpush1.bf16.msra.mxu1 %v8853_v59  ;;  %v883_v58 = vld [vmem:[%s10309_s3 + $0x10a8] sm:$0xff] }
 0x311   : > { %7211 = vmatprep.subr.bf16.mxu0 %v8868_v61  ;;  %7375 = vmatprep.subr.bf16.mxu1 %v8870_v62  ;;  %v891_v59 = vld [vmem:[%s10309_s3 + $0x10e8] sm:$0xff]  ;;  %v8963_v61 = vcombine.low %v866_v47, %v874_v48  ;;  %v8965_v62 = vcombine.low %v867_v49, %v875_v50  ;;  %v9060_v47 = vcombine.high %v962_v39, %v970_v40  ;;  %v978_v49 = vld [vmem:[%s10309_s3 + $0x13a0] sm:$0xff] }
 0x312   : > { %v8982_v1 = vcombine.high %v883_v58, %v891_v59  ;;  %v986_v50 = vld [vmem:[%s10309_s3 + $0x13e0] sm:$0xff] }
 0x314   : > { %7212 = vmatpush1.bf16.msra.mxu0 %v8867_v5  ;;  %7376 = vmatpush1.bf16.msra.mxu1 %v8869_v6  ;;  %v899_v5 = vld [vmem:[%s10309_s3 + $0x1128] sm:$0xff] }
 0x315   : > { %7213 = vmatprep.subr.bf16.mxu0 %v8884_v7  ;;  %7377 = vmatprep.subr.bf16.mxu1 %v8886_v8  ;;  %v907_v6 = vld [vmem:[%s10309_s3 + $0x1168] sm:$0xff]  ;;  %v8979_v7 = vcombine.low %v882_v24, %v890_v57  ;;  %v8981_v8 = vcombine.low %v883_v58, %v891_v59  ;;  %v9076_v24 = vcombine.high %v978_v49, %v986_v50  ;;  %v994_v58 = vld [vmem:[%s10309_s3 + $0x1420] sm:$0xff] }
 0x316   : > { %v8998_v11 = vcombine.high %v899_v5, %v907_v6  ;;  %v1002_v59 = vld [vmem:[%s10309_s3 + $0x1460] sm:$0xff] }
 0x318   : > { %7214 = vmatpush1.bf16.msra.mxu0 %v8883_v14  ;;  %7378 = vmatpush1.bf16.msra.mxu1 %v8885_v15  ;;  %v915_v14 = vld [vmem:[%s10309_s3 + $0x11a8] sm:$0xff] }
 0x319   : > { %7215 = vmatprep.subr.bf16.mxu0 %v8900_v16  ;;  %7379 = vmatprep.subr.bf16.mxu1 %v8902_v60  ;;  %v923_v15 = vld [vmem:[%s10309_s3 + $0x11e8] sm:$0xff]  ;;  %v8995_v16 = vcombine.low %v898_v2, %v906_v4  ;;  %v8997_v60 = vcombine.low %v899_v5, %v907_v6  ;;  %v9092_v2 = vcombine.high %v994_v58, %v1002_v59  ;;  %v1010_v5 = vld [vmem:[%s10309_s3 + $0x14a0] sm:$0xff] }
 0x31a   : > { %v9014_v19 = vcombine.high %v915_v14, %v923_v15  ;;  %v1018_v6 = vld [vmem:[%s10309_s3 + $0x14e0] sm:$0xff] }
 0x31c   : > { %7216 = vmatpush1.bf16.msra.mxu0 %v8899_v22  ;;  %7380 = vmatpush1.bf16.msra.mxu1 %v8901_v23  ;;  %v931_v22 = vld [vmem:[%s10309_s3 + $0x1228] sm:$0xff] }
 0x31d   : > { %7217 = vmatprep.subr.bf16.mxu0 %v8916_v25  ;;  %7381 = vmatprep.subr.bf16.mxu1 %v8918_v28  ;;  %v939_v23 = vld [vmem:[%s10309_s3 + $0x1268] sm:$0xff]  ;;  %v9011_v25 = vcombine.low %v914_v12, %v922_v32  ;;  %v9013_v28 = vcombine.low %v915_v14, %v923_v15  ;;  %v9108_v12 = vcombine.high %v1010_v5, %v1018_v6  ;;  %v1026_v14 = vld [vmem:[%s10309_s3 + $0x1520] sm:$0xff] }
 0x31e   : > { %v9030_v30 = vcombine.high %v931_v22, %v939_v23  ;;  %v1034_v15 = vld [vmem:[%s10309_s3 + $0x1560] sm:$0xff] }
 0x320   : > { %7218 = vmatpush1.bf16.msra.mxu0 %v8915_v34  ;;  %7382 = vmatpush1.bf16.msra.mxu1 %v8917_v0  ;;  %v947_v34 = vld [vmem:[%s10309_s3 + $0x12a8] sm:$0xff] }
 0x321   : > { %7219 = vmatprep.subr.bf16.mxu0 %v8932_v36  ;;  %7383 = vmatprep.subr.bf16.mxu1 %v8934_v56  ;;  %v955_v0 = vld [vmem:[%s10309_s3 + $0x12e8] sm:$0xff]  ;;  %v9027_v36 = vcombine.low %v930_v20, %v938_v21  ;;  %v9029_v56 = vcombine.low %v931_v22, %v939_v23  ;;  %v9124_v20 = vcombine.high %v1026_v14, %v1034_v15  ;;  %v1042_v22 = vld [vmem:[%s10309_s3 + $0x15a0] sm:$0xff] }
 0x322   : > { %v9046_v38 = vcombine.high %v947_v34, %v955_v0  ;;  %v1050_v23 = vld [vmem:[%s10309_s3 + $0x15e0] sm:$0xff] }
 0x324   : > { %7220 = vmatpush1.bf16.msra.mxu0 %v8931_v41  ;;  %7384 = vmatpush1.bf16.msra.mxu1 %v8933_v43  ;;  %v963_v41 = vld [vmem:[%s10309_s3 + $0x1328] sm:$0xff] }
 0x325   : > { %7221 = vmatprep.subr.bf16.mxu0 %v8948_v44  ;;  %7385 = vmatprep.subr.bf16.mxu1 %v8950_v46  ;;  %v971_v43 = vld [vmem:[%s10309_s3 + $0x1368] sm:$0xff]  ;;  %v9043_v44 = vcombine.low %v946_v31, %v954_v33  ;;  %v9045_v46 = vcombine.low %v947_v34, %v955_v0  ;;  %v9140_v31 = vcombine.high %v1042_v22, %v1050_v23  ;;  %v1058_v34 = vld [vmem:[%s10309_s3 + $0x1620] sm:$0xff] }
 0x326   : > { %v9062_v48 = vcombine.high %v963_v41, %v971_v43  ;;  %v1066_v0 = vld [vmem:[%s10309_s3 + $0x1660] sm:$0xff] }
 0x328   : > { %7222 = vmatpush1.bf16.msra.mxu0 %v8947_v51  ;;  %7386 = vmatpush1.bf16.msra.mxu1 %v8949_v17  ;;  %v979_v51 = vld [vmem:[%s10309_s3 + $0x13a8] sm:$0xff] }
 0x329   : > { %7232 = vmatprep.subr.bf16.mxu0 %v8964_v53  ;;  %7396 = vmatprep.subr.bf16.mxu1 %v8966_v55  ;;  %v987_v17 = vld [vmem:[%s10309_s3 + $0x13e8] sm:$0xff]  ;;  %v9059_v53 = vcombine.low %v962_v39, %v970_v40  ;;  %v9061_v55 = vcombine.low %v963_v41, %v971_v43  ;;  %v9156_v39 = vcombine.high %v1058_v34, %v1066_v0  ;;  %v1074_v41 = vld [vmem:[%s10309_s3 + $0x16a0] sm:$0xff] }
 0x32a   : > { %v9078_v57 = vcombine.high %v979_v51, %v987_v17  ;;  %v1082_v43 = vld [vmem:[%s10309_s3 + $0x16e0] sm:$0xff] }
 0x32b   : > { %7224 = vmatmul.mubr.bf16.vlgmr.msra.gmra.mrb[8].mxu0 %v10511_v42  ;;  %7388 = vmatmul.mubr.bf16.vlgmr.msra.gmra.mrb[8].mxu1 %v10511_v42 }
 0x32c   : > { %7233 = vmatpush1.bf16.msra.mxu0 %v8963_v61  ;;  %7397 = vmatpush1.bf16.msra.mxu1 %v8965_v62  ;;  %v995_v61 = vld [vmem:[%s10309_s3 + $0x1428] sm:$0xff] }
 0x32d   : > { %7234 = vmatprep.subr.bf16.mxu0 %v8980_v63  ;;  %7398 = vmatprep.subr.bf16.mxu1 %v8982_v1  ;;  %v1003_v62 = vld [vmem:[%s10309_s3 + $0x1468] sm:$0xff]  ;;  %v9075_v63 = vcombine.low %v978_v49, %v986_v50  ;;  %v9077_v1 = vcombine.low %v979_v51, %v987_v17  ;;  %v9172_v49 = vcombine.high %v1074_v41, %v1082_v43  ;;  %v1090_v51 = vld [vmem:[%s10309_s3 + $0x1720] sm:$0xff] }
 0x32e   : > { %7264 = vmatprep.mubr.bf16.mxu0 %v10517_v52  ;;  %7428 = vmatprep.mubr.bf16.mxu1 %v10517_v52  ;;  %v9094_v4 = vcombine.high %v995_v61, %v1003_v62  ;;  %v1098_v17 = vld [vmem:[%s10309_s3 + $0x1760] sm:$0xff] }
 0x330   : > { %7235 = vmatpush1.bf16.msra.mxu0 %v8979_v7  ;;  %7399 = vmatpush1.bf16.msra.mxu1 %v8981_v8  ;;  %v1011_v7 = vld [vmem:[%s10309_s3 + $0x14a8] sm:$0xff] }
 0x331   : > { %7236 = vmatprep.subr.bf16.mxu0 %v8996_v9  ;;  %7400 = vmatprep.subr.bf16.mxu1 %v8998_v11  ;;  %v1019_v8 = vld [vmem:[%s10309_s3 + $0x14e8] sm:$0xff]  ;;  %v9091_v9 = vcombine.low %v994_v58, %v1002_v59  ;;  %v9093_v11 = vcombine.low %v995_v61, %v1003_v62  ;;  %v9188_v58 = vcombine.high %v1090_v51, %v1098_v17  ;;  %v1106_v61 = vld [vmem:[%s10309_s3 + $0x17a0] sm:$0xff] }
 0x332   : > { %v9110_v32 = vcombine.high %v1011_v7, %v1019_v8  ;;  %v1114_v62 = vld [vmem:[%s10309_s3 + $0x17e0] sm:$0xff] }
 0x334   : > { %7237 = vmatpush1.bf16.msra.mxu0 %v8995_v16  ;;  %7401 = vmatpush1.bf16.msra.mxu1 %v8997_v60  ;;  %v1027_v16 = vld [vmem:[%s10309_s3 + $0x1528] sm:$0xff] }
 0x335   : > { %7238 = vmatprep.subr.bf16.mxu0 %v9012_v18  ;;  %7402 = vmatprep.subr.bf16.mxu1 %v9014_v19  ;;  %v1035_v60 = vld [vmem:[%s10309_s3 + $0x1568] sm:$0xff]  ;;  %v9107_v18 = vcombine.low %v1010_v5, %v1018_v6  ;;  %v9109_v19 = vcombine.low %v1011_v7, %v1019_v8  ;;  %v9204_v5 = vcombine.high %v1106_v61, %v1114_v62  ;;  %v1122_v7 = vld [vmem:[%s10309_s3 + $0x1820] sm:$0xff] }
 0x336   : > { %v9126_v21 = vcombine.high %v1027_v16, %v1035_v60  ;;  %v1130_v8 = vld [vmem:[%s10309_s3 + $0x1860] sm:$0xff] }
 0x338   : > { %7239 = vmatpush1.bf16.msra.mxu0 %v9011_v25  ;;  %7403 = vmatpush1.bf16.msra.mxu1 %v9013_v28  ;;  %v1043_v25 = vld [vmem:[%s10309_s3 + $0x15a8] sm:$0xff] }
 0x339   : > { %7240 = vmatprep.subr.bf16.mxu0 %v9028_v29  ;;  %7404 = vmatprep.subr.bf16.mxu1 %v9030_v30  ;;  %v1051_v28 = vld [vmem:[%s10309_s3 + $0x15e8] sm:$0xff]  ;;  %v9123_v29 = vcombine.low %v1026_v14, %v1034_v15  ;;  %v9125_v30 = vcombine.low %v1027_v16, %v1035_v60  ;;  %v9220_v14 = vcombine.high %v1122_v7, %v1130_v8  ;;  %v1138_v16 = vld [vmem:[%s10309_s3 + $0x18a0] sm:$0xff] }
 0x33a   : > { %v9142_v33 = vcombine.high %v1043_v25, %v1051_v28  ;;  %v1146_v60 = vld [vmem:[%s10309_s3 + $0x18e0] sm:$0xff] }
 0x33c   : > { %7241 = vmatpush1.bf16.msra.mxu0 %v9027_v36  ;;  %7405 = vmatpush1.bf16.msra.mxu1 %v9029_v56  ;;  %v1059_v36 = vld [vmem:[%s10309_s3 + $0x1628] sm:$0xff] }
 0x33d   : > { %7242 = vmatprep.subr.bf16.mxu0 %v9044_v37  ;;  %7406 = vmatprep.subr.bf16.mxu1 %v9046_v38  ;;  %v1067_v56 = vld [vmem:[%s10309_s3 + $0x1668] sm:$0xff]  ;;  %v9139_v37 = vcombine.low %v1042_v22, %v1050_v23  ;;  %v9141_v38 = vcombine.low %v1043_v25, %v1051_v28  ;;  %v9236_v22 = vcombine.high %v1138_v16, %v1146_v60  ;;  %v1154_v25 = vld [vmem:[%s10309_s3 + $0x1920] sm:$0xff] }
 0x33e   : > { %v9158_v40 = vcombine.high %v1059_v36, %v1067_v56  ;;  %v1162_v28 = vld [vmem:[%s10309_s3 + $0x1960] sm:$0xff] }
 0x340   : > { %7243 = vmatpush1.bf16.msra.mxu0 %v9043_v44  ;;  %7407 = vmatpush1.bf16.msra.mxu1 %v9045_v46  ;;  %v1075_v44 = vld [vmem:[%s10309_s3 + $0x16a8] sm:$0xff] }
 0x341   : > { %7244 = vmatprep.subr.bf16.mxu0 %v9060_v47  ;;  %7408 = vmatprep.subr.bf16.mxu1 %v9062_v48  ;;  %v1083_v46 = vld [vmem:[%s10309_s3 + $0x16e8] sm:$0xff]  ;;  %v9155_v47 = vcombine.low %v1058_v34, %v1066_v0  ;;  %v9157_v48 = vcombine.low %v1059_v36, %v1067_v56  ;;  %v9252_v34 = vcombine.high %v1154_v25, %v1162_v28  ;;  %v1170_v36 = vld [vmem:[%s10309_s3 + $0x19a0] sm:$0xff] }
 0x342   : > { %v9174_v50 = vcombine.high %v1075_v44, %v1083_v46  ;;  %v1178_v56 = vld [vmem:[%s10309_s3 + $0x19e0] sm:$0xff] }
 0x344   : > { %7245 = vmatpush1.bf16.msra.mxu0 %v9059_v53  ;;  %7409 = vmatpush1.bf16.msra.mxu1 %v9061_v55  ;;  %v1091_v53 = vld [vmem:[%s10309_s3 + $0x1728] sm:$0xff] }
 0x345   : > { %7246 = vmatprep.subr.bf16.mxu0 %v9076_v24  ;;  %7410 = vmatprep.subr.bf16.mxu1 %v9078_v57  ;;  %v1099_v55 = vld [vmem:[%s10309_s3 + $0x1768] sm:$0xff]  ;;  %v9171_v24 = vcombine.low %v1074_v41, %v1082_v43  ;;  %v9173_v57 = vcombine.low %v1075_v44, %v1083_v46  ;;  %v9268_v41 = vcombine.high %v1170_v36, %v1178_v56  ;;  %v1186_v44 = vld [vmem:[%s10309_s3 + $0x1a20] sm:$0xff] }
 0x346   : > { %v9190_v59 = vcombine.high %v1091_v53, %v1099_v55  ;;  %v1194_v46 = vld [vmem:[%s10309_s3 + $0x1a60] sm:$0xff] }
 0x348   : > { %7247 = vmatpush1.bf16.msra.mxu0 %v9075_v63  ;;  %7411 = vmatpush1.bf16.msra.mxu1 %v9077_v1  ;;  %v1107_v63 = vld [vmem:[%s10309_s3 + $0x17a8] sm:$0xff] }
 0x349   : > { %7248 = vmatprep.subr.bf16.mxu0 %v9092_v2  ;;  %7412 = vmatprep.subr.bf16.mxu1 %v9094_v4  ;;  %v1115_v1 = vld [vmem:[%s10309_s3 + $0x17e8] sm:$0xff]  ;;  %v9187_v2 = vcombine.low %v1090_v51, %v1098_v17  ;;  %v9189_v4 = vcombine.low %v1091_v53, %v1099_v55  ;;  %v9284_v51 = vcombine.high %v1186_v44, %v1194_v46  ;;  %v1202_v53 = vld [vmem:[%s10309_s3 + $0x1aa0] sm:$0xff] }
 0x34a   : > { %v9206_v6 = vcombine.high %v1107_v63, %v1115_v1  ;;  %v1210_v55 = vld [vmem:[%s10309_s3 + $0x1ae0] sm:$0xff] }
 0x34c   : > { %7249 = vmatpush1.bf16.msra.mxu0 %v9091_v9  ;;  %7413 = vmatpush1.bf16.msra.mxu1 %v9093_v11  ;;  %v1123_v9 = vld [vmem:[%s10309_s3 + $0x1828] sm:$0xff] }
 0x34d   : > { %7250 = vmatprep.subr.bf16.mxu0 %v9108_v12  ;;  %7414 = vmatprep.subr.bf16.mxu1 %v9110_v32  ;;  %v1131_v11 = vld [vmem:[%s10309_s3 + $0x1868] sm:$0xff]  ;;  %v9203_v12 = vcombine.low %v1106_v61, %v1114_v62  ;;  %v9205_v32 = vcombine.low %v1107_v63, %v1115_v1  ;;  %v9300_v61 = vcombine.high %v1202_v53, %v1210_v55  ;;  %v1218_v63 = vld [vmem:[%s10309_s3 + $0x1b20] sm:$0xff] }
 0x34e   : > { %v9222_v15 = vcombine.high %v1123_v9, %v1131_v11  ;;  %v1226_v1 = vld [vmem:[%s10309_s3 + $0x1b60] sm:$0xff] }
 0x350   : > { %7251 = vmatpush1.bf16.msra.mxu0 %v9107_v18  ;;  %7415 = vmatpush1.bf16.msra.mxu1 %v9109_v19  ;;  %v1139_v18 = vld [vmem:[%s10309_s3 + $0x18a8] sm:$0xff] }
 0x351   : > { %7252 = vmatprep.subr.bf16.mxu0 %v9124_v20  ;;  %7416 = vmatprep.subr.bf16.mxu1 %v9126_v21  ;;  %v1147_v19 = vld [vmem:[%s10309_s3 + $0x18e8] sm:$0xff]  ;;  %v9219_v20 = vcombine.low %v1122_v7, %v1130_v8  ;;  %v9221_v21 = vcombine.low %v1123_v9, %v1131_v11  ;;  %v9316_v7 = vcombine.high %v1218_v63, %v1226_v1  ;;  %v1234_v11 = vld [vmem:[%s10309_s3 + $0x1ba0] sm:$0xff] }
 0x352   : > { %v9238_v23 = vcombine.high %v1139_v18, %v1147_v19 }
 0x354   : > { %7253 = vmatpush1.bf16.msra.mxu0 %v9123_v29  ;;  %7417 = vmatpush1.bf16.msra.mxu1 %v9125_v30  ;;  %v1155_v29 = vld [vmem:[%s10309_s3 + $0x1928] sm:$0xff] }
 0x355   : > { %7254 = vmatprep.subr.bf16.mxu0 %v9140_v31  ;;  %7418 = vmatprep.subr.bf16.mxu1 %v9142_v33  ;;  %v1163_v30 = vld [vmem:[%s10309_s3 + $0x1968] sm:$0xff]  ;;  %v9235_v31 = vcombine.low %v1138_v16, %v1146_v60  ;;  %v9237_v33 = vcombine.low %v1139_v18, %v1147_v19 }
 0x356   : > { %v9254_v0 = vcombine.high %v1155_v29, %v1163_v30  ;;  %v1243_v16 = vld [vmem:[%s10309_s3 + $0x1be8] sm:$0xff] }
 0x358   : > { %7255 = vmatpush1.bf16.msra.mxu0 %v9139_v37  ;;  %7419 = vmatpush1.bf16.msra.mxu1 %v9141_v38  ;;  %v1171_v37 = vld [vmem:[%s10309_s3 + $0x19a8] sm:$0xff] }
 0x359   : > { %7256 = vmatprep.subr.bf16.mxu0 %v9156_v39  ;;  %7420 = vmatprep.subr.bf16.mxu1 %v9158_v40  ;;  %v1179_v38 = vld [vmem:[%s10309_s3 + $0x19e8] sm:$0xff]  ;;  %v9251_v39 = vcombine.low %v1154_v25, %v1162_v28  ;;  %v9253_v40 = vcombine.low %v1155_v29, %v1163_v30 }
 0x35a   : > { %v9270_v43 = vcombine.high %v1171_v37, %v1179_v38 }
 0x35c   : > { %7257 = vmatpush1.bf16.msra.mxu0 %v9155_v47  ;;  %7421 = vmatpush1.bf16.msra.mxu1 %v9157_v48  ;;  %v1187_v47 = vld [vmem:[%s10309_s3 + $0x1a28] sm:$0xff] }
 0x35d   : > { %7258 = vmatprep.subr.bf16.mxu0 %v9172_v49  ;;  %7422 = vmatprep.subr.bf16.mxu1 %v9174_v50  ;;  %v1195_v48 = vld [vmem:[%s10309_s3 + $0x1a68] sm:$0xff]  ;;  %v9267_v49 = vcombine.low %v1170_v36, %v1178_v56  ;;  %v9269_v50 = vcombine.low %v1171_v37, %v1179_v38 }
 0x35e   : > { %v9286_v17 = vcombine.high %v1187_v47, %v1195_v48  ;;  %v1251_v36 = vld [vmem:[%s10309_s3 + $0x1c28] sm:$0xff] }
 0x35f   : > { %v1259_v56 = vld [vmem:[%s10309_s3 + $0x1c68] sm:$0xff] }
 0x360   : > { %7259 = vmatpush1.bf16.msra.mxu0 %v9171_v24  ;;  %7423 = vmatpush1.bf16.msra.mxu1 %v9173_v57  ;;  %v1203_v24 = vld [vmem:[%s10309_s3 + $0x1aa8] sm:$0xff] }
 0x361   : > { %7260 = vmatprep.subr.bf16.mxu0 %v9188_v58  ;;  %7424 = vmatprep.subr.bf16.mxu1 %v9190_v59  ;;  %v1211_v57 = vld [vmem:[%s10309_s3 + $0x1ae8] sm:$0xff]  ;;  %v9283_v58 = vcombine.low %v1186_v44, %v1194_v46  ;;  %v9285_v59 = vcombine.low %v1187_v47, %v1195_v48  ;;  %v1266_v44 = vld [vmem:[%s10309_s3 + $0x1ca0] sm:$0xff] }
 0x362   : > { %v9302_v62 = vcombine.high %v1203_v24, %v1211_v57  ;;  %v347_v37 = vld [vmem:[#allocation2 + $0x8] sm:$0xff]  ;;  %v1274_v46 = vld [vmem:[%s10309_s3 + $0x1ce0] sm:$0xff] }
 0x363   : > { %v1267_v48 = vld [vmem:[%s10309_s3 + $0x1ca8] sm:$0xff] }
 0x364   : > { %7261 = vmatpush1.bf16.msra.mxu0 %v9187_v2  ;;  %7425 = vmatpush1.bf16.msra.mxu1 %v9189_v4  ;;  %v1219_v2 = vld [vmem:[%s10309_s3 + $0x1b28] sm:$0xff] }
 0x365   : > { %7262 = vmatprep.subr.bf16.mxu0 %v9204_v5  ;;  %7426 = vmatprep.subr.bf16.mxu1 %v9206_v6  ;;  %v1227_v4 = vld [vmem:[%s10309_s3 + $0x1b68] sm:$0xff]  ;;  %v9299_v5 = vcombine.low %v1202_v53, %v1210_v55  ;;  %v9301_v6 = vcombine.low %v1203_v24, %v1211_v57  ;;  %v1282_v55 = vld [vmem:[%s10309_s3 + $0x1d20] sm:$0xff] }
 0x366   : > { %v9318_v9 = vcombine.high %v1219_v2, %v1227_v4  ;;  %v9317_v25 = vcombine.low %v1219_v2, %v1227_v4  ;;  %v1290_v24 = vld [vmem:[%s10309_s3 + $0x1d60] sm:$0xff]  ;;  %v1283_v57 = vld [vmem:[%s10309_s3 + $0x1d28] sm:$0xff] }
 0x367   : > { %v1306_v2 = vld [vmem:[%s10309_s3 + $0x1de0] sm:$0xff]  ;;  %v1299_v4 = vld [vmem:[%s10309_s3 + $0x1da8] sm:$0xff] }
 0x368   : > { %7263 = vmatpush1.bf16.msra.mxu0 %v9203_v12  ;;  %7427 = vmatpush1.bf16.msra.mxu1 %v9205_v32  ;;  %v1242_v12 = vld [vmem:[%s10309_s3 + $0x1be0] sm:$0xff] }
 0x369   : > { %7273 = vmatprep.subr.bf16.mxu0 %v9220_v14  ;;  %7437 = vmatprep.subr.bf16.mxu1 %v9222_v15  ;;  %v1235_v15 = vld [vmem:[%s10309_s3 + $0x1ba8] sm:$0xff]  ;;  %v9332_v28 = vcombine.high %v1234_v11, %v1242_v12  ;;  %v9331_v38 = vcombine.low %v1234_v11, %v1242_v12  ;;  %v1314_v11 = vld [vmem:[%s10309_s3 + $0x1e20] sm:$0xff] }
 0x36a   : > { %v1322_v12 = vld [vmem:[%s10309_s3 + $0x1e60] sm:$0xff] }
 0x36b   : > { %7265 = vmatmul.mubr.bf16.vlgmr.msra.gmra.mrb[8].mxu0 %v10592_v3  ;;  %7429 = vmatmul.mubr.bf16.vlgmr.msra.gmra.mrb[8].mxu1 %v10592_v3 }
 0x36c   : > { %7274 = vmatpush1.bf16.msra.mxu0 %v9219_v20  ;;  %7438 = vmatpush1.bf16.msra.mxu1 %v9221_v21  ;;  %v9315_v20 = vcombine.low %v1218_v63, %v1226_v1  ;;  %v1298_v1 = vld [vmem:[%s10309_s3 + $0x1da0] sm:$0xff] }
 0x36d   : > { %7275 = vmatprep.subr.bf16.mxu0 %v9236_v22  ;;  %7439 = vmatprep.subr.bf16.mxu1 %v9238_v23 }
 0x36e   : > { %7305 = vmatprep.mubr.bf16.mxu0 %v10598_v13  ;;  %7469 = vmatprep.mubr.bf16.mxu1 %v10598_v13 }
 0x370   : > { %7276 = vmatpush1.bf16.msra.mxu0 %v9235_v31  ;;  %7440 = vmatpush1.bf16.msra.mxu1 %v9237_v33  ;;  %v9334_v31 = vcombine.high %v1235_v15, %v1243_v16  ;;  %v1250_v33 = vld [vmem:[%s10309_s3 + $0x1c20] sm:$0xff] }
 0x371   : > { %7277 = vmatprep.subr.bf16.mxu0 %v9252_v34  ;;  %7441 = vmatprep.subr.bf16.mxu1 %v9254_v0  ;;  %v1258_v34 = vld [vmem:[%s10309_s3 + $0x1c60] sm:$0xff] }
 0x374   : > { %7278 = vmatpush1.bf16.msra.mxu0 %v9251_v39  ;;  %7442 = vmatpush1.bf16.msra.mxu1 %v9253_v40  ;;  %v9333_v40 = vcombine.low %v1235_v15, %v1243_v16  ;;  %v9395_v15 = vcombine.low %v1298_v1, %v1306_v2 }
 0x375   : > { %7279 = vmatprep.subr.bf16.mxu0 %v9268_v41  ;;  %7443 = vmatprep.subr.bf16.mxu1 %v9270_v43  ;;  %v9348_v41 = vcombine.high %v1250_v33, %v1258_v34  ;;  %v9350_v43 = vcombine.high %v1251_v36, %v1259_v56 }
 0x378   : > { %7280 = vmatpush1.bf16.msra.mxu0 %v9267_v49  ;;  %7444 = vmatpush1.bf16.msra.mxu1 %v9269_v50  ;;  %v1275_v49 = vld [vmem:[%s10309_s3 + $0x1ce8] sm:$0xff]  ;;  %v9347_v50 = vcombine.low %v1250_v33, %v1258_v34 }
 0x379   : > { %7281 = vmatprep.subr.bf16.mxu0 %v9284_v51  ;;  %7445 = vmatprep.subr.bf16.mxu1 %v9286_v17  ;;  %v9349_v51 = vcombine.low %v1251_v36, %v1259_v56  ;;  %v9364_v17 = vcombine.high %v1266_v44, %v1274_v46  ;;  %v9366_v53 = vcombine.high %v1267_v48, %v1275_v49  ;;  %v1347_v33 = vld [vmem:[%s10309_s3 + $0x1f28] sm:$0xff] }
 0x37a   : > { %v1355_v34 = vld [vmem:[%s10309_s3 + $0x1f68] sm:$0xff] }
 0x37c   : > { %7282 = vmatpush1.bf16.msra.mxu0 %v9283_v58  ;;  %7446 = vmatpush1.bf16.msra.mxu1 %v9285_v59  ;;  %v1291_v58 = vld [vmem:[%s10309_s3 + $0x1d68] sm:$0xff]  ;;  %v9363_v59 = vcombine.low %v1266_v44, %v1274_v46  ;;  %v9445_v44 = vcombine.low %v1347_v33, %v1355_v34 }
 0x37d   : > { %7283 = vmatprep.subr.bf16.mxu0 %v9300_v61  ;;  %7447 = vmatprep.subr.bf16.mxu1 %v9302_v62  ;;  %v9365_v61 = vcombine.low %v1267_v48, %v1275_v49  ;;  %v9380_v62 = vcombine.high %v1282_v55, %v1290_v24  ;;  %v9382_v63 = vcombine.high %v1283_v57, %v1291_v58  ;;  %v356_v48 = vld [vmem:[%s10309_s3 + $0x30] sm:$0xff] }
 0x37e   : > { %v6979_v8 = vpop.f32.mrb[4].mxu0  ;;  %v7143_v32 = vpop.f32.mrb[4].mxu1  ;;  %v364_v49 = vld [vmem:[%s10309_s3 + $0x70] sm:$0xff] }
 0x37f   : > { %v6981_v14 = vpop.f32.mrb[5].mxu0  ;;  %v7145_v18 = vpop.f32.mrb[5].mxu1 }
 0x380   : > { %v7839_v60 = vcombine.low %v6979_v8, %v6981_v14  ;;  %v6983_v19 = vpop.f32.mrb[6].mxu0  ;;  %7284 = vmatpush1.bf16.msra.mxu0 %v9299_v5  ;;  %v7840_v21 = vcombine.low %v7143_v32, %v7145_v18  ;;  %v7147_v22 = vpop.f32.mrb[6].mxu1  ;;  %7448 = vmatpush1.bf16.msra.mxu1 %v9301_v6  ;;  %v1307_v5 = vld [vmem:[%s10309_s3 + $0x1de8] sm:$0xff]  ;;  %v9379_v6 = vcombine.low %v1282_v55, %v1290_v24 }
 0x381   : > { %v6984_v23 = vpop.f32.mrb[7].mxu0  ;;  %7285 = vmatprep.subr.bf16.mxu0 %v9316_v7  ;;  %v7148_v30 = vpop.f32.mrb[7].mxu1  ;;  %7449 = vmatprep.subr.bf16.mxu1 %v9318_v9  ;;  %v9381_v7 = vcombine.low %v1283_v57, %v1291_v58  ;;  %v9396_v8 = vcombine.high %v1298_v1, %v1306_v2  ;;  %v9398_v9 = vcombine.high %v1299_v4, %v1307_v5  ;;  %v1315_v32 = vld [vmem:[%s10309_s3 + $0x1e28] sm:$0xff]  ;;  %v1330_v19 = vld [vmem:[%s10309_s3 + $0x1ea0] sm:$0xff]  ;;  %v372_v57 = vld [vmem:[%s10309_s3 + $0xb0] sm:$0xff] }
 0x382   : > { %v7847_v29 = vrot.slane %v7839_v60, %v10358_v54  ;;  %v7854_v0 = vrot.slane %v7840_v21, %v10358_v54  ;;  %v1323_v14 = vld [vmem:[%s10309_s3 + $0x1e68] sm:$0xff]  ;;  %v9397_v16 = vcombine.low %v1299_v4, %v1307_v5  ;;  %v9412_v60 = vcombine.high %v1314_v11, %v1322_v12  ;;  %v1346_v30 = vld [vmem:[%s10309_s3 + $0x1f20] sm:$0xff]  ;;  %v380_v58 = vld [vmem:[%s10309_s3 + $0xf0] sm:$0xff] }
 0x383   : > { %v9414_v18 = vcombine.high %v1315_v32, %v1323_v14  ;;  %v1331_v21 = vld [vmem:[%s10309_s3 + $0x1ea8] sm:$0xff]  ;;  %v9411_v23 = vcombine.low %v1314_v11, %v1322_v12  ;;  %v8456_v55 = vcombine.high %v356_v48, %v364_v49  ;;  %v8472_v1 = vcombine.high %v372_v57, %v380_v58  ;;  %v388_v4 = vld [vmem:[%s10309_s3 + $0x130] sm:$0xff] }
 0x384   : > { %7286 = vmatpush1.bf16.msra.mxu0 %v9315_v20  ;;  %v7855_v39 = vcombine.low %v7847_v29, %v7854_v0  ;;  %7450 = vmatpush1.bf16.msra.mxu1 %v9317_v25  ;;  %v1338_v20 = vld [vmem:[%s10309_s3 + $0x1ee0] sm:$0xff]  ;;  %v1339_v22 = vld [vmem:[%s10309_s3 + $0x1ee8] sm:$0xff]  ;;  %v9413_v25 = vcombine.low %v1315_v32, %v1323_v14  ;;  %v396_v5 = vld [vmem:[%s10309_s3 + $0x170] sm:$0xff] }
 0x385   : > { %7287 = vmatprep.subr.bf16.mxu0 %v9332_v28  ;;  %7451 = vmatprep.subr.bf16.mxu1 %v9334_v31  ;;  %v9428_v28 = vcombine.high %v1330_v19, %v1338_v20  ;;  %v9430_v29 = vcombine.high %v1331_v21, %v1339_v22  ;;  %v1354_v31 = vld [vmem:[%s10309_s3 + $0x1f60] sm:$0xff]  ;;  %v9427_v0 = vcombine.low %v1330_v19, %v1338_v20  ;;  %v404_v32 = vld [vmem:[%s10309_s3 + $0x1b0] sm:$0xff] }
 0x386   : > { %v7895_v47 = vadd.f32 %v7855_v39, %v347_v37  ;;  %v9429_v36 = vcombine.low %v1331_v21, %v1339_v22  ;;  %v9444_v56 = vcombine.high %v1346_v30, %v1354_v31  ;;  %v9446_v37 = vcombine.high %v1347_v33, %v1355_v34  ;;  %v1370_v39 = vld [vmem:[%s10309_s3 + $0x1fe0] sm:$0xff]  ;;  %v412_v14 = vld [vmem:[%s10309_s3 + $0x1f0] sm:$0xff]  ;;  %v437_v34 = vld [vmem:[%s10309_s3 + $0x2b8] sm:$0xff] }
 0x387   : > { %v8488_v11 = vcombine.high %v388_v4, %v396_v5  ;;  %v8504_v19 = vcombine.high %v404_v32, %v412_v14  ;;  %v420_v21 = vld [vmem:[%s10309_s3 + $0x230] sm:$0xff] }
 0x388   : > { %7288 = vmatpush1.bf16.msra.mxu0 %v9331_v38  ;;  %7899 = vst [vmem:[#allocation2 + $0x8] sm:$0xff] %v7895_v47  ;;  %7452 = vmatpush1.bf16.msra.mxu1 %v9333_v40  ;;  %v1362_v38 = vld [vmem:[%s10309_s3 + $0x1fa0] sm:$0xff]  ;;  %v1363_v40 = vld [vmem:[%s10309_s3 + $0x1fa8] sm:$0xff]  ;;  %v428_v22 = vld [vmem:[%s10309_s3 + $0x270] sm:$0xff] }
 0x389   : > { %7289 = vmatprep.subr.bf16.mxu0 %v9348_v41  ;;  %7453 = vmatprep.subr.bf16.mxu1 %v9350_v43  ;;  %v1371_v41 = vld [vmem:[%s10309_s3 + $0x1fe8] sm:$0xff]  ;;  %v9443_v43 = vcombine.low %v1346_v30, %v1354_v31  ;;  %v9460_v46 = vcombine.high %v1362_v38, %v1370_v39  ;;  %v436_v31 = vld [vmem:[%s10309_s3 + $0x2b0] sm:$0xff] }
 0x38a   : > { %v9462_v47 = vcombine.high %v1363_v40, %v1371_v41  ;;  %v444_v33 = vld [vmem:[%s10309_s3 + $0x2f0] sm:$0xff] }
 0x38c   : > { %7290 = vmatpush1.bf16.msra.mxu0 %v9347_v50  ;;  %7454 = vmatpush1.bf16.msra.mxu1 %v9349_v51  ;;  %v357_v50 = vld [vmem:[%s10309_s3 + $0x38] sm:$0xff] }
 0x38d   : > { %7291 = vmatprep.subr.bf16.mxu0 %v9364_v17  ;;  %7455 = vmatprep.subr.bf16.mxu1 %v9366_v53  ;;  %v365_v51 = vld [vmem:[%s10309_s3 + $0x78] sm:$0xff]  ;;  %v9459_v17 = vcombine.low %v1362_v38, %v1370_v39  ;;  %v9461_v53 = vcombine.low %v1363_v40, %v1371_v41  ;;  %v452_v39 = vld [vmem:[%s10309_s3 + $0x330] sm:$0xff] }
 0x38e   : > { %v8458_v24 = vcombine.high %v357_v50, %v365_v51  ;;  %v460_v40 = vld [vmem:[%s10309_s3 + $0x370] sm:$0xff]  ;;  %v453_v41 = vld [vmem:[%s10309_s3 + $0x338] sm:$0xff] }
 0x390   : > { %7292 = vmatpush1.bf16.msra.mxu0 %v9363_v59  ;;  %7456 = vmatpush1.bf16.msra.mxu1 %v9365_v61  ;;  %v373_v59 = vld [vmem:[%s10309_s3 + $0xb8] sm:$0xff] }
 0x391   : > { %7293 = vmatprep.subr.bf16.mxu0 %v9380_v62  ;;  %7457 = vmatprep.subr.bf16.mxu1 %v9382_v63  ;;  %v381_v61 = vld [vmem:[%s10309_s3 + $0xf8] sm:$0xff]  ;;  %v8455_v62 = vcombine.low %v356_v48, %v364_v49  ;;  %v8457_v63 = vcombine.low %v357_v50, %v365_v51  ;;  %v468_v49 = vld [vmem:[%s10309_s3 + $0x3b0] sm:$0xff] }
 0x392   : > { %v8474_v2 = vcombine.high %v373_v59, %v381_v61  ;;  %v476_v50 = vld [vmem:[%s10309_s3 + $0x3f0] sm:$0xff]  ;;  %v469_v51 = vld [vmem:[%s10309_s3 + $0x3b8] sm:$0xff] }
 0x394   : > { %7294 = vmatpush1.bf16.msra.mxu0 %v9379_v6  ;;  %7458 = vmatpush1.bf16.msra.mxu1 %v9381_v7  ;;  %v389_v6 = vld [vmem:[%s10309_s3 + $0x138] sm:$0xff] }
 0x395   : > { %7295 = vmatprep.subr.bf16.mxu0 %v9396_v8  ;;  %7459 = vmatprep.subr.bf16.mxu1 %v9398_v9  ;;  %v397_v7 = vld [vmem:[%s10309_s3 + $0x178] sm:$0xff]  ;;  %v8471_v8 = vcombine.low %v372_v57, %v380_v58  ;;  %v8473_v9 = vcombine.low %v373_v59, %v381_v61  ;;  %v484_v58 = vld [vmem:[%s10309_s3 + $0x430] sm:$0xff] }
 0x396   : > { %v8490_v12 = vcombine.high %v389_v6, %v397_v7  ;;  %v492_v59 = vld [vmem:[%s10309_s3 + $0x470] sm:$0xff]  ;;  %v485_v61 = vld [vmem:[%s10309_s3 + $0x438] sm:$0xff] }
 0x398   : > { %7296 = vmatpush1.bf16.msra.mxu0 %v9395_v15  ;;  %7460 = vmatpush1.bf16.msra.mxu1 %v9397_v16  ;;  %v405_v15 = vld [vmem:[%s10309_s3 + $0x1b8] sm:$0xff] }
 0x399   : > { %7297 = vmatprep.subr.bf16.mxu0 %v9412_v60  ;;  %7461 = vmatprep.subr.bf16.mxu1 %v9414_v18  ;;  %v413_v16 = vld [vmem:[%s10309_s3 + $0x1f8] sm:$0xff]  ;;  %v8487_v60 = vcombine.low %v388_v4, %v396_v5  ;;  %v8489_v18 = vcombine.low %v389_v6, %v397_v7  ;;  %v500_v5 = vld [vmem:[%s10309_s3 + $0x4b0] sm:$0xff] }
 0x39a   : > { %v8506_v20 = vcombine.high %v405_v15, %v413_v16  ;;  %v508_v6 = vld [vmem:[%s10309_s3 + $0x4f0] sm:$0xff]  ;;  %v501_v7 = vld [vmem:[%s10309_s3 + $0x4b8] sm:$0xff] }
 0x39c   : > { %7298 = vmatpush1.bf16.msra.mxu0 %v9411_v23  ;;  %7462 = vmatpush1.bf16.msra.mxu1 %v9413_v25  ;;  %v421_v23 = vld [vmem:[%s10309_s3 + $0x238] sm:$0xff] }
 0x39d   : > { %7299 = vmatprep.subr.bf16.mxu0 %v9428_v28  ;;  %7463 = vmatprep.subr.bf16.mxu1 %v9430_v29  ;;  %v429_v25 = vld [vmem:[%s10309_s3 + $0x278] sm:$0xff]  ;;  %v8503_v28 = vcombine.low %v404_v32, %v412_v14  ;;  %v8520_v29 = vcombine.high %v420_v21, %v428_v22  ;;  %v516_v14 = vld [vmem:[%s10309_s3 + $0x530] sm:$0xff] }
 0x39e   : > { %v8522_v30 = vcombine.high %v421_v23, %v429_v25 }
 0x3a0   : > { %7300 = vmatpush1.bf16.msra.mxu0 %v9427_v0  ;;  %7464 = vmatpush1.bf16.msra.mxu1 %v9429_v36  ;;  %v445_v0 = vld [vmem:[%s10309_s3 + $0x2f8] sm:$0xff]  ;;  %v8519_v36 = vcombine.low %v420_v21, %v428_v22  ;;  %v532_v22 = vld [vmem:[%s10309_s3 + $0x5b0] sm:$0xff] }
 0x3a1   : > { %7301 = vmatprep.subr.bf16.mxu0 %v9444_v56  ;;  %7465 = vmatprep.subr.bf16.mxu1 %v9446_v37  ;;  %v8521_v56 = vcombine.low %v421_v23, %v429_v25  ;;  %v8536_v37 = vcombine.high %v436_v31, %v444_v33  ;;  %v8538_v38 = vcombine.high %v437_v34, %v445_v0  ;;  %v540_v23 = vld [vmem:[%s10309_s3 + $0x5f0] sm:$0xff]  ;;  %v533_v25 = vld [vmem:[%s10309_s3 + $0x5b8] sm:$0xff] }
 0x3a4   : > { %7302 = vmatpush1.bf16.msra.mxu0 %v9443_v43  ;;  %7466 = vmatpush1.bf16.msra.mxu1 %v9445_v44  ;;  %v461_v43 = vld [vmem:[%s10309_s3 + $0x378] sm:$0xff]  ;;  %v8535_v44 = vcombine.low %v436_v31, %v444_v33  ;;  %v548_v33 = vld [vmem:[%s10309_s3 + $0x630] sm:$0xff] }
 0x3a5   : > { %7303 = vmatprep.subr.bf16.mxu0 %v9460_v46  ;;  %7467 = vmatprep.subr.bf16.mxu1 %v9462_v47  ;;  %v8537_v46 = vcombine.low %v437_v34, %v445_v0  ;;  %v8552_v47 = vcombine.high %v452_v39, %v460_v40  ;;  %v8554_v48 = vcombine.high %v453_v41, %v461_v43  ;;  %v556_v34 = vld [vmem:[%s10309_s3 + $0x670] sm:$0xff]  ;;  %v549_v0 = vld [vmem:[%s10309_s3 + $0x638] sm:$0xff] }
 0x3a8   : > { %7304 = vmatpush1.bf16.msra.mxu0 %v9459_v17  ;;  %7468 = vmatpush1.bf16.msra.mxu1 %v9461_v53  ;;  %v477_v17 = vld [vmem:[%s10309_s3 + $0x3f8] sm:$0xff]  ;;  %v8551_v53 = vcombine.low %v452_v39, %v460_v40  ;;  %v564_v40 = vld [vmem:[%s10309_s3 + $0x6b0] sm:$0xff] }
 0x3a9   : > { %7478 = vmatprep.subr.bf16.mxu0 %v8456_v55  ;;  %7642 = vmatprep.subr.bf16.mxu1 %v8458_v24  ;;  %v8553_v55 = vcombine.low %v453_v41, %v461_v43  ;;  %v8568_v24 = vcombine.high %v468_v49, %v476_v50  ;;  %v8570_v57 = vcombine.high %v469_v51, %v477_v17  ;;  %v572_v41 = vld [vmem:[%s10309_s3 + $0x6f0] sm:$0xff]  ;;  %v565_v43 = vld [vmem:[%s10309_s3 + $0x6b8] sm:$0xff] }
 0x3ab   : > { %7306 = vmatmul.mubr.bf16.vlgmr.msra.gmra.mrb[8].mxu0 %v10666_v27  ;;  %7470 = vmatmul.mubr.bf16.vlgmr.msra.gmra.mrb[8].mxu1 %v10666_v27 }
 0x3ac   : > { %7479 = vmatpush1.bf16.msra.mxu0 %v8455_v62  ;;  %7643 = vmatpush1.bf16.msra.mxu1 %v8457_v63  ;;  %v493_v62 = vld [vmem:[%s10309_s3 + $0x478] sm:$0xff]  ;;  %v8567_v63 = vcombine.low %v468_v49, %v476_v50  ;;  %v580_v50 = vld [vmem:[%s10309_s3 + $0x730] sm:$0xff] }
 0x3ad   : > { %7480 = vmatprep.subr.bf16.mxu0 %v8472_v1  ;;  %7644 = vmatprep.subr.bf16.mxu1 %v8474_v2  ;;  %v8569_v1 = vcombine.low %v469_v51, %v477_v17  ;;  %v8584_v2 = vcombine.high %v484_v58, %v492_v59  ;;  %v8586_v4 = vcombine.high %v485_v61, %v493_v62  ;;  %v588_v51 = vld [vmem:[%s10309_s3 + $0x770] sm:$0xff]  ;;  %v581_v17 = vld [vmem:[%s10309_s3 + $0x738] sm:$0xff] }
 0x3ae   : > { %7510 = vmatprep.mubr.bf16.mxu0 %v10378_v10  ;;  %7674 = vmatprep.mubr.bf16.mxu1 %v10378_v10  ;;  %v8505_v10 = vcombine.low %v405_v15, %v413_v16  ;;  %v524_v15 = vld [vmem:[%s10309_s3 + $0x570] sm:$0xff]  ;;  %v517_v16 = vld [vmem:[%s10309_s3 + $0x538] sm:$0xff] }
 0x3b0   : > { %7481 = vmatpush1.bf16.msra.mxu0 %v8471_v8  ;;  %7645 = vmatpush1.bf16.msra.mxu1 %v8473_v9  ;;  %v509_v8 = vld [vmem:[%s10309_s3 + $0x4f8] sm:$0xff]  ;;  %v8583_v9 = vcombine.low %v484_v58, %v492_v59  ;;  %v596_v59 = vld [vmem:[%s10309_s3 + $0x7b0] sm:$0xff] }
 0x3b1   : > { %7482 = vmatprep.subr.bf16.mxu0 %v8488_v11  ;;  %7646 = vmatprep.subr.bf16.mxu1 %v8490_v12  ;;  %v8585_v11 = vcombine.low %v485_v61, %v493_v62  ;;  %v8600_v12 = vcombine.high %v500_v5, %v508_v6  ;;  %v8602_v32 = vcombine.high %v501_v7, %v509_v8  ;;  %v604_v61 = vld [vmem:[%s10309_s3 + $0x7f0] sm:$0xff]  ;;  %v597_v62 = vld [vmem:[%s10309_s3 + $0x7b8] sm:$0xff] }
 0x3b4   : > { %7483 = vmatpush1.bf16.msra.mxu0 %v8487_v60  ;;  %7647 = vmatpush1.bf16.msra.mxu1 %v8489_v18  ;;  %v525_v60 = vld [vmem:[%s10309_s3 + $0x578] sm:$0xff]  ;;  %v8599_v18 = vcombine.low %v500_v5, %v508_v6  ;;  %v612_v6 = vld [vmem:[%s10309_s3 + $0x830] sm:$0xff] }
 0x3b5   : > { %7484 = vmatprep.subr.bf16.mxu0 %v8504_v19  ;;  %7648 = vmatprep.subr.bf16.mxu1 %v8506_v20  ;;  %v8601_v19 = vcombine.low %v501_v7, %v509_v8  ;;  %v8616_v20 = vcombine.high %v516_v14, %v524_v15  ;;  %v8618_v21 = vcombine.high %v517_v16, %v525_v60  ;;  %v620_v7 = vld [vmem:[%s10309_s3 + $0x870] sm:$0xff]  ;;  %v613_v8 = vld [vmem:[%s10309_s3 + $0x838] sm:$0xff] }
 0x3b8   : > { %7485 = vmatpush1.bf16.msra.mxu0 %v8503_v28  ;;  %7649 = vmatpush1.bf16.msra.mxu1 %v8505_v10  ;;  %v541_v28 = vld [vmem:[%s10309_s3 + $0x5f8] sm:$0xff]  ;;  %v8615_v10 = vcombine.low %v516_v14, %v524_v15  ;;  %v628_v15 = vld [vmem:[%s10309_s3 + $0x8b0] sm:$0xff] }
 0x3b9   : > { %7486 = vmatprep.subr.bf16.mxu0 %v8520_v29  ;;  %7650 = vmatprep.subr.bf16.mxu1 %v8522_v30  ;;  %v8617_v29 = vcombine.low %v517_v16, %v525_v60  ;;  %v8632_v30 = vcombine.high %v532_v22, %v540_v23  ;;  %v8634_v31 = vcombine.high %v533_v25, %v541_v28  ;;  %v636_v16 = vld [vmem:[%s10309_s3 + $0x8f0] sm:$0xff]  ;;  %v629_v60 = vld [vmem:[%s10309_s3 + $0x8b8] sm:$0xff] }
 0x3bc   : > { %7487 = vmatpush1.bf16.msra.mxu0 %v8519_v36  ;;  %7651 = vmatpush1.bf16.msra.mxu1 %v8521_v56  ;;  %v557_v36 = vld [vmem:[%s10309_s3 + $0x678] sm:$0xff]  ;;  %v8631_v56 = vcombine.low %v532_v22, %v540_v23  ;;  %v644_v23 = vld [vmem:[%s10309_s3 + $0x930] sm:$0xff] }
 0x3bd   : > { %7488 = vmatprep.subr.bf16.mxu0 %v8536_v37  ;;  %7652 = vmatprep.subr.bf16.mxu1 %v8538_v38  ;;  %v8633_v37 = vcombine.low %v533_v25, %v541_v28  ;;  %v8648_v38 = vcombine.high %v548_v33, %v556_v34  ;;  %v8650_v39 = vcombine.high %v549_v0, %v557_v36  ;;  %v652_v25 = vld [vmem:[%s10309_s3 + $0x970] sm:$0xff]  ;;  %v645_v28 = vld [vmem:[%s10309_s3 + $0x938] sm:$0xff] }
 0x3c0   : > { %7489 = vmatpush1.bf16.msra.mxu0 %v8535_v44  ;;  %7653 = vmatpush1.bf16.msra.mxu1 %v8537_v46  ;;  %v573_v44 = vld [vmem:[%s10309_s3 + $0x6f8] sm:$0xff]  ;;  %v8647_v46 = vcombine.low %v548_v33, %v556_v34  ;;  %v660_v34 = vld [vmem:[%s10309_s3 + $0x9b0] sm:$0xff] }
 0x3c1   : > { %7490 = vmatprep.subr.bf16.mxu0 %v8552_v47  ;;  %7654 = vmatprep.subr.bf16.mxu1 %v8554_v48  ;;  %v8649_v47 = vcombine.low %v549_v0, %v557_v36  ;;  %v8664_v48 = vcombine.high %v564_v40, %v572_v41  ;;  %v8666_v49 = vcombine.high %v565_v43, %v573_v44  ;;  %v668_v0 = vld [vmem:[%s10309_s3 + $0x9f0] sm:$0xff]  ;;  %v661_v36 = vld [vmem:[%s10309_s3 + $0x9b8] sm:$0xff] }
 0x3c4   : > { %7491 = vmatpush1.bf16.msra.mxu0 %v8551_v53  ;;  %7655 = vmatpush1.bf16.msra.mxu1 %v8553_v55  ;;  %v589_v53 = vld [vmem:[%s10309_s3 + $0x778] sm:$0xff]  ;;  %v8663_v55 = vcombine.low %v564_v40, %v572_v41  ;;  %v676_v40 = vld [vmem:[%s10309_s3 + $0xa30] sm:$0xff] }
 0x3c5   : > { %7492 = vmatprep.subr.bf16.mxu0 %v8568_v24  ;;  %7656 = vmatprep.subr.bf16.mxu1 %v8570_v57  ;;  %v8665_v24 = vcombine.low %v565_v43, %v573_v44  ;;  %v8680_v57 = vcombine.high %v580_v50, %v588_v51  ;;  %v8682_v58 = vcombine.high %v581_v17, %v589_v53  ;;  %v684_v41 = vld [vmem:[%s10309_s3 + $0xa70] sm:$0xff]  ;;  %v677_v43 = vld [vmem:[%s10309_s3 + $0xa38] sm:$0xff] }
 0x3c6   : > { %v685_v44 = vld [vmem:[%s10309_s3 + $0xa78] sm:$0xff] }
 0x3c8   : > { %7493 = vmatpush1.bf16.msra.mxu0 %v8567_v63  ;;  %7657 = vmatpush1.bf16.msra.mxu1 %v8569_v1  ;;  %v605_v63 = vld [vmem:[%s10309_s3 + $0x7f8] sm:$0xff]  ;;  %v8679_v1 = vcombine.low %v580_v50, %v588_v51  ;;  %v700_v50 = vld [vmem:[%s10309_s3 + $0xaf0] sm:$0xff] }
 0x3c9   : > { %7494 = vmatprep.subr.bf16.mxu0 %v8584_v2  ;;  %7658 = vmatprep.subr.bf16.mxu1 %v8586_v4  ;;  %v8681_v2 = vcombine.low %v581_v17, %v589_v53  ;;  %v8696_v4 = vcombine.high %v596_v59, %v604_v61  ;;  %v8698_v5 = vcombine.high %v597_v62, %v605_v63  ;;  %v693_v51 = vld [vmem:[%s10309_s3 + $0xab8] sm:$0xff] }
 0x3ca   : > { %v701_v17 = vld [vmem:[%s10309_s3 + $0xaf8] sm:$0xff]  ;;  %v8775_v53 = vcombine.low %v676_v40, %v684_v41 }
 0x3cc   : > { %7495 = vmatpush1.bf16.msra.mxu0 %v8583_v9  ;;  %7659 = vmatpush1.bf16.msra.mxu1 %v8585_v11  ;;  %v621_v9 = vld [vmem:[%s10309_s3 + $0x878] sm:$0xff]  ;;  %v8695_v11 = vcombine.low %v596_v59, %v604_v61  ;;  %v716_v59 = vld [vmem:[%s10309_s3 + $0xb70] sm:$0xff] }
 0x3cd   : > { %7496 = vmatprep.subr.bf16.mxu0 %v8600_v12  ;;  %7660 = vmatprep.subr.bf16.mxu1 %v8602_v32  ;;  %v8697_v12 = vcombine.low %v597_v62, %v605_v63  ;;  %v8712_v32 = vcombine.high %v612_v6, %v620_v7  ;;  %v8714_v14 = vcombine.high %v613_v8, %v621_v9  ;;  %v709_v61 = vld [vmem:[%s10309_s3 + $0xb38] sm:$0xff] }
 0x3ce   : > { %v717_v62 = vld [vmem:[%s10309_s3 + $0xb78] sm:$0xff] }
 0x3d0   : > { %7497 = vmatpush1.bf16.msra.mxu0 %v8599_v18  ;;  %7661 = vmatpush1.bf16.msra.mxu1 %v8601_v19  ;;  %v637_v18 = vld [vmem:[%s10309_s3 + $0x8f8] sm:$0xff]  ;;  %v8711_v19 = vcombine.low %v612_v6, %v620_v7  ;;  %v732_v6 = vld [vmem:[%s10309_s3 + $0xbf0] sm:$0xff] }
 0x3d1   : > { %7498 = vmatprep.subr.bf16.mxu0 %v8616_v20  ;;  %7662 = vmatprep.subr.bf16.mxu1 %v8618_v21  ;;  %v8713_v20 = vcombine.low %v613_v8, %v621_v9  ;;  %v8728_v21 = vcombine.high %v628_v15, %v636_v16  ;;  %v8730_v22 = vcombine.high %v629_v60, %v637_v18  ;;  %v725_v7 = vld [vmem:[%s10309_s3 + $0xbb8] sm:$0xff] }
 0x3d2   : > { %v733_v8 = vld [vmem:[%s10309_s3 + $0xbf8] sm:$0xff] }
 0x3d4   : > { %7499 = vmatpush1.bf16.msra.mxu0 %v8615_v10  ;;  %7663 = vmatpush1.bf16.msra.mxu1 %v8617_v29  ;;  %v653_v10 = vld [vmem:[%s10309_s3 + $0x978] sm:$0xff]  ;;  %v8727_v29 = vcombine.low %v628_v15, %v636_v16  ;;  %v748_v15 = vld [vmem:[%s10309_s3 + $0xc70] sm:$0xff] }
 0x3d5   : > { %7500 = vmatprep.subr.bf16.mxu0 %v8632_v30  ;;  %7664 = vmatprep.subr.bf16.mxu1 %v8634_v31  ;;  %v8729_v30 = vcombine.low %v629_v60, %v637_v18  ;;  %v8744_v31 = vcombine.high %v644_v23, %v652_v25  ;;  %v8746_v33 = vcombine.high %v645_v28, %v653_v10  ;;  %v741_v16 = vld [vmem:[%s10309_s3 + $0xc38] sm:$0xff] }
 0x3d6   : > { %v749_v60 = vld [vmem:[%s10309_s3 + $0xc78] sm:$0xff] }
 0x3d8   : > { %7501 = vmatpush1.bf16.msra.mxu0 %v8631_v56  ;;  %7665 = vmatpush1.bf16.msra.mxu1 %v8633_v37  ;;  %v669_v56 = vld [vmem:[%s10309_s3 + $0x9f8] sm:$0xff]  ;;  %v8745_v37 = vcombine.low %v645_v28, %v653_v10 }
 0x3d9   : > { %7502 = vmatprep.subr.bf16.mxu0 %v8648_v38  ;;  %7666 = vmatprep.subr.bf16.mxu1 %v8650_v39  ;;  %v8760_v38 = vcombine.high %v660_v34, %v668_v0  ;;  %v8762_v39 = vcombine.high %v661_v36, %v669_v56  ;;  %v765_v28 = vld [vmem:[%s10309_s3 + $0xcf8] sm:$0xff] }
 0x3dc   : > { %7503 = vmatpush1.bf16.msra.mxu0 %v8647_v46  ;;  %7667 = vmatpush1.bf16.msra.mxu1 %v8649_v47  ;;  %v8759_v46 = vcombine.low %v660_v34, %v668_v0  ;;  %v8776_v47 = vcombine.high %v676_v40, %v684_v41  ;;  %v780_v34 = vld [vmem:[%s10309_s3 + $0xd70] sm:$0xff]  ;;  %v773_v0 = vld [vmem:[%s10309_s3 + $0xd38] sm:$0xff] }
 0x3dd   : > { %7504 = vmatprep.subr.bf16.mxu0 %v8664_v48  ;;  %7668 = vmatprep.subr.bf16.mxu1 %v8666_v49  ;;  %v8778_v48 = vcombine.high %v677_v43, %v685_v44  ;;  %v692_v49 = vld [vmem:[%s10309_s3 + $0xab0] sm:$0xff]  ;;  %v789_v41 = vld [vmem:[%s10309_s3 + $0xdb8] sm:$0xff] }
 0x3de   : > { %v8791_v63 = vcombine.low %v692_v49, %v700_v50  ;;  %v796_v40 = vld [vmem:[%s10309_s3 + $0xdf0] sm:$0xff] }
 0x3e0   : > { %7505 = vmatpush1.bf16.msra.mxu0 %v8663_v55  ;;  %7669 = vmatpush1.bf16.msra.mxu1 %v8665_v24  ;;  %v8777_v55 = vcombine.low %v677_v43, %v685_v44  ;;  %v8792_v24 = vcombine.high %v692_v49, %v700_v50  ;;  %v797_v43 = vld [vmem:[%s10309_s3 + $0xdf8] sm:$0xff]  ;;  %v812_v49 = vld [vmem:[%s10309_s3 + $0xe70] sm:$0xff] }
 0x3e1   : > { %7506 = vmatprep.subr.bf16.mxu0 %v8680_v57  ;;  %7670 = vmatprep.subr.bf16.mxu1 %v8682_v58  ;;  %v8794_v57 = vcombine.high %v693_v51, %v701_v17  ;;  %v708_v58 = vld [vmem:[%s10309_s3 + $0xb30] sm:$0xff]  ;;  %v805_v50 = vld [vmem:[%s10309_s3 + $0xe38] sm:$0xff] }
 0x3e2   : > { %v8807_v9 = vcombine.low %v708_v58, %v716_v59 }
 0x3e4   : > { %7507 = vmatpush1.bf16.msra.mxu0 %v8679_v1  ;;  %7671 = vmatpush1.bf16.msra.mxu1 %v8681_v2  ;;  %v8793_v1 = vcombine.low %v693_v51, %v701_v17  ;;  %v8808_v2 = vcombine.high %v708_v58, %v716_v59  ;;  %v813_v51 = vld [vmem:[%s10309_s3 + $0xe78] sm:$0xff]  ;;  %v828_v58 = vld [vmem:[%s10309_s3 + $0xef0] sm:$0xff] }
 0x3e5   : > { %7508 = vmatprep.subr.bf16.mxu0 %v8696_v4  ;;  %7672 = vmatprep.subr.bf16.mxu1 %v8698_v5  ;;  %v8810_v4 = vcombine.high %v709_v61, %v717_v62  ;;  %v724_v5 = vld [vmem:[%s10309_s3 + $0xbb0] sm:$0xff]  ;;  %v821_v59 = vld [vmem:[%s10309_s3 + $0xeb8] sm:$0xff] }
 0x3e6   : > { %v8823_v18 = vcombine.low %v724_v5, %v732_v6 }
 0x3e8   : > { %7509 = vmatpush1.bf16.msra.mxu0 %v8695_v11  ;;  %7673 = vmatpush1.bf16.msra.mxu1 %v8697_v12  ;;  %v8809_v11 = vcombine.low %v709_v61, %v717_v62  ;;  %v8824_v12 = vcombine.high %v724_v5, %v732_v6  ;;  %v829_v61 = vld [vmem:[%s10309_s3 + $0xef8] sm:$0xff]  ;;  %v844_v5 = vld [vmem:[%s10309_s3 + $0xf70] sm:$0xff] }
 0x3e9   : > { %7519 = vmatprep.subr.bf16.mxu0 %v8712_v32  ;;  %7683 = vmatprep.subr.bf16.mxu1 %v8714_v14  ;;  %v8826_v32 = vcombine.high %v725_v7, %v733_v8  ;;  %v740_v14 = vld [vmem:[%s10309_s3 + $0xc30] sm:$0xff]  ;;  %v837_v6 = vld [vmem:[%s10309_s3 + $0xf38] sm:$0xff] }
 0x3ea   : > { %v8839_v10 = vcombine.low %v740_v14, %v748_v15 }
 0x3eb   : > { %7511 = vmatmul.mubr.bf16.vlgmr.msra.gmra.mrb[12].mxu0 %v10427_v26  ;;  %7675 = vmatmul.mubr.bf16.vlgmr.msra.gmra.mrb[12].mxu1 %v10427_v26  ;;  %v8743_v26 = vcombine.low %v644_v23, %v652_v25  ;;  %v764_v23 = vld [vmem:[%s10309_s3 + $0xcf0] sm:$0xff]  ;;  %v757_v25 = vld [vmem:[%s10309_s3 + $0xcb8] sm:$0xff] }
 0x3ec   : > { %7520 = vmatpush1.bf16.msra.mxu0 %v8711_v19  ;;  %7684 = vmatpush1.bf16.msra.mxu1 %v8713_v20  ;;  %v8825_v19 = vcombine.low %v725_v7, %v733_v8  ;;  %v8840_v20 = vcombine.high %v740_v14, %v748_v15  ;;  %v845_v7 = vld [vmem:[%s10309_s3 + $0xf78] sm:$0xff]  ;;  %v860_v14 = vld [vmem:[%s10309_s3 + $0xff0] sm:$0xff] }
 0x3ed   : > { %7521 = vmatprep.subr.bf16.mxu0 %v8728_v21  ;;  %7685 = vmatprep.subr.bf16.mxu1 %v8730_v22  ;;  %v8842_v21 = vcombine.high %v741_v16, %v749_v60  ;;  %v756_v22 = vld [vmem:[%s10309_s3 + $0xcb0] sm:$0xff]  ;;  %v853_v15 = vld [vmem:[%s10309_s3 + $0xfb8] sm:$0xff] }
 0x3ee   : > { %7551 = vmatprep.mubr.bf16.mxu0 %v10433_v35  ;;  %7715 = vmatprep.mubr.bf16.mxu1 %v10433_v35  ;;  %v8761_v35 = vcombine.low %v661_v36, %v669_v56  ;;  %v781_v36 = vld [vmem:[%s10309_s3 + $0xd78] sm:$0xff]  ;;  %v8855_v56 = vcombine.low %v756_v22, %v764_v23 }
 0x3f0   : > { %7522 = vmatpush1.bf16.msra.mxu0 %v8727_v29  ;;  %7686 = vmatpush1.bf16.msra.mxu1 %v8729_v30  ;;  %v8841_v29 = vcombine.low %v741_v16, %v749_v60  ;;  %v8856_v30 = vcombine.high %v756_v22, %v764_v23  ;;  %v861_v16 = vld [vmem:[%s10309_s3 + $0xff8] sm:$0xff]  ;;  %v876_v22 = vld [vmem:[%s10309_s3 + $0x1070] sm:$0xff] }
 0x3f1   : > { %7523 = vmatprep.subr.bf16.mxu0 %v8744_v31  ;;  %7687 = vmatprep.subr.bf16.mxu1 %v8746_v33  ;;  %v8858_v31 = vcombine.high %v757_v25, %v765_v28  ;;  %v772_v33 = vld [vmem:[%s10309_s3 + $0xd30] sm:$0xff]  ;;  %v869_v23 = vld [vmem:[%s10309_s3 + $0x1038] sm:$0xff] }
 0x3f2   : > { %v8871_v44 = vcombine.low %v772_v33, %v780_v34 }
 0x3f4   : > { %7524 = vmatpush1.bf16.msra.mxu0 %v8743_v26  ;;  %7688 = vmatpush1.bf16.msra.mxu1 %v8745_v37  ;;  %v8857_v26 = vcombine.low %v757_v25, %v765_v28  ;;  %v8872_v37 = vcombine.high %v772_v33, %v780_v34  ;;  %v877_v25 = vld [vmem:[%s10309_s3 + $0x1078] sm:$0xff]  ;;  %v892_v33 = vld [vmem:[%s10309_s3 + $0x10f0] sm:$0xff] }
 0x3f5   : > { %7525 = vmatprep.subr.bf16.mxu0 %v8760_v38  ;;  %7689 = vmatprep.subr.bf16.mxu1 %v8762_v39  ;;  %v8874_v38 = vcombine.high %v773_v0, %v781_v36  ;;  %v788_v39 = vld [vmem:[%s10309_s3 + $0xdb0] sm:$0xff]  ;;  %v885_v34 = vld [vmem:[%s10309_s3 + $0x10b8] sm:$0xff] }
 0x3f6   : > { %v8887_v17 = vcombine.low %v788_v39, %v796_v40 }
 0x3f8   : > { %7526 = vmatpush1.bf16.msra.mxu0 %v8759_v46  ;;  %7690 = vmatpush1.bf16.msra.mxu1 %v8761_v35  ;;  %v8873_v46 = vcombine.low %v773_v0, %v781_v36  ;;  %v8888_v35 = vcombine.high %v788_v39, %v796_v40  ;;  %v893_v0 = vld [vmem:[%s10309_s3 + $0x10f8] sm:$0xff]  ;;  %v908_v39 = vld [vmem:[%s10309_s3 + $0x1170] sm:$0xff] }
 0x3f9   : > { %7527 = vmatprep.subr.bf16.mxu0 %v8776_v47  ;;  %7691 = vmatprep.subr.bf16.mxu1 %v8778_v48  ;;  %v8890_v47 = vcombine.high %v789_v41, %v797_v43  ;;  %v804_v48 = vld [vmem:[%s10309_s3 + $0xe30] sm:$0xff]  ;;  %v901_v40 = vld [vmem:[%s10309_s3 + $0x1138] sm:$0xff] }
 0x3fa   : > { %v8903_v62 = vcombine.low %v804_v48, %v812_v49 }
 0x3fc   : > { %7528 = vmatpush1.bf16.msra.mxu0 %v8775_v53  ;;  %7692 = vmatpush1.bf16.msra.mxu1 %v8777_v55  ;;  %v8889_v53 = vcombine.low %v789_v41, %v797_v43  ;;  %v8904_v55 = vcombine.high %v804_v48, %v812_v49  ;;  %v909_v41 = vld [vmem:[%s10309_s3 + $0x1178] sm:$0xff]  ;;  %v924_v48 = vld [vmem:[%s10309_s3 + $0x11f0] sm:$0xff] }
 0x3fd   : > { %7529 = vmatprep.subr.bf16.mxu0 %v8792_v24  ;;  %7693 = vmatprep.subr.bf16.mxu1 %v8794_v57  ;;  %v8906_v24 = vcombine.high %v805_v50, %v813_v51  ;;  %v820_v57 = vld [vmem:[%s10309_s3 + $0xeb0] sm:$0xff]  ;;  %v917_v49 = vld [vmem:[%s10309_s3 + $0x11b8] sm:$0xff] }
 0x3fe   : > { %v8919_v8 = vcombine.low %v820_v57, %v828_v58 }
 0x400   : > { %7530 = vmatpush1.bf16.msra.mxu0 %v8791_v63  ;;  %7694 = vmatpush1.bf16.msra.mxu1 %v8793_v1  ;;  %v8905_v63 = vcombine.low %v805_v50, %v813_v51  ;;  %v8920_v1 = vcombine.high %v820_v57, %v828_v58  ;;  %v925_v50 = vld [vmem:[%s10309_s3 + $0x11f8] sm:$0xff]  ;;  %v9001_v51 = vcombine.low %v901_v40, %v909_v41 }
 0x401   : > { %7531 = vmatprep.subr.bf16.mxu0 %v8808_v2  ;;  %7695 = vmatprep.subr.bf16.mxu1 %v8810_v4  ;;  %v8922_v2 = vcombine.high %v821_v59, %v829_v61  ;;  %v836_v4 = vld [vmem:[%s10309_s3 + $0xf30] sm:$0xff]  ;;  %v933_v57 = vld [vmem:[%s10309_s3 + $0x1238] sm:$0xff] }
 0x402   : > { %v8935_v60 = vcombine.low %v836_v4, %v844_v5  ;;  %v941_v58 = vld [vmem:[%s10309_s3 + $0x1278] sm:$0xff] }
 0x404   : > { %7532 = vmatpush1.bf16.msra.mxu0 %v8807_v9  ;;  %7696 = vmatpush1.bf16.msra.mxu1 %v8809_v11  ;;  %v8921_v9 = vcombine.low %v821_v59, %v829_v61  ;;  %v8936_v11 = vcombine.high %v836_v4, %v844_v5  ;;  %v957_v4 = vld [vmem:[%s10309_s3 + $0x12f8] sm:$0xff] }
 0x405   : > { %7533 = vmatprep.subr.bf16.mxu0 %v8824_v12  ;;  %7697 = vmatprep.subr.bf16.mxu1 %v8826_v32  ;;  %v8938_v12 = vcombine.high %v837_v6, %v845_v7  ;;  %v852_v32 = vld [vmem:[%s10309_s3 + $0xfb0] sm:$0xff] }
 0x406   : > { %v8951_v28 = vcombine.low %v852_v32, %v860_v14 }
 0x408   : > { %7534 = vmatpush1.bf16.msra.mxu0 %v8823_v18  ;;  %7698 = vmatpush1.bf16.msra.mxu1 %v8825_v19  ;;  %v8937_v18 = vcombine.low %v837_v6, %v845_v7  ;;  %v8952_v19 = vcombine.high %v852_v32, %v860_v14  ;;  %v9033_v6 = vcombine.low %v933_v57, %v941_v58  ;;  %v973_v32 = vld [vmem:[%s10309_s3 + $0x1378] sm:$0xff] }
 0x409   : > { %7535 = vmatprep.subr.bf16.mxu0 %v8840_v20  ;;  %7699 = vmatprep.subr.bf16.mxu1 %v8842_v21  ;;  %v8954_v20 = vcombine.high %v853_v15, %v861_v16  ;;  %v868_v21 = vld [vmem:[%s10309_s3 + $0x1030] sm:$0xff] }
 0x40a   : > { %v8967_v36 = vcombine.low %v868_v21, %v876_v22 }
 0x40c   : > { %7536 = vmatpush1.bf16.msra.mxu0 %v8839_v10  ;;  %7700 = vmatpush1.bf16.msra.mxu1 %v8841_v29  ;;  %v8953_v10 = vcombine.low %v853_v15, %v861_v16  ;;  %v8968_v29 = vcombine.high %v868_v21, %v876_v22  ;;  %v989_v21 = vld [vmem:[%s10309_s3 + $0x13f8] sm:$0xff] }
 0x40d   : > { %7537 = vmatprep.subr.bf16.mxu0 %v8856_v30  ;;  %7701 = vmatprep.subr.bf16.mxu1 %v8858_v31  ;;  %v8970_v30 = vcombine.high %v869_v23, %v877_v25  ;;  %v884_v31 = vld [vmem:[%s10309_s3 + $0x10b0] sm:$0xff] }
 0x40e   : > { %v8983_v43 = vcombine.low %v884_v31, %v892_v33 }
 0x410   : > { %7538 = vmatpush1.bf16.msra.mxu0 %v8855_v56  ;;  %7702 = vmatpush1.bf16.msra.mxu1 %v8857_v26  ;;  %v8969_v56 = vcombine.low %v869_v23, %v877_v25  ;;  %v8984_v26 = vcombine.high %v884_v31, %v892_v33  ;;  %v1005_v31 = vld [vmem:[%s10309_s3 + $0x1478] sm:$0xff] }
 0x411   : > { %7539 = vmatprep.subr.bf16.mxu0 %v8872_v37  ;;  %7703 = vmatprep.subr.bf16.mxu1 %v8874_v38  ;;  %v8986_v37 = vcombine.high %v885_v34, %v893_v0  ;;  %v900_v38 = vld [vmem:[%s10309_s3 + $0x1130] sm:$0xff] }
 0x414   : > { %7540 = vmatpush1.bf16.msra.mxu0 %v8871_v44  ;;  %7704 = vmatpush1.bf16.msra.mxu1 %v8873_v46  ;;  %v8985_v44 = vcombine.low %v885_v34, %v893_v0  ;;  %v9000_v46 = vcombine.high %v900_v38, %v908_v39 }
 0x415   : > { %7541 = vmatprep.subr.bf16.mxu0 %v8888_v35  ;;  %7705 = vmatprep.subr.bf16.mxu1 %v8890_v47  ;;  %v9002_v35 = vcombine.high %v901_v40, %v909_v41  ;;  %v916_v47 = vld [vmem:[%s10309_s3 + $0x11b0] sm:$0xff] }
 0x416   : > { %v9015_v59 = vcombine.low %v916_v47, %v924_v48 }
 0x418   : > { %7542 = vmatpush1.bf16.msra.mxu0 %v8887_v17  ;;  %7706 = vmatpush1.bf16.msra.mxu1 %v8889_v53  ;;  %v9016_v17 = vcombine.high %v916_v47, %v924_v48  ;;  %v9018_v53 = vcombine.high %v917_v49, %v925_v50  ;;  %v1037_v47 = vld [vmem:[%s10309_s3 + $0x1578] sm:$0xff] }
 0x419   : > { %7543 = vmatprep.subr.bf16.mxu0 %v8904_v55  ;;  %7707 = vmatprep.subr.bf16.mxu1 %v8906_v24  ;;  %v932_v55 = vld [vmem:[%s10309_s3 + $0x1230] sm:$0xff] }
 0x41a   : > { %v940_v24 = vld [vmem:[%s10309_s3 + $0x1270] sm:$0xff] }
 0x41b   : > { %v9032_v61 = vcombine.high %v932_v55, %v940_v24  ;;  %v9031_v5 = vcombine.low %v932_v55, %v940_v24  ;;  %v1053_v55 = vld [vmem:[%s10309_s3 + $0x15f8] sm:$0xff] }
 0x41c   : > { %7544 = vmatpush1.bf16.msra.mxu0 %v8903_v62  ;;  %7708 = vmatpush1.bf16.msra.mxu1 %v8905_v63  ;;  %v9034_v62 = vcombine.high %v933_v57, %v941_v58  ;;  %v948_v63 = vld [vmem:[%s10309_s3 + $0x12b0] sm:$0xff] }
 0x41d   : > { %7545 = vmatprep.subr.bf16.mxu0 %v8920_v1  ;;  %7709 = vmatprep.subr.bf16.mxu1 %v8922_v2  ;;  %v956_v1 = vld [vmem:[%s10309_s3 + $0x12f0] sm:$0xff]  ;;  %v949_v2 = vld [vmem:[%s10309_s3 + $0x12b8] sm:$0xff] }
 0x41e   : > { %v9048_v7 = vcombine.high %v948_v63, %v956_v1  ;;  %v9047_v14 = vcombine.low %v948_v63, %v956_v1  ;;  %v9049_v15 = vcombine.low %v949_v2, %v957_v4  ;;  %v1069_v63 = vld [vmem:[%s10309_s3 + $0x1678] sm:$0xff] }
 0x420   : > { %7546 = vmatpush1.bf16.msra.mxu0 %v8919_v8  ;;  %7710 = vmatpush1.bf16.msra.mxu1 %v8921_v9  ;;  %v9050_v8 = vcombine.high %v949_v2, %v957_v4  ;;  %v964_v9 = vld [vmem:[%s10309_s3 + $0x1330] sm:$0xff] }
 0x421   : > { %7547 = vmatprep.subr.bf16.mxu0 %v8936_v11  ;;  %7711 = vmatprep.subr.bf16.mxu1 %v8938_v12  ;;  %v972_v11 = vld [vmem:[%s10309_s3 + $0x1370] sm:$0xff]  ;;  %v965_v12 = vld [vmem:[%s10309_s3 + $0x1338] sm:$0xff] }
 0x422   : > { %v9064_v16 = vcombine.high %v964_v9, %v972_v11  ;;  %v9063_v22 = vcombine.low %v964_v9, %v972_v11  ;;  %v9065_v23 = vcombine.low %v965_v12, %v973_v32  ;;  %v1085_v9 = vld [vmem:[%s10309_s3 + $0x16f8] sm:$0xff] }
 0x424   : > { %7548 = vmatpush1.bf16.msra.mxu0 %v8935_v60  ;;  %7712 = vmatpush1.bf16.msra.mxu1 %v8937_v18  ;;  %v9066_v60 = vcombine.high %v965_v12, %v973_v32  ;;  %v980_v18 = vld [vmem:[%s10309_s3 + $0x13b0] sm:$0xff] }
 0x425   : > { %7549 = vmatprep.subr.bf16.mxu0 %v8952_v19  ;;  %7713 = vmatprep.subr.bf16.mxu1 %v8954_v20  ;;  %v988_v19 = vld [vmem:[%s10309_s3 + $0x13f0] sm:$0xff]  ;;  %v981_v20 = vld [vmem:[%s10309_s3 + $0x13b8] sm:$0xff] }
 0x426   : > { %v9080_v25 = vcombine.high %v980_v18, %v988_v19  ;;  %v9079_v33 = vcombine.low %v980_v18, %v988_v19  ;;  %v9081_v34 = vcombine.low %v981_v20, %v989_v21  ;;  %v1101_v18 = vld [vmem:[%s10309_s3 + $0x1778] sm:$0xff] }
 0x428   : > { %7550 = vmatpush1.bf16.msra.mxu0 %v8951_v28  ;;  %7714 = vmatpush1.bf16.msra.mxu1 %v8953_v10  ;;  %v9082_v28 = vcombine.high %v981_v20, %v989_v21  ;;  %v996_v10 = vld [vmem:[%s10309_s3 + $0x1430] sm:$0xff] }
 0x429   : > { %7560 = vmatprep.subr.bf16.mxu0 %v8968_v29  ;;  %7724 = vmatprep.subr.bf16.mxu1 %v8970_v30  ;;  %v1004_v29 = vld [vmem:[%s10309_s3 + $0x1470] sm:$0xff]  ;;  %v997_v30 = vld [vmem:[%s10309_s3 + $0x1438] sm:$0xff] }
 0x42a   : > { %v9096_v0 = vcombine.high %v996_v10, %v1004_v29  ;;  %v9097_v40 = vcombine.low %v997_v30, %v1005_v31 }
 0x42b   : > { %7552 = vmatmul.mubr.bf16.vlgmr.msra.gmra.mrb[12].mxu0 %v10511_v42  ;;  %7716 = vmatmul.mubr.bf16.vlgmr.msra.gmra.mrb[12].mxu1 %v10511_v42  ;;  %v8999_v42 = vcombine.low %v900_v38, %v908_v39  ;;  %v1021_v38 = vld [vmem:[%s10309_s3 + $0x14f8] sm:$0xff]  ;;  %v9095_v39 = vcombine.low %v996_v10, %v1004_v29 }
 0x42c   : > { %7561 = vmatpush1.bf16.msra.mxu0 %v8967_v36  ;;  %7725 = vmatpush1.bf16.msra.mxu1 %v8969_v56  ;;  %v9098_v36 = vcombine.high %v997_v30, %v1005_v31  ;;  %v1012_v56 = vld [vmem:[%s10309_s3 + $0x14b0] sm:$0xff]  ;;  %v1117_v10 = vld [vmem:[%s10309_s3 + $0x17f8] sm:$0xff] }
 0x42d   : > { %7562 = vmatprep.subr.bf16.mxu0 %v8984_v26  ;;  %7726 = vmatprep.subr.bf16.mxu1 %v8986_v37  ;;  %v1020_v26 = vld [vmem:[%s10309_s3 + $0x14f0] sm:$0xff]  ;;  %v1013_v37 = vld [vmem:[%s10309_s3 + $0x14b8] sm:$0xff] }
 0x42e   : > { %7592 = vmatprep.mubr.bf16.mxu0 %v10517_v52  ;;  %7756 = vmatprep.mubr.bf16.mxu1 %v10517_v52  ;;  %v9017_v52 = vcombine.low %v917_v49, %v925_v50  ;;  %v9112_v41 = vcombine.high %v1012_v56, %v1020_v26  ;;  %v9111_v48 = vcombine.low %v1012_v56, %v1020_v26  ;;  %v1133_v56 = vld [vmem:[%s10309_s3 + $0x1878] sm:$0xff] }
 0x42f   : > { %v9113_v49 = vcombine.low %v1013_v37, %v1021_v38 }
 0x430   : > { %7563 = vmatpush1.bf16.msra.mxu0 %v8983_v43  ;;  %7727 = vmatpush1.bf16.msra.mxu1 %v8985_v44  ;;  %v9114_v43 = vcombine.high %v1013_v37, %v1021_v38  ;;  %v1028_v44 = vld [vmem:[%s10309_s3 + $0x1530] sm:$0xff] }
 0x431   : > { %7564 = vmatprep.subr.bf16.mxu0 %v9000_v46  ;;  %7728 = vmatprep.subr.bf16.mxu1 %v9002_v35  ;;  %v1036_v46 = vld [vmem:[%s10309_s3 + $0x1570] sm:$0xff]  ;;  %v1029_v35 = vld [vmem:[%s10309_s3 + $0x1538] sm:$0xff] }
 0x432   : > { %v9128_v50 = vcombine.high %v1028_v44, %v1036_v46  ;;  %v9127_v24 = vcombine.low %v1028_v44, %v1036_v46  ;;  %v9129_v57 = vcombine.low %v1029_v35, %v1037_v47  ;;  %v1149_v44 = vld [vmem:[%s10309_s3 + $0x18f8] sm:$0xff] }
 0x434   : > { %7565 = vmatpush1.bf16.msra.mxu0 %v8999_v42  ;;  %7729 = vmatpush1.bf16.msra.mxu1 %v9001_v51  ;;  %v9130_v42 = vcombine.high %v1029_v35, %v1037_v47  ;;  %v1044_v51 = vld [vmem:[%s10309_s3 + $0x15b0] sm:$0xff] }
 0x435   : > { %7566 = vmatprep.subr.bf16.mxu0 %v9016_v17  ;;  %7730 = vmatprep.subr.bf16.mxu1 %v9018_v53  ;;  %v1052_v17 = vld [vmem:[%s10309_s3 + $0x15f0] sm:$0xff]  ;;  %v1045_v53 = vld [vmem:[%s10309_s3 + $0x15b8] sm:$0xff] }
 0x436   : > { %v9144_v58 = vcombine.high %v1044_v51, %v1052_v17  ;;  %v9143_v1 = vcombine.low %v1044_v51, %v1052_v17  ;;  %v9145_v2 = vcombine.low %v1045_v53, %v1053_v55  ;;  %v1165_v51 = vld [vmem:[%s10309_s3 + $0x1978] sm:$0xff] }
 0x438   : > { %7567 = vmatpush1.bf16.msra.mxu0 %v9015_v59  ;;  %7731 = vmatpush1.bf16.msra.mxu1 %v9017_v52  ;;  %v9146_v59 = vcombine.high %v1045_v53, %v1053_v55  ;;  %v1060_v52 = vld [vmem:[%s10309_s3 + $0x1630] sm:$0xff] }
 0x439   : > { %7568 = vmatprep.subr.bf16.mxu0 %v9032_v61  ;;  %7732 = vmatprep.subr.bf16.mxu1 %v9034_v62  ;;  %v1068_v61 = vld [vmem:[%s10309_s3 + $0x1670] sm:$0xff]  ;;  %v1061_v62 = vld [vmem:[%s10309_s3 + $0x1638] sm:$0xff] }
 0x43a   : > { %v9160_v4 = vcombine.high %v1060_v52, %v1068_v61  ;;  %v9159_v11 = vcombine.low %v1060_v52, %v1068_v61  ;;  %v9161_v12 = vcombine.low %v1061_v62, %v1069_v63  ;;  %v1181_v52 = vld [vmem:[%s10309_s3 + $0x19f8] sm:$0xff] }
 0x43c   : > { %7569 = vmatpush1.bf16.msra.mxu0 %v9031_v5  ;;  %7733 = vmatpush1.bf16.msra.mxu1 %v9033_v6  ;;  %v9162_v5 = vcombine.high %v1061_v62, %v1069_v63  ;;  %v1076_v6 = vld [vmem:[%s10309_s3 + $0x16b0] sm:$0xff] }
 0x43d   : > { %7570 = vmatprep.subr.bf16.mxu0 %v9048_v7  ;;  %7734 = vmatprep.subr.bf16.mxu1 %v9050_v8  ;;  %v1084_v7 = vld [vmem:[%s10309_s3 + $0x16f0] sm:$0xff]  ;;  %v1077_v8 = vld [vmem:[%s10309_s3 + $0x16b8] sm:$0xff] }
 0x43e   : > { %v9176_v32 = vcombine.high %v1076_v6, %v1084_v7  ;;  %v9175_v19 = vcombine.low %v1076_v6, %v1084_v7  ;;  %v9177_v20 = vcombine.low %v1077_v8, %v1085_v9 }
 0x440   : > { %7571 = vmatpush1.bf16.msra.mxu0 %v9047_v14  ;;  %7735 = vmatpush1.bf16.msra.mxu1 %v9049_v15  ;;  %v9178_v14 = vcombine.high %v1077_v8, %v1085_v9  ;;  %v1092_v15 = vld [vmem:[%s10309_s3 + $0x1730] sm:$0xff] }
 0x441   : > { %7572 = vmatprep.subr.bf16.mxu0 %v9064_v16  ;;  %7736 = vmatprep.subr.bf16.mxu1 %v9066_v60  ;;  %v1100_v16 = vld [vmem:[%s10309_s3 + $0x1770] sm:$0xff]  ;;  %v1093_v60 = vld [vmem:[%s10309_s3 + $0x1738] sm:$0xff] }
 0x442   : > { %v9192_v21 = vcombine.high %v1092_v15, %v1100_v16  ;;  %v9191_v29 = vcombine.low %v1092_v15, %v1100_v16  ;;  %v9193_v30 = vcombine.low %v1093_v60, %v1101_v18  ;;  %v1204_v9 = vld [vmem:[%s10309_s3 + $0x1ab0] sm:$0xff] }
 0x444   : > { %7573 = vmatpush1.bf16.msra.mxu0 %v9063_v22  ;;  %7737 = vmatpush1.bf16.msra.mxu1 %v9065_v23  ;;  %v9194_v22 = vcombine.high %v1093_v60, %v1101_v18  ;;  %v1108_v23 = vld [vmem:[%s10309_s3 + $0x17b0] sm:$0xff] }
 0x445   : > { %7574 = vmatprep.subr.bf16.mxu0 %v9080_v25  ;;  %7738 = vmatprep.subr.bf16.mxu1 %v9082_v28  ;;  %v1116_v25 = vld [vmem:[%s10309_s3 + $0x17f0] sm:$0xff]  ;;  %v1109_v28 = vld [vmem:[%s10309_s3 + $0x17b8] sm:$0xff] }
 0x446   : > { %v9208_v31 = vcombine.high %v1108_v23, %v1116_v25  ;;  %v9207_v26 = vcombine.low %v1108_v23, %v1116_v25  ;;  %v9209_v37 = vcombine.low %v1109_v28, %v1117_v10  ;;  %v1220_v18 = vld [vmem:[%s10309_s3 + $0x1b30] sm:$0xff] }
 0x448   : > { %7575 = vmatpush1.bf16.msra.mxu0 %v9079_v33  ;;  %7739 = vmatpush1.bf16.msra.mxu1 %v9081_v34  ;;  %v9210_v33 = vcombine.high %v1109_v28, %v1117_v10  ;;  %v1124_v34 = vld [vmem:[%s10309_s3 + $0x1830] sm:$0xff] }
 0x449   : > { %7576 = vmatprep.subr.bf16.mxu0 %v9096_v0  ;;  %7740 = vmatprep.subr.bf16.mxu1 %v9098_v36  ;;  %v1132_v0 = vld [vmem:[%s10309_s3 + $0x1870] sm:$0xff]  ;;  %v1125_v36 = vld [vmem:[%s10309_s3 + $0x1838] sm:$0xff] }
 0x44a   : > { %v9224_v38 = vcombine.high %v1124_v34, %v1132_v0  ;;  %v9223_v46 = vcombine.low %v1124_v34, %v1132_v0  ;;  %v9225_v35 = vcombine.low %v1125_v36, %v1133_v56  ;;  %v1237_v34 = vld [vmem:[%s10309_s3 + $0x1bb8] sm:$0xff] }
 0x44b   : > { %v1245_v0 = vld [vmem:[%s10309_s3 + $0x1bf8] sm:$0xff] }
 0x44c   : > { %7577 = vmatpush1.bf16.msra.mxu0 %v9095_v39  ;;  %7741 = vmatpush1.bf16.msra.mxu1 %v9097_v40  ;;  %v9226_v39 = vcombine.high %v1125_v36, %v1133_v56  ;;  %v1140_v40 = vld [vmem:[%s10309_s3 + $0x18b0] sm:$0xff] }
 0x44d   : > { %7578 = vmatprep.subr.bf16.mxu0 %v9112_v41  ;;  %7742 = vmatprep.subr.bf16.mxu1 %v9114_v43  ;;  %v1148_v41 = vld [vmem:[%s10309_s3 + $0x18f0] sm:$0xff]  ;;  %v1141_v43 = vld [vmem:[%s10309_s3 + $0x18b8] sm:$0xff] }
 0x44e   : > { %v9240_v47 = vcombine.high %v1140_v40, %v1148_v41  ;;  %v9239_v17 = vcombine.low %v1140_v40, %v1148_v41  ;;  %v9241_v53 = vcombine.low %v1141_v43, %v1149_v44 }
 0x450   : > { %7579 = vmatpush1.bf16.msra.mxu0 %v9111_v48  ;;  %7743 = vmatpush1.bf16.msra.mxu1 %v9113_v49  ;;  %v9242_v48 = vcombine.high %v1141_v43, %v1149_v44  ;;  %v1156_v49 = vld [vmem:[%s10309_s3 + $0x1930] sm:$0xff] }
 0x451   : > { %7580 = vmatprep.subr.bf16.mxu0 %v9128_v50  ;;  %7744 = vmatprep.subr.bf16.mxu1 %v9130_v42  ;;  %v1164_v50 = vld [vmem:[%s10309_s3 + $0x1970] sm:$0xff]  ;;  %v1157_v42 = vld [vmem:[%s10309_s3 + $0x1938] sm:$0xff] }
 0x452   : > { %v9256_v55 = vcombine.high %v1156_v49, %v1164_v50  ;;  %v9257_v61 = vcombine.low %v1157_v42, %v1165_v51 }
 0x454   : > { %7581 = vmatpush1.bf16.msra.mxu0 %v9127_v24  ;;  %7745 = vmatpush1.bf16.msra.mxu1 %v9129_v57  ;;  %v9258_v24 = vcombine.high %v1157_v42, %v1165_v51  ;;  %v1172_v57 = vld [vmem:[%s10309_s3 + $0x19b0] sm:$0xff]  ;;  %v1261_v42 = vld [vmem:[%s10309_s3 + $0x1c78] sm:$0xff] }
 0x455   : > { %7582 = vmatprep.subr.bf16.mxu0 %v9144_v58  ;;  %7746 = vmatprep.subr.bf16.mxu1 %v9146_v59  ;;  %v1180_v58 = vld [vmem:[%s10309_s3 + $0x19f0] sm:$0xff]  ;;  %v1173_v59 = vld [vmem:[%s10309_s3 + $0x19b8] sm:$0xff] }
 0x456   : > { %v9272_v62 = vcombine.high %v1172_v57, %v1180_v58  ;;  %v9274_v63 = vcombine.high %v1173_v59, %v1181_v52  ;;  %v9271_v6 = vcombine.low %v1172_v57, %v1180_v58  ;;  %v348_v51 = vld [vmem:[#allocation2 + $0x10] sm:$0xff] }
 0x457   : > { %v1268_v58 = vld [vmem:[%s10309_s3 + $0x1cb0] sm:$0xff] }
 0x458   : > { %7583 = vmatpush1.bf16.msra.mxu0 %v9143_v1  ;;  %7747 = vmatpush1.bf16.msra.mxu1 %v9145_v2  ;;  %v1188_v1 = vld [vmem:[%s10309_s3 + $0x1a30] sm:$0xff] }
 0x459   : > { %7584 = vmatprep.subr.bf16.mxu0 %v9160_v4  ;;  %7748 = vmatprep.subr.bf16.mxu1 %v9162_v5  ;;  %v1196_v2 = vld [vmem:[%s10309_s3 + $0x1a70] sm:$0xff]  ;;  %v1189_v4 = vld [vmem:[%s10309_s3 + $0x1a38] sm:$0xff] }
 0x45a   : > { %v1197_v5 = vld [vmem:[%s10309_s3 + $0x1a78] sm:$0xff]  ;;  %v9288_v7 = vcombine.high %v1188_v1, %v1196_v2 }
 0x45b   : > { %v9290_v8 = vcombine.high %v1189_v4, %v1197_v5  ;;  %v9289_v15 = vcombine.low %v1189_v4, %v1197_v5  ;;  %v1284_v4 = vld [vmem:[%s10309_s3 + $0x1d30] sm:$0xff] }
 0x45c   : > { %7585 = vmatpush1.bf16.msra.mxu0 %v9159_v11  ;;  %7749 = vmatpush1.bf16.msra.mxu1 %v9161_v12  ;;  %v1212_v11 = vld [vmem:[%s10309_s3 + $0x1af0] sm:$0xff]  ;;  %v1205_v12 = vld [vmem:[%s10309_s3 + $0x1ab8] sm:$0xff] }
 0x45d   : > { %7586 = vmatprep.subr.bf16.mxu0 %v9176_v32  ;;  %7750 = vmatprep.subr.bf16.mxu1 %v9178_v14  ;;  %v1213_v32 = vld [vmem:[%s10309_s3 + $0x1af8] sm:$0xff]  ;;  %v9287_v14 = vcombine.low %v1188_v1, %v1196_v2  ;;  %v9304_v16 = vcombine.high %v1204_v9, %v1212_v11  ;;  %v1292_v5 = vld [vmem:[%s10309_s3 + $0x1d70] sm:$0xff] }
 0x45e   : > { %v9306_v60 = vcombine.high %v1205_v12, %v1213_v32  ;;  %v9305_v23 = vcombine.low %v1205_v12, %v1213_v32  ;;  %v1300_v12 = vld [vmem:[%s10309_s3 + $0x1db0] sm:$0xff] }
 0x45f   : > { %v1308_v32 = vld [vmem:[%s10309_s3 + $0x1df0] sm:$0xff] }
 0x460   : > { %7587 = vmatpush1.bf16.msra.mxu0 %v9175_v19  ;;  %7751 = vmatpush1.bf16.msra.mxu1 %v9177_v20  ;;  %v1228_v19 = vld [vmem:[%s10309_s3 + $0x1b70] sm:$0xff]  ;;  %v1221_v20 = vld [vmem:[%s10309_s3 + $0x1b38] sm:$0xff] }
 0x461   : > { %7588 = vmatprep.subr.bf16.mxu0 %v9192_v21  ;;  %7752 = vmatprep.subr.bf16.mxu1 %v9194_v22  ;;  %v1229_v21 = vld [vmem:[%s10309_s3 + $0x1b78] sm:$0xff]  ;;  %v9303_v22 = vcombine.low %v1204_v9, %v1212_v11  ;;  %v9320_v25 = vcombine.high %v1220_v18, %v1228_v19  ;;  %v9384_v9 = vcombine.high %v1284_v4, %v1292_v5 }
 0x462   : > { %v9322_v10 = vcombine.high %v1221_v20, %v1229_v21  ;;  %v9321_v41 = vcombine.low %v1221_v20, %v1229_v21  ;;  %v1316_v20 = vld [vmem:[%s10309_s3 + $0x1e30] sm:$0xff] }
 0x463   : > { %v1324_v21 = vld [vmem:[%s10309_s3 + $0x1e70] sm:$0xff] }
 0x464   : > { %7589 = vmatpush1.bf16.msra.mxu0 %v9191_v29  ;;  %7753 = vmatpush1.bf16.msra.mxu1 %v9193_v30  ;;  %v1236_v29 = vld [vmem:[%s10309_s3 + $0x1bb0] sm:$0xff] }
 0x465   : > { %7590 = vmatprep.subr.bf16.mxu0 %v9208_v31  ;;  %7754 = vmatprep.subr.bf16.mxu1 %v9210_v33  ;;  %v1244_v30 = vld [vmem:[%s10309_s3 + $0x1bf0] sm:$0xff] }
 0x466   : > { %v9336_v43 = vcombine.high %v1236_v29, %v1244_v30 }
 0x468   : > { %7591 = vmatpush1.bf16.msra.mxu0 %v9207_v26  ;;  %7755 = vmatpush1.bf16.msra.mxu1 %v9209_v37  ;;  %v9319_v37 = vcombine.low %v1220_v18, %v1228_v19  ;;  %v9400_v18 = vcombine.high %v1300_v12, %v1308_v32 }
 0x469   : > { %7601 = vmatprep.subr.bf16.mxu0 %v9224_v38  ;;  %7765 = vmatprep.subr.bf16.mxu1 %v9226_v39 }
 0x46b   : > { %7593 = vmatmul.mubr.bf16.vlgmr.msra.gmra.mrb[12].mxu0 %v10592_v3  ;;  %7757 = vmatmul.mubr.bf16.vlgmr.msra.gmra.mrb[12].mxu1 %v10592_v3  ;;  %v9255_v3 = vcombine.low %v1156_v49, %v1164_v50  ;;  %v1253_v50 = vld [vmem:[%s10309_s3 + $0x1c38] sm:$0xff] }
 0x46c   : > { %7602 = vmatpush1.bf16.msra.mxu0 %v9223_v46  ;;  %7766 = vmatpush1.bf16.msra.mxu1 %v9225_v35  ;;  %v9338_v35 = vcombine.high %v1237_v34, %v1245_v0  ;;  %v9354_v57 = vcombine.high %v1253_v50, %v1261_v42 }
 0x46d   : > { %7603 = vmatprep.subr.bf16.mxu0 %v9240_v47  ;;  %7767 = vmatprep.subr.bf16.mxu1 %v9242_v48  ;;  %v1252_v47 = vld [vmem:[%s10309_s3 + $0x1c30] sm:$0xff] }
 0x46e   : > { %7633 = vmatprep.mubr.bf16.mxu0 %v10598_v13  ;;  %7797 = vmatprep.mubr.bf16.mxu1 %v10598_v13  ;;  %v9273_v13 = vcombine.low %v1173_v59, %v1181_v52  ;;  %v1260_v48 = vld [vmem:[%s10309_s3 + $0x1c70] sm:$0xff] }
 0x46f   : > { %v1276_v59 = vld [vmem:[%s10309_s3 + $0x1cf0] sm:$0xff] }
 0x470   : > { %7604 = vmatpush1.bf16.msra.mxu0 %v9239_v17  ;;  %7768 = vmatpush1.bf16.msra.mxu1 %v9241_v53  ;;  %v9335_v17 = vcombine.low %v1236_v29, %v1244_v30  ;;  %v9368_v1 = vcombine.high %v1268_v58, %v1276_v59  ;;  %v1332_v30 = vld [vmem:[%s10309_s3 + $0x1eb0] sm:$0xff] }
 0x471   : > { %7605 = vmatprep.subr.bf16.mxu0 %v9256_v55  ;;  %7769 = vmatprep.subr.bf16.mxu1 %v9258_v24  ;;  %v9337_v55 = vcombine.low %v1237_v34, %v1245_v0  ;;  %v9352_v24 = vcombine.high %v1252_v47, %v1260_v48  ;;  %v1341_v34 = vld [vmem:[%s10309_s3 + $0x1ef8] sm:$0xff]  ;;  %v9415_v0 = vcombine.low %v1316_v20, %v1324_v21 }
 0x474   : > { %7606 = vmatpush1.bf16.msra.mxu0 %v9255_v3  ;;  %7770 = vmatpush1.bf16.msra.mxu1 %v9257_v61  ;;  %v1269_v3 = vld [vmem:[%s10309_s3 + $0x1cb8] sm:$0xff] }
 0x475   : > { %7607 = vmatprep.subr.bf16.mxu0 %v9272_v62  ;;  %7771 = vmatprep.subr.bf16.mxu1 %v9274_v63  ;;  %v1277_v61 = vld [vmem:[%s10309_s3 + $0x1cf8] sm:$0xff]  ;;  %v9351_v62 = vcombine.low %v1252_v47, %v1260_v48  ;;  %v9353_v63 = vcombine.low %v1253_v50, %v1261_v42  ;;  %v1372_v47 = vld [vmem:[%s10309_s3 + $0x1ff0] sm:$0xff] }
 0x476   : > { %v9370_v2 = vcombine.high %v1269_v3, %v1277_v61  ;;  %v1365_v48 = vld [vmem:[%s10309_s3 + $0x1fb8] sm:$0xff] }
 0x478   : > { %7608 = vmatpush1.bf16.msra.mxu0 %v9271_v6  ;;  %7772 = vmatpush1.bf16.msra.mxu1 %v9273_v13  ;;  %v1285_v6 = vld [vmem:[%s10309_s3 + $0x1d38] sm:$0xff] }
 0x479   : > { %7609 = vmatprep.subr.bf16.mxu0 %v9288_v7  ;;  %7773 = vmatprep.subr.bf16.mxu1 %v9290_v8  ;;  %v1293_v13 = vld [vmem:[%s10309_s3 + $0x1d78] sm:$0xff]  ;;  %v9367_v7 = vcombine.low %v1268_v58, %v1276_v59  ;;  %v9369_v8 = vcombine.low %v1269_v3, %v1277_v61 }
 0x47a   : > { %v9386_v11 = vcombine.high %v1285_v6, %v1293_v13 }
 0x47c   : > { %7610 = vmatpush1.bf16.msra.mxu0 %v9287_v14  ;;  %7774 = vmatpush1.bf16.msra.mxu1 %v9289_v15  ;;  %v1301_v14 = vld [vmem:[%s10309_s3 + $0x1db8] sm:$0xff] }
 0x47d   : > { %7611 = vmatprep.subr.bf16.mxu0 %v9304_v16  ;;  %7775 = vmatprep.subr.bf16.mxu1 %v9306_v60  ;;  %v1309_v15 = vld [vmem:[%s10309_s3 + $0x1df8] sm:$0xff]  ;;  %v9383_v16 = vcombine.low %v1284_v4, %v1292_v5  ;;  %v9385_v60 = vcombine.low %v1285_v6, %v1293_v13 }
 0x47e   : > { %v7307_v28 = vpop.f32.mrb[8].mxu0  ;;  %v7471_v31 = vpop.f32.mrb[8].mxu1  ;;  %v9402_v19 = vcombine.high %v1301_v14, %v1309_v15  ;;  %v349_v5 = vld [vmem:[#allocation2 + $0x18] sm:$0xff] }
 0x47f   : > { %v7309_v33 = vpop.f32.mrb[9].mxu0  ;;  %v7473_v56 = vpop.f32.mrb[9].mxu1 }
 0x480   : > { %v7856_v36 = vcombine.low %v7307_v28, %v7309_v33  ;;  %v7311_v26 = vpop.f32.mrb[10].mxu0  ;;  %7612 = vmatpush1.bf16.msra.mxu0 %v9303_v22  ;;  %v7857_v38 = vcombine.low %v7471_v31, %v7473_v56  ;;  %v7475_v39 = vpop.f32.mrb[10].mxu1  ;;  %7776 = vmatpush1.bf16.msra.mxu1 %v9305_v23  ;;  %v1317_v22 = vld [vmem:[%s10309_s3 + $0x1e38] sm:$0xff]  ;;  %v9401_v28 = vcombine.low %v1301_v14, %v1309_v15  ;;  %v1340_v31 = vld [vmem:[%s10309_s3 + $0x1ef0] sm:$0xff]  ;;  %v7940_v14 = vsub.s32 (!%p9467_p9), 6, %v10351_v45 }
 0x481   : > { %v7312_v40 = vpop.f32.mrb[11].mxu0  ;;  %7613 = vmatprep.subr.bf16.mxu0 %v9320_v25  ;;  %v7476_v46 = vpop.f32.mrb[11].mxu1  ;;  %7777 = vmatprep.subr.bf16.mxu1 %v9322_v10  ;;  %v1325_v23 = vld [vmem:[%s10309_s3 + $0x1e78] sm:$0xff]  ;;  %v9399_v25 = vcombine.low %v1300_v12, %v1308_v32  ;;  %v9416_v10 = vcombine.high %v1316_v20, %v1324_v21  ;;  %v9432_v56 = vcombine.high %v1332_v30, %v1340_v31  ;;  %v7932_v12 = vsub.s32 (!%p9467_p9), 4, %v10351_v45 }
 0x482   : > { %v7864_v44 = vrot.slane %v7856_v36, %v10358_v54  ;;  %v7871_v49 = vrot.slane %v7857_v38, %v10358_v54  ;;  %v9418_v29 = vcombine.high %v1317_v22, %v1325_v23  ;;  %v1333_v33 = vld [vmem:[%s10309_s3 + $0x1eb8] sm:$0xff]  ;;  %v9417_v36 = vcombine.low %v1317_v22, %v1325_v23  ;;  %v1356_v38 = vld [vmem:[%s10309_s3 + $0x1f70] sm:$0xff] }
 0x483   : > { %v9434_v26 = vcombine.high %v1333_v33, %v1341_v34  ;;  %v1349_v39 = vld [vmem:[%s10309_s3 + $0x1f38] sm:$0xff]  ;;  %v7936_v32 = vsub.s32 (!%p9467_p9), 5, %v10351_v45 }
 0x484   : > { %7614 = vmatpush1.bf16.msra.mxu0 %v9319_v37  ;;  %v7872_v53 = vcombine.low %v7864_v44, %v7871_v49  ;;  %7778 = vmatpush1.bf16.msra.mxu1 %v9321_v41  ;;  %v1348_v37 = vld [vmem:[%s10309_s3 + $0x1f30] sm:$0xff]  ;;  %v1357_v40 = vld [vmem:[%s10309_s3 + $0x1f78] sm:$0xff]  ;;  %v9431_v41 = vcombine.low %v1332_v30, %v1340_v31 }
 0x485   : > { %7615 = vmatprep.subr.bf16.mxu0 %v9336_v43  ;;  %7779 = vmatprep.subr.bf16.mxu1 %v9338_v35  ;;  %v9433_v43 = vcombine.low %v1333_v33, %v1341_v34  ;;  %v9448_v44 = vcombine.high %v1348_v37, %v1356_v38  ;;  %v9450_v46 = vcombine.high %v1349_v39, %v1357_v40  ;;  %v1364_v35 = vld [vmem:[%s10309_s3 + $0x1fb0] sm:$0xff]  ;;  %v1373_v49 = vld [vmem:[%s10309_s3 + $0x1ff8] sm:$0xff] }
 0x486   : > { %v7896_v52 = vadd.f32 %v7872_v53, %v348_v51  ;;  %v9447_v50 = vcombine.low %v1348_v37, %v1356_v38  ;;  %v9449_v42 = vcombine.low %v1349_v39, %v1357_v40  ;;  %v9464_v51 = vcombine.high %v1364_v35, %v1372_v47  ;;  %v7906_v38 = vld [vmem:[#allocation2] sm:$0xff] (!%p9467_p9) }
 0x487   : > { %v9463_v53 = vcombine.low %v1364_v35, %v1372_v47  ;;  %v9979_v35 = vmov (!%p9467_p9), 1966171168  }
 0x488   : > { %7616 = vmatpush1.bf16.msra.mxu0 %v9335_v17  ;;  %7900 = vst [vmem:[#allocation2 + $0x10] sm:$0xff] %v7896_v52  ;;  %7780 = vmatpush1.bf16.msra.mxu1 %v9337_v55  ;;  %v9466_v17 = vcombine.high %v1365_v48, %v1373_v49  ;;  %v9465_v55 = vcombine.low %v1365_v48, %v1373_v49  ;;  %v8183_v47 = vunpack.c.l.s4 (!%p9467_p9), %v9979_v35 }
 0x489   : > { %7617 = vmatprep.subr.bf16.mxu0 %v9352_v24  ;;  %7781 = vmatprep.subr.bf16.mxu1 %v9354_v57 }
 0x48c   : > { %7618 = vmatpush1.bf16.msra.mxu0 %v9351_v62  ;;  %7782 = vmatpush1.bf16.msra.mxu1 %v9353_v63 }
 0x48d   : > { %7619 = vmatprep.subr.bf16.mxu0 %v9368_v1  ;;  %7783 = vmatprep.subr.bf16.mxu1 %v9370_v2 }
 0x490   : > { %7620 = vmatpush1.bf16.msra.mxu0 %v9367_v7  ;;  %7784 = vmatpush1.bf16.msra.mxu1 %v9369_v8  ;;  %v7916_v7 = vsub.s32 (!%p9467_p9), 0, %v10351_v45  ;;  %v7920_v8 = vsub.s32 (!%p9467_p9), 1, %v10351_v45 }
 0x491   : > { %7621 = vmatprep.subr.bf16.mxu0 %v9384_v9  ;;  %7785 = vmatprep.subr.bf16.mxu1 %v9386_v11  ;;  %v7924_v9 = vsub.s32 (!%p9467_p9), 2, %v10351_v45  ;;  %v7928_v11 = vsub.s32 (!%p9467_p9), 3, %v10351_v45 }
 0x494   : > { %7622 = vmatpush1.bf16.msra.mxu0 %v9383_v16  ;;  %7786 = vmatpush1.bf16.msra.mxu1 %v9385_v60 }
 0x495   : > { %7623 = vmatprep.subr.bf16.mxu0 %v9400_v18  ;;  %7787 = vmatprep.subr.bf16.mxu1 %v9402_v19  ;;  %v7944_v18 = vsub.s32 (!%p9467_p9), 7, %v10351_v45  ;;  %v7911_v19 = vld [vmem:[%s246_s28 + $0x8] sm:$0xff] (!%p9467_p9) }
 0x496   : > { %v7949_v30 = vrot.slane (!%p9467_p9), %v7911_v19, %v7916_v7  ;;  %v7953_v31 = vrot.slane (!%p9467_p9), %v7911_v19, %v7920_v8  ;;  %v7965_v37 = vrot.slane (!%p9467_p9), %v7911_v19, %v7932_v12  ;;  %v7969_v40 = vrot.slane (!%p9467_p9), %v7911_v19, %v7936_v32 }
 0x498   : > { %7624 = vmatpush1.bf16.msra.mxu0 %v9399_v25  ;;  %7788 = vmatpush1.bf16.msra.mxu1 %v9401_v28  ;;  %v8012_v48 = vcombine.low (!%p9467_p9), %v7949_v30, %v7953_v31 }
 0x499   : > { %7625 = vmatprep.subr.bf16.mxu0 %v9416_v10  ;;  %7789 = vmatprep.subr.bf16.mxu1 %v9418_v29 }
 0x49c   : > { %7626 = vmatpush1.bf16.msra.mxu0 %v9415_v0  ;;  %7790 = vmatpush1.bf16.msra.mxu1 %v9417_v36  ;;  %v7957_v0 = vrot.slane (!%p9467_p9), %v7911_v19, %v7924_v9  ;;  %v7961_v36 = vrot.slane (!%p9467_p9), %v7911_v19, %v7928_v11 }
 0x49d   : > { %7627 = vmatprep.subr.bf16.mxu0 %v9432_v56  ;;  %7791 = vmatprep.subr.bf16.mxu1 %v9434_v26 }
 0x49e   : > { %v8013_v49 = vcombine.low (!%p9467_p9), %v7957_v0, %v7961_v36 }
 0x4a0   : > { %7628 = vmatpush1.bf16.msra.mxu0 %v9431_v41  ;;  %7792 = vmatpush1.bf16.msra.mxu1 %v9433_v43  ;;  %v7973_v41 = vrot.slane (!%p9467_p9), %v7911_v19, %v7940_v14  ;;  %v7977_v43 = vrot.slane (!%p9467_p9), %v7911_v19, %v7944_v18 }
 0x4a1   : > { %7629 = vmatprep.subr.bf16.mxu0 %v9448_v44  ;;  %7793 = vmatprep.subr.bf16.mxu1 %v9450_v46  ;;  %v7907_v44 = vld [vmem:[#allocation2 + $0x8] sm:$0xff] (!%p9467_p9) }
 0x4a4   : > { %7630 = vmatpush1.bf16.msra.mxu0 %v9447_v50  ;;  %7794 = vmatpush1.bf16.msra.mxu1 %v9449_v42  ;;  %v8029_v42 = vcombine.low (!%p9467_p9), %v7965_v37, %v7969_v40 }
 0x4a5   : > { %7631 = vmatprep.subr.bf16.mxu0 %v9464_v51  ;;  %7795 = vmatprep.subr.bf16.mxu1 %v9466_v17  ;;  %v8030_v51 = vcombine.low (!%p9467_p9), %v7973_v41, %v7977_v43 }
 0x4a8   : > { %7632 = vmatpush1.bf16.msra.mxu0 %v9463_v53  ;;  %7796 = vmatpush1.bf16.msra.mxu1 %v9465_v55  ;;  %v8020_v53 = vrot.slane (!%p9467_p9), %v8012_v48, %v10358_v54  ;;  %v8027_v55 = vrot.slane (!%p9467_p9), %v8013_v49, %v10358_v54 }
 0x4ab   : > { %7634 = vmatmul.mubr.bf16.vlgmr.msra.gmra.mrb[12].mxu0 %v10666_v27  ;;  %7798 = vmatmul.mubr.bf16.vlgmr.msra.gmra.mrb[12].mxu1 %v10666_v27  ;;  %v7910_v27 = vld [vmem:[%s246_s28] sm:$0xff] (!%p9467_p9) }
 0x4ac   : > { %v7917_v15 = vrot.slane (!%p9467_p9), %v7910_v27, %v7916_v7  ;;  %v7921_v16 = vrot.slane (!%p9467_p9), %v7910_v27, %v7920_v8  ;;  %v7925_v60 = vrot.slane (!%p9467_p9), %v7910_v27, %v7924_v9  ;;  %v7929_v20 = vrot.slane (!%p9467_p9), %v7910_v27, %v7928_v11 }
 0x4ad   : > { %v7933_v21 = vrot.slane (!%p9467_p9), %v7910_v27, %v7932_v12  ;;  %v7937_v22 = vrot.slane (!%p9467_p9), %v7910_v27, %v7936_v32  ;;  %v7941_v23 = vrot.slane (!%p9467_p9), %v7910_v27, %v7940_v14  ;;  %v7945_v25 = vrot.slane (!%p9467_p9), %v7910_v27, %v7944_v18 }
 0x4ae   : > { %v7978_v28 = vcombine.low (!%p9467_p9), %v7917_v15, %v7921_v16  ;;  %v7979_v10 = vcombine.low (!%p9467_p9), %v7925_v60, %v7929_v20 }
 0x4af   : > { %v7995_v29 = vcombine.low (!%p9467_p9), %v7933_v21, %v7937_v22  ;;  %v7996_v34 = vcombine.low (!%p9467_p9), %v7941_v23, %v7945_v25 }
 0x4b0   : > { %v7986_v33 = vrot.slane (!%p9467_p9), %v7978_v28, %v10358_v54  ;;  %v7993_v56 = vrot.slane (!%p9467_p9), %v7979_v10, %v10358_v54 }
 0x4b1   : > { %v8003_v26 = vrot.slane (!%p9467_p9), %v7995_v29, %v10358_v54  ;;  %v8010_v39 = vrot.slane (!%p9467_p9), %v7996_v34, %v10358_v54 }
 0x4b2   : > { %v7994_v46 = vcombine.low (!%p9467_p9), %v7986_v33, %v7993_v56 }
 0x4b3   : > { %v8011_v50 = vcombine.low (!%p9467_p9), %v8003_v26, %v8010_v39 }
 0x4b4   : > { %v8050_v17 = vadd.f32 (!%p9467_p9), %v7994_v46, %v7906_v38 }
 0x57e   : > { %v7635_v24 = vpop.f32.mrb[12].mxu0  ;;  %v7799_v57 = vpop.f32.mrb[12].mxu1 }
 0x57f   : > { %v7637_v58 = vpop.f32.mrb[13].mxu0  ;;  %v7801_v52 = vpop.f32.mrb[13].mxu1 }
 0x580   : > { %v7873_v59 = vcombine.low %v7635_v24, %v7637_v58  ;;  %v7639_v3 = vpop.f32.mrb[14].mxu0  ;;  %v7874_v61 = vcombine.low %v7799_v57, %v7801_v52  ;;  %v7803_v62 = vpop.f32.mrb[14].mxu1  ;;  %v8051_v24 = vadd.f32 (!%p9467_p9), %v8011_v50, %v7907_v44  ;;  %v7908_v57 = vld [vmem:[#allocation2 + $0x10] sm:$0xff] (!%p9467_p9)  ;;  %v8037_v58 = vrot.slane (!%p9467_p9), %v8029_v42, %v10358_v54 }
 0x581   : > { %v7640_v63 = vpop.f32.mrb[15].mxu0  ;;  %v7804_v2 = vpop.f32.mrb[15].mxu1  ;;  %v8054_v52 = vmax.f32 (!%p9467_p9), %v8050_v17, 0.0  ;;  %v8184_v3 = vunpack.c.0.s8 (!%p9467_p9), %v8183_v47  ;;  %v8028_v62 = vcombine.low (!%p9467_p9), %v8020_v53, %v8027_v55 }
 0x582   : > { %v7881_v1 = vrot.slane %v7873_v59, %v10358_v54  ;;  %v7888_v4 = vrot.slane %v7874_v61, %v10358_v54  ;;  %7905 = sbr.rel (%p9467_p9) target bundleno = 1445 (0x5a5), region = 52  ;;  %v8044_v59 = vrot.slane (!%p9467_p9), %v8030_v51, %v10358_v54  ;;  %v8055_v63 = vmax.f32 (!%p9467_p9), %v8051_v24, 0.0 }
 0x583   : > { %v8062_v2 = vcombine.high (!%p9467_p9), %v8054_v52, %v8054_v52  ;;  %v8187_v9 = vsub.s32 (!%p9467_p9), %v8184_v3, %v10351_v45 }
 0x584   : > { %v7889_v6 = vcombine.low %v7881_v1, %v7888_v4  ;;  %v8045_v1 = vcombine.low (!%p9467_p9), %v8037_v58, %v8044_v59  ;;  %v8069_v4 = vrot.slane (!%p9467_p9), %v8054_v52, %v10358_v54 }
 0x585   : > { %v8076_v7 = vrot.slane (!%p9467_p9), %v8062_v2, %v10358_v54 }
 0x586   : > { %v7897_v13 = vadd.f32 %v7889_v6, %v349_v5  ;;  %v8052_v5 = vadd.f32 (!%p9467_p9), %v8028_v62, %v7908_v57  ;;  %v8079_v6 = vcombine.high (!%p9467_p9), %v8055_v63, %v8055_v63  ;;  %v8077_v8 = vcombine.high (!%p9467_p9), %v8069_v4, %v8069_v4 }
 0x587   : > { %v8078_v15 = vcombine.high (!%p9467_p9), %v8076_v7, %v8076_v7 }
 0x588   : > { %7901 = vst [vmem:[#allocation2 + $0x18] sm:$0xff] %v7897_v13  ;;  %v8086_v13 = vrot.slane (!%p9467_p9), %v8055_v63, %v10358_v54  ;;  %v8056_v11 = vmax.f32 (!%p9467_p9), %v8052_v5, 0.0  ;;  %v8093_v12 = vrot.slane (!%p9467_p9), %v8079_v6, %v10358_v54  ;;  %v9468_v16 = vpack.c.bf16 (!%p9467_p9), %v8077_v8, %v8069_v4 }
 0x589   : > { %v9469_v23 = vpack.c.bf16 %v8078_v15, %v8076_v7 }
 0x58a   : > { %v8094_v32 = vcombine.high %v8086_v13, %v8086_v13  ;;  %v8096_v60 = vcombine.high %v8056_v11, %v8056_v11  ;;  %v8103_v18 = vrot.slane %v8056_v11, %v10358_v54  ;;  %v8095_v19 = vcombine.high %v8093_v12, %v8093_v12 }
 0x58b   : > { %v8188_v25 = vrot.slane %v9468_v16, %v8187_v9  ;;  %v8195_v33 = vrot.slane %v9469_v23, %v8187_v9 }
 0x58c   : > { %v9470_v20 = vpack.c.bf16 %v8094_v32, %v8086_v13  ;;  %v8110_v28 = vrot.slane %v8096_v60, %v10358_v54  ;;  %v8111_v45 = vcombine.high %v8103_v18, %v8103_v18  ;;  %v9471_v10 = vpack.c.bf16 %v8095_v19, %v8093_v12 }
 0x58d   : > { %v8210_v37 = vcombine.low %v8188_v25, %v8195_v33 }
 0x58e   : > { %v8202_v29 = vrot.slane %v9470_v20, %v8187_v9  ;;  %v8112_v34 = vcombine.high %v8110_v28, %v8110_v28  ;;  %v9472_v0 = vpack.c.bf16 %v8111_v45, %v8103_v18  ;;  %v8209_v36 = vrot.slane %v9471_v10, %v8187_v9 }
 0x58f   : > { %v7909_v61 = vld [vmem:[#allocation2 + $0x18] sm:$0xff]  ;;  %v8218_v44 = vrot.slane %v8210_v37, %v8187_v9 }
 0x590   : > { %v8053_v27 = vadd.f32 %v8045_v1, %v7909_v61  ;;  %v9473_v38 = vpack.c.bf16 %v8112_v34, %v8110_v28  ;;  %v8237_v39 = vrot.slane %v9472_v0, %v8187_v9  ;;  %v8211_v40 = vcombine.low %v8202_v29, %v8209_v36 }
 0x592   : > { %v8057_v14 = vmax.f32 %v8053_v27, 0.0  ;;  %v8244_v46 = vrot.slane %v9473_v38, %v8187_v9  ;;  %v8225_v35 = vrot.slane %v8211_v40, %v8187_v9 }
 0x594   : > { %v8113_v21 = vcombine.high %v8057_v14, %v8057_v14  ;;  %v8120_v22 = vrot.slane %v8057_v14, %v10358_v54  ;;  %v8226_v48 = vcombine.low %v8218_v44, %v8225_v35 }
 0x596   : > { %v8127_v30 = vrot.slane %v8113_v21, %v10358_v54  ;;  %v8128_v31 = vcombine.high %v8120_v22, %v8120_v22  ;;  %v8259_v54 = vcombine.low %v8237_v39, %v8244_v46  ;;  %8278 = vst [vmem:[%s10326_s8] sm:$0xff] %v8226_v48 }
 0x598   : > { %v8129_v56 = vcombine.high %v8127_v30, %v8127_v30  ;;  %v9474_v26 = vpack.c.bf16 %v8128_v31, %v8120_v22  ;;  %v8267_v50 = vrot.slane %v8259_v54, %v8187_v9 }
 0x59a   : > { %v9475_v41 = vpack.c.bf16 %v8129_v56, %v8127_v30  ;;  %v8251_v43 = vrot.slane %v9474_v26, %v8187_v9 }
 0x59c   : > { %v8258_v47 = vrot.slane %v9475_v41, %v8187_v9 }
 0x59e   : > { %v8260_v49 = vcombine.low %v8251_v43, %v8258_v47 }
 0x5a0   : > { %v8274_v42 = vrot.slane %v8260_v49, %v8187_v9 }
 0x5a2   : > { %v8275_v51 = vcombine.low %v8267_v50, %v8274_v42 }
 0x5a4   : > { %8279 = vst [vmem:[%s10326_s8 + $0x8] sm:$0xff] %v8275_v51 }
 0x5a5 PF: > { %s11648_s21 = sld [smem:[#allocation15_spill]]  ;;  %s11649_s9 = sld [smem:[#allocation22_spill]] }
 0x5a6   : > { %s8295_s15 = sshll.u32 %s10326_s8, 4  ;;  %s8281_s24 = scalar_lea.sflag [#allocation5], %s244_s10  ;;  %s8296_s15 = int_to_ptr.vmem [resolvable:$true] %s8295_s15 }
 0x5a7   : > { %s9815_s20 = scalar_lea.vmem %s8296_s15, 256  ;;  %p11650_p0 = scmp.ne.s32.totalorder %s11640_s30, 0 }
 0x5a8   : > { %p9816_p1 = scmp.ne.s32.totalorder %s8296_s15, %s9815_s20  ;;  %s9980_s0 = smov [#allocation9]  }
 0x5a9   : > { %s9819_s29 = sshll.u32 %s9980_s0, 4  ;;  %s9820_s29 = int_to_ptr.vmem [resolvable:$false] %s9819_s29 }
 0x5aa   : > { %p9817_p5 = pnand %p9816_p1, %p11650_p0  ;;  %s9821_s6 = scalar_lea.vmem %s9820_s29, 512 }
 0x5ab   : > { %s9484_s5 = sshll.u32 %s11648_s21, 8  ;;  %p9822_p7 = scmp.lt.s32.totalorder %s8296_s15, %s9820_s29 }
 0x5ac   : > { %s11524_s22 = scalar_lea.hbm %s11649_s9, %s9484_s5  ;;  %p9818_p3 = pneg %p9817_p5 }
 0x5ad   : > { %p9823_p12 = scmp.lt.s32.totalorder %s9821_s6, %s9815_s20 }
 0x5af   : > { %p9824_p8 = por %p9823_p12, %p9822_p7 }
 0x5b1   : > { %p9825_p13 = pnand %p9824_p8, %p9818_p3 }
 0x5b3   : > { %9828 = shalt.err (!%p9825_p13)
}
 0x5b4   : > { %s9829_s26 = scalar_lea.hbm %s11524_s22, 256  ;;  %s9833_s27 = scalar_lea.hbm %s11649_s9, 512 }
 0x5b5   : > { %p9830_p10 = scmp.ne.s32.totalorder %s11524_s22, %s9829_s26  ;;  %p9834_p6 = scmp.lt.u32.totalorder %s11524_s22, %s11649_s9 }
 0x5b6   : > { %p9835_p11 = scmp.lt.u32.totalorder %s9833_s27, %s9829_s26  ;;  %p9837_p1 = scmp.lt.u32.totalorder %s9829_s26, %s11524_s22 }
 0x5b7   : > { %p9831_p4 = pnand %p9830_p10, %p11650_p0 }
 0x5b8   : > { %p9836_p9 = por %p9835_p11, %p9834_p6 }
 0x5b9   : > { %p9832_p2 = pneg %p9831_p4 }
 0x5ba   : > { %p9838_p5 = por %p9837_p1, %p9836_p9 }
 0x5bc   : > { %p9839_p3 = pnand %p9838_p5, %p9832_p2 }
 0x5be   : > { %9842 = shalt.err (!%p9839_p3)
}
 0x5bf   : > { %9587 = dma.vmem_to_hbm [thread:$0]  (%p11650_p0), %s8296_s15, 256, %s11524_s22, %s8281_s24  }
 0x5c0 PF: > { %p9604_p7 = scmp.ge.s32.totalorder %s9969_s25, 2  ;;  %s8307_s21 = sand.u32 1, %s9917_s12  }
 0x5c1   : > { %p11651_p12 = scmp.ne.s32.totalorder %s11641_s7, 0  ;;  %s8308_s5 = scalar_lea.sflag [#allocation5], %s8307_s21 }
 0x5c3   : > { %p9600_p8 = pnand %p9604_p7, %p11651_p12 }
 0x5c5   : > { %9912 = dma.done.wait (!%p9600_p8), %s8308_s5, 256  }
 0x5c6   : > { %9914 = vsyncadd (!%p9600_p8), %s8308_s5, 4294967040  ;;  %s22_s25 = sadd.s32 1, %s9969_s25   ;;  %s11653_s30 = sld [smem:[#allocation14_spill]] }
 0x5c7   : > { %p11551_p13 = scmp.ge.s32.totalorder %s22_s25, 20   ;;  %s11654_s20 = sld [smem:[#allocation19_spill]] }
 0x5c8   : > { %s11655_s22 = sld [smem:[#allocation16_spill]]  ;;  %s11656_s7 = sld [smem:[#allocation17_spill]] }
 0x5c9   : > { %s11657_s24 = sld [smem:[#allocation18_spill]]  ;;  %s11659_s12 = smov %s9921_s13 }
 0x5ca   : > { %s11660_s13 = smov %s9925_s14  ;;  %s11661_s14 = smov %s10235_s4 }
 0x5cb   : > { %s11662_s15 = smov %s9933_s16  ;;  %s11663_s16 = smov %s9937_s17 }
 0x5cc   : > { %s11664_s17 = smov %s10187_s11  ;;  %s11665_s18 = smov %s9945_s19 }
 0x5cd   : > { %s11666_s19 = smov %s11653_s30  ;;  %s11667_s21 = smov %s9961_s23 }
 0x5ce   : > { %s11668_s23 = smov %s11656_s7  ;;  %21 = sbr.rel (!%p11551_p13) target bundleno = 16 (0x10), region = 109 }
 0x5d5   :  { %8313 = vsyncpa [#allocation4], 1 }
 0x5d6   :  { %8315 = vsyncpa [#allocation4 + $0x1], 1 }
 0x5d7   :  { %8316 = vsyncpa [#allocation7], 1 }
 0x5d8   :  { %8318 = vsyncpa [#allocation7 + $0x1], 1 }
 0x5d9   :  { %8319 = vsyncpa [#allocation5], 1 }
 0x5da   :  { %8321 = vsyncpa [#allocation5 + $0x1], 1 }

</bundles_post_ra>
